<compile_context>
chip_gen: v5e
topology: v5e:2x2
jax: 0.10.0
libtpu: 0.0.40
codegen_flags: <defaults>
</compile_context>

<pallas_src>
import functools

import jax
import jax.numpy as jnp
from jax.experimental import pallas as pl
from jax.experimental.pallas import tpu as pltpu

EPS = 1e-5   # nn.BatchNorm2d default eps
LANE = 128


# ------------------------------ small helpers ------------------------------ #

def _round_up(x, m):
    return (x + m - 1) // m * m


def _pick_tile(n, cands):
    for c in cands:
        if n % c == 0:
            return c
    return n


def _pad_last(a, target):
    pad = target - a.shape[-1]
    if pad == 0:
        return a
    cfg = [(0, 0)] * (a.ndim - 1) + [(0, pad)]
    return jnp.pad(a, cfg)


# ------------------------------ Pallas kernels ------------------------------ #

def _conv3x3_stats_kernel(xf_ref, w_ref, mask_ref, y_ref, stats_ref, *, wp):
    """Fused stride-1 3x3 conv (9 shifted bf16 MXU matmuls) + BN sum/sumsq.

    xf_ref   : (Lp, Cin_p) bf16  -- one zero-padded image, spatially flattened
                                    row-major with padded width `wp`.
    w_ref    : (9, Cin_p, tco) bf16 -- the (ky, kx) taps of the weight.
    mask_ref : (L, 1) f32 -- 1.0 on valid output positions, 0.0 on the junk
                             columns introduced by the flattened layout.
    y_ref    : (L, tco) f32 -- flattened conv output (junk columns included).
    stats_ref: (2, tco) f32 -- [sum, sum-of-squares], accumulated across the
                               batch grid axis (masked to valid positions).
    """
    n = pl.program_id(1)

    @pl.when(n == 0)
    def _():
        stats_ref[...] = jnp.zeros_like(stats_ref)

    L = y_ref.shape[0]
    y_ref[...] = jnp.zeros_like(y_ref)
    for dy in range(3):
        for dx in range(3):
            off = dy * wp + dx
            y_ref[...] += jnp.dot(xf_ref[off:off + L, :], w_ref[dy * 3 + dx],
                                  preferred_element_type=jnp.float32)

    ym = y_ref[...] * mask_ref[...]
    stats_ref[...] += jnp.concatenate(
        [jnp.sum(ym, axis=0, keepdims=True),
         jnp.sum(ym * ym, axis=0, keepdims=True)], axis=0)


def _matmul_stats_kernel(x_ref, w_ref, y_ref, stats_ref):
    """(tm, K) @ (K, tco) bf16 MXU matmul + BN sum/sumsq accumulation."""
    m = pl.program_id(1)

    @pl.when(m == 0)
    def _():
        stats_ref[...] = jnp.zeros_like(stats_ref)

    y = jnp.dot(x_ref[...], w_ref[...], preferred_element_type=jnp.float32)
    y_ref[...] = y
    stats_ref[...] += jnp.concatenate(
        [jnp.sum(y, axis=0, keepdims=True),
         jnp.sum(y * y, axis=0, keepdims=True)], axis=0)


def _bn_relu_kernel(y_ref, s_ref, b_ref, o_ref):
    o_ref[...] = jnp.maximum(y_ref[...] * s_ref[...] + b_ref[...], 0.0)


def _bn_add_relu_kernel(y_ref, s_ref, b_ref, id_ref, si_ref, bi_ref, o_ref):
    o_ref[...] = jnp.maximum(
        y_ref[...] * s_ref[...] + b_ref[...]
        + id_ref[...] * si_ref[...] + bi_ref[...], 0.0)


# -------------------------------- wrappers ---------------------------------- #

def conv3x3_bn_stats(x_nhwc, w9):
    """Fused 3x3 / stride-1 / pad-1 conv + BN batch-statistics accumulation.

    x_nhwc: (N, H, W, Cin_p) f32 (channel-padded); w9: (9, Cin_p, Cout_p) bf16.
    Returns y (N*H*W, Cout_p) f32 and stats (2, Cout_p) f32 = [sum, sumsq].
    """
    N, H, W, Cin_p = x_nhwc.shape
    Cout_p = w9.shape[-1]
    Hp, Wp = H + 2, W + 2
    L = _round_up(H * Wp, 8)        # flattened rows per image (junk included)
    Lp = Hp * Wp + 16               # extra rows so every shifted slab is in-bounds

    xf = jnp.pad(x_nhwc, ((0, 0), (1, 1), (1, 1), (0, 0)))
    xf = xf.reshape(N, Hp * Wp, Cin_p)
    xf = jnp.pad(xf, ((0, 0), (0, Lp - Hp * Wp), (0, 0))).astype(jnp.bfloat16)

    ridx = jnp.arange(L)
    mask = (((ridx % Wp) < W) & (ridx < H * Wp)).astype(jnp.float32).reshape(L, 1)

    tco = _pick_tile(Cout_p, (256, 128))
    grid = (Cout_p // tco, N)

    y_flat, stats = pl.pallas_call(
        functools.partial(_conv3x3_stats_kernel, wp=Wp),
        out_shape=(jax.ShapeDtypeStruct((N * L, Cout_p), jnp.float32),
                   jax.ShapeDtypeStruct((2, Cout_p), jnp.float32)),
        grid=grid,
        in_specs=[pl.BlockSpec((None, Lp, Cin_p), lambda co, n: (n, 0, 0)),
                  pl.BlockSpec((9, Cin_p, tco), lambda co, n: (0, 0, co)),
                  pl.BlockSpec((L, 1), lambda co, n: (0, 0))],
        out_specs=(pl.BlockSpec((L, tco), lambda co, n: (n, co)),
                   pl.BlockSpec((2, tco), lambda co, n: (0, co))),
        compiler_params=pltpu.CompilerParams(
            dimension_semantics=("parallel", "arbitrary")),
        cost_estimate=pl.CostEstimate(
            flops=int(2 * N * L * 9 * Cin_p * Cout_p),
            transcendentals=0,
            bytes_accessed=int(xf.size * 2 * (Cout_p // tco) + w9.size * 2
                               + N * L * Cout_p * 4)),
    )(xf, w9, mask)

    # strip the junk columns of the flattened layout -> (N*H*W, Cout_p)
    y = y_flat.reshape(N, L, Cout_p)[:, :H * Wp, :]
    y = y.reshape(N, H, Wp, Cout_p)[:, :, :W, :].reshape(N * H * W, Cout_p)
    return y, stats


def matmul_bn_stats(x, w):
    """Tiled (M, K) @ (K, Cout_p) bf16 matmul + BN sum/sumsq accumulation."""
    M, K = x.shape
    Cout_p = w.shape[-1]
    tm = _pick_tile(M, (512, 256, 128, 64, 32, 16, 8))
    tc = _pick_tile(Cout_p, (256, 128))
    grid = (Cout_p // tc, M // tm)
    return pl.pallas_call(
        _matmul_stats_kernel,
        out_shape=(jax.ShapeDtypeStruct((M, Cout_p), jnp.float32),
                   jax.ShapeDtypeStruct((2, Cout_p), jnp.float32)),
        grid=grid,
        in_specs=[pl.BlockSpec((tm, K), lambda co, m: (m, 0)),
                  pl.BlockSpec((K, tc), lambda co, m: (0, co))],
        out_specs=(pl.BlockSpec((tm, tc), lambda co, m: (m, co)),
                   pl.BlockSpec((2, tc), lambda co, m: (0, co))),
        compiler_params=pltpu.CompilerParams(
            dimension_semantics=("parallel", "arbitrary")),
        cost_estimate=pl.CostEstimate(
            flops=int(2 * M * K * Cout_p), transcendentals=0,
            bytes_accessed=int(x.size * 2 + w.size * 2 + M * Cout_p * 4)),
    )(x, w)


def bn_relu(y, scale, shift):
    M, C = y.shape
    tm = _pick_tile(M, (512, 256, 128, 64, 32, 16, 8))
    tc = _pick_tile(C, (256, 128))
    grid = (M // tm, C // tc)
    return pl.pallas_call(
        _bn_relu_kernel,
        out_shape=jax.ShapeDtypeStruct((M, C), jnp.float32),
        grid=grid,
        in_specs=[pl.BlockSpec((tm, tc), lambda i, j: (i, j)),
                  pl.BlockSpec((1, tc), lambda i, j: (0, j)),
                  pl.BlockSpec((1, tc), lambda i, j: (0, j))],
        out_specs=pl.BlockSpec((tm, tc), lambda i, j: (i, j)),
        compiler_params=pltpu.CompilerParams(
            dimension_semantics=("parallel", "parallel")),
    )(y, scale, shift)


def bn_add_relu(y, scale, shift, idm, id_scale, id_shift):
    M, C = y.shape
    tm = _pick_tile(M, (512, 256, 128, 64, 32, 16, 8))
    tc = _pick_tile(C, (256, 128))
    grid = (M // tm, C // tc)
    return pl.pallas_call(
        _bn_add_relu_kernel,
        out_shape=jax.ShapeDtypeStruct((M, C), jnp.float32),
        grid=grid,
        in_specs=[pl.BlockSpec((tm, tc), lambda i, j: (i, j)),
                  pl.BlockSpec((1, tc), lambda i, j: (0, j)),
                  pl.BlockSpec((1, tc), lambda i, j: (0, j)),
                  pl.BlockSpec((tm, tc), lambda i, j: (i, j)),
                  pl.BlockSpec((1, tc), lambda i, j: (0, j)),
                  pl.BlockSpec((1, tc), lambda i, j: (0, j))],
        out_specs=pl.BlockSpec((tm, tc), lambda i, j: (i, j)),
        compiler_params=pltpu.CompilerParams(
            dimension_semantics=("parallel", "parallel")),
    )(y, scale, shift, idm.astype(jnp.float32), id_scale, id_shift)


# ------------------------------ JAX glue ------------------------------------ #

def _stats_to_scale_shift(stats, count, gamma_p, beta_p):
    """Turn accumulated [sum, sumsq] into per-channel BN scale/shift (f32)."""
    mean = stats[0] / count
    var = jnp.maximum(stats[1] / count - mean * mean, 0.0)
    inv = jax.lax.rsqrt(var + EPS)
    scale = gamma_p * inv
    shift = beta_p - mean * scale
    return scale.reshape(1, -1), shift.reshape(1, -1)


def _prep_w3x3(w_oihw, cin_p, cout_p):
    cout, cin = w_oihw.shape[0], w_oihw.shape[1]
    w = jnp.transpose(w_oihw, (2, 3, 1, 0))               # (ky, kx, Cin, Cout)
    w = jnp.pad(w, ((0, 0), (0, 0), (0, cin_p - cin), (0, cout_p - cout)))
    return w.reshape(9, cin_p, cout_p).astype(jnp.bfloat16)


def _im2col_3x3(x_nhwc, stride):
    N, H, W, C = x_nhwc.shape
    xp = jnp.pad(x_nhwc, ((0, 0), (1, 1), (1, 1), (0, 0)))
    Ho = (H - 1) // stride + 1
    Wo = (W - 1) // stride + 1
    cols = []
    for dy in range(3):
        for dx in range(3):
            cols.append(xp[:, dy:dy + stride * (Ho - 1) + 1:stride,
                              dx:dx + stride * (Wo - 1) + 1:stride, :])
    return jnp.concatenate(cols, axis=-1).reshape(N * Ho * Wo, 9 * C)


# ---------------------------- residual block -------------------------------- #

def custom_residual_block(x_nchw, params, stride=1):
    """Forward of CustomResidualBlock (plain-Conv2d path, training-mode BN)."""
    N, Cin, H, W = x_nchw.shape
    Cout = params['w1'].shape[0]
    Cp_in = _round_up(Cin, LANE)
    Cp_out = _round_up(Cout, LANE)
    Ho = (H - 1) // stride + 1
    Wo = (W - 1) // stride + 1
    M = N * Ho * Wo

    x_nhwc = jnp.transpose(x_nchw, (0, 2, 3, 1)).astype(jnp.float32)
    x_cp = _pad_last(x_nhwc, Cp_in)                        # (N, H, W, Cp_in)

    g1 = _pad_last(params['g1'].astype(jnp.float32), Cp_out)
    b1 = _pad_last(params['b1'].astype(jnp.float32), Cp_out)
    g2 = _pad_last(params['g2'].astype(jnp.float32), Cp_out)
    b2 = _pad_last(params['b2'].astype(jnp.float32), Cp_out)

    # ---- conv1 + bn1 batch statistics (fused) ----
    if stride == 1:
        w1 = _prep_w3x3(params['w1'], Cp_in, Cp_out)
        y1, st1 = conv3x3_bn_stats(x_cp, w1)
    else:
        # TODO(synk): strided 3x3 conv uses a wrapper-level strided im2col.
        col = _im2col_3x3(x_nhwc, stride)                  # (M, 9*Cin)
        w1m = jnp.transpose(params['w1'], (2, 3, 1, 0)).reshape(9 * Cin, Cout)
        w1m = _pad_last(w1m, Cp_out)
        y1, st1 = matmul_bn_stats(col.astype(jnp.bfloat16),
                                  w1m.astype(jnp.bfloat16))
    s1, sh1 = _stats_to_scale_shift(st1, M, g1, b1)
    out1 = bn_relu(y1, s1, sh1)                            # (M, Cp_out) f32

    # ---- conv2 (stride 1) + bn2 batch statistics (fused) ----
    w2 = _prep_w3x3(params['w2'], Cp_out, Cp_out)
    y2, st2 = conv3x3_bn_stats(out1.reshape(N, Ho, Wo, Cp_out), w2)
    s2, sh2 = _stats_to_scale_shift(st2, M, g2, b2)

    # ---- identity branch ----
    if 'wd' in params:
        gd = _pad_last(params['gd'].astype(jnp.float32), Cp_out)
        bd = _pad_last(params['bd'].astype(jnp.float32), Cp_out)
        xs = x_nhwc[:, ::stride, ::stride, :].reshape(M, Cin)
        wdm = _pad_last(params['wd'][:, :, 0, 0].T, Cp_out)      # (Cin, Cp_out)
        idm, std = matmul_bn_stats(xs.astype(jnp.bfloat16),
                                   wdm.astype(jnp.bfloat16))
        si, shi = _stats_to_scale_shift(std, M, gd, bd)
    else:
        assert stride == 1 and Cin == Cout, (
            "identity path requires stride == 1 and in_channels == out_channels")
        idm = x_cp.reshape(M, Cp_in)
        si = jnp.ones((1, Cp_out), jnp.float32)
        shi = jnp.zeros((1, Cp_out), jnp.float32)

    # ---- bn2 + (optionally BN'd) identity + ReLU, one fused kernel ----
    out2 = bn_add_relu(y2, s2, sh2, idm, si, shi)          # (M, Cp_out)
    out = out2.reshape(N, Ho, Wo, Cp_out)[..., :Cout]
    return jnp.transpose(out, (0, 3, 1, 2))                # -> NCHW


# --------------------------- pure-JAX reference ------------------------------ #

def _ref_forward(x, params, stride, model_mxu_bf16=True):
    """Reference forward.  model_mxu_bf16 rounds each conv's operands to bf16
    (the precision the Pallas kernels feed the MXU) so the comparison isolates
    kernel-structure errors from expected mixed-precision rounding."""
    if model_mxu_bf16:
        cast = lambda a: a.astype(jnp.bfloat16).astype(jnp.float32)
    else:
        cast = lambda a: a

    def conv(x, w, s, p):
        return jax.lax.conv_general_dilated(
            cast(x), cast(w), (s, s), [(p, p), (p, p)],
            dimension_numbers=('NCHW', 'OIHW', 'NCHW'),
            precision=jax.lax.Precision.HIGHEST,
            preferred_element_type=jnp.float32)

    def bn(x, g, b):
        mean = jnp.mean(x, axis=(0, 2, 3), keepdims=True)
        var = jnp.mean(jnp.square(x - mean), axis=(0, 2, 3), keepdims=True)
        return ((x - mean) * jax.lax.rsqrt(var + EPS)
                * g.reshape(1, -1, 1, 1) + b.reshape(1, -1, 1, 1))

    out = conv(x, params['w1'], stride, 1)
    out = jnp.maximum(bn(out, params['g1'], params['b1']), 0.0)
    out = conv(out, params['w2'], 1, 1)
    out = bn(out, params['g2'], params['b2'])
    identity = x
    if 'wd' in params:
        identity = bn(conv(x, params['wd'], stride, 0),
                      params['gd'], params['bd'])
    return jnp.maximum(out + identity, 0.0)


# ----------------------------------- main ------------------------------------ #

if __name__ == "__main__":
    key = jax.random.PRNGKey(0)

    def kaiming_fan_out(k, shape):
        # nn.init.kaiming_normal_(mode='fan_out', nonlinearity='relu')
        fan_out = shape[0] * shape[2] * shape[3]
        return jax.random.normal(k, shape, jnp.float32) * jnp.sqrt(2.0 / fan_out)

    def make_params(k, cin, cout, stride):
        k1, k2, k3 = jax.random.split(k, 3)
        p = {'w1': kaiming_fan_out(k1, (cout, cin, 3, 3)),
             'g1': jnp.ones((cout,), jnp.float32),
             'b1': jnp.zeros((cout,), jnp.float32),
             'w2': kaiming_fan_out(k2, (cout, cout, 3, 3)),
             'g2': jnp.ones((cout,), jnp.float32),
             'b2': jnp.zeros((cout,), jnp.float32)}
        if stride != 1 or cin != cout:
            p['wd'] = kaiming_fan_out(k3, (cout, cin, 1, 1))
            p['gd'] = jnp.ones((cout,), jnp.float32)
            p['bd'] = jnp.zeros((cout,), jnp.float32)
        return p

    def check(x, params, stride):
        fwd = jax.jit(functools.partial(custom_residual_block, stride=stride))
        out = jax.block_until_ready(fwd(x, params))
        ref = _ref_forward(x, params, stride)
        assert out.shape == ref.shape, (out.shape, ref.shape)
        max_err = float(jnp.max(jnp.abs(out - ref)))
        mean_err = float(jnp.mean(jnp.abs(out - ref)))
        # bf16 MXU operands -> allow small mixed-precision rounding differences.
        assert max_err < 2e-2 and mean_err < 1e-3, (max_err, mean_err)

    kp1, kp2, kx1, kx2 = jax.random.split(key, 4)

    # config 1 (spec default): stride=1, Cin==Cout -> plain identity path
    N, Cin, H, W = 2, 4, 16, 16
    x1 = jax.random.normal(kx1, (N, Cin, H, W), jnp.float32)
    check(x1, make_params(kp1, Cin, 4, 1), stride=1)

    # config 2: stride=2, Cin!=Cout -> downsample (1x1 conv + BN) identity path
    x2 = jax.random.normal(kx2, (N, Cin, H, W), jnp.float32)
    check(x2, make_params(kp2, Cin, 8, 2), stride=2)

    print("KERNEL_OK")
</pallas_src>

<mosaic_0001>
module attributes {stable_mosaic.version = 11 : i64} {
  func.func @_conv3x3_stats_kernel(%arg0: i32, %arg1: i32, %arg2: memref<1x340x128xbf16, #tpu.memory_space<vmem>>, %arg3: memref<9x128x128xbf16, #tpu.memory_space<vmem>>, %arg4: memref<288x1xf32, #tpu.memory_space<vmem>>, %arg5: memref<288x128xf32, #tpu.memory_space<vmem>>, %arg6: memref<2x128xf32, #tpu.memory_space<vmem>>) attributes {dimension_semantics = [#tpu.dimension_semantics<parallel>, #tpu.dimension_semantics<arbitrary>], iteration_bounds = array<i64: 1, 2>, scalar_prefetch = 0 : i64, scratch_operands = 0 : i64, tpu.core_type = #tpu.core_type<tc>, window_params = [{transform_indices = @transform_0, window_bounds = array<i64: 1, 340, 128>}, {transform_indices = @transform_1, window_bounds = array<i64: 9, 128, 128>}, {pipeline_mode = #tpu.pipeline_mode<synchronous>, transform_indices = @transform_2, window_bounds = array<i64: 288, 1>}, {transform_indices = @transform_3, window_bounds = array<i64: 288, 128>}, {transform_indices = @transform_4, window_bounds = array<i64: 2, 128>}]} {
    %c0_i32 = arith.constant 0 : i32
    %0 = arith.cmpi eq, %arg1, %c0_i32 : i32
    %1 = arith.extui %0 : i1 to i32
    %c0_i32_0 = arith.constant 0 : i32
    %2 = arith.cmpi ne, %1, %c0_i32_0 : i32
    scf.if %2 {
      %cst_97 = arith.constant 0.000000e+00 : f32
      %90 = vector.broadcast %cst_97 : f32 to vector<2x128xf32>
      %c0_98 = arith.constant 0 : index
      %c0_99 = arith.constant 0 : index
      %91 = vector.load %arg6[%c0_98, %c0_99] : memref<2x128xf32, #tpu.memory_space<vmem>>, vector<2x128xf32>
      tpu.vector_store %arg6[%c0_98, %c0_99], %90 {strides = array<i32>} : memref<2x128xf32, #tpu.memory_space<vmem>>, vector<2x128xf32>,
    } else {
    }
    %cst = arith.constant 0.000000e+00 : f32
    %3 = vector.broadcast %cst : f32 to vector<288x128xf32>
    %c0 = arith.constant 0 : index
    %c0_1 = arith.constant 0 : index
    %4 = vector.load %arg5[%c0, %c0_1] : memref<288x128xf32, #tpu.memory_space<vmem>>, vector<288x128xf32>
    tpu.vector_store %arg5[%c0, %c0_1], %3 {strides = array<i32>} : memref<288x128xf32, #tpu.memory_space<vmem>>, vector<288x128xf32>,
    %c0_2 = arith.constant 0 : index
    %c0_3 = arith.constant 0 : index
    %5 = vector.load %arg5[%c0_2, %c0_3] : memref<288x128xf32, #tpu.memory_space<vmem>>, vector<288x128xf32>
    %c0_4 = arith.constant 0 : index
    %c0_5 = arith.constant 0 : index
    %c0_6 = arith.constant 0 : index
    %6 = vector.load %arg2[%c0_4, %c0_5, %c0_6] : memref<1x340x128xbf16, #tpu.memory_space<vmem>>, vector<1x288x128xbf16>
    %7 = vector.shape_cast %6 : vector<1x288x128xbf16> to vector<288x128xbf16>
    %c0_7 = arith.constant 0 : index
    %c0_8 = arith.constant 0 : index
    %c0_9 = arith.constant 0 : index
    %8 = vector.load %arg3[%c0_7, %c0_8, %c0_9] : memref<9x128x128xbf16, #tpu.memory_space<vmem>>, vector<1x128x128xbf16>
    %9 = vector.shape_cast %8 : vector<1x128x128xbf16> to vector<128x128xbf16>
    %cst_10 = arith.constant dense<0.000000e+00> : vector<288x128xf32>
    %10 = tpu.matmul %7, %9, %cst_10 {dimension_numbers = #tpu.dot_dimension_numbers<[1], [0], [0], [1], [0, 0, 1, 1], [], []>} : vector<288x128xbf16>, vector<128x128xbf16>, vector<288x128xf32> -> vector<288x128xf32>
    %11 = arith.addf %5, %10 : vector<288x128xf32>
    %c0_11 = arith.constant 0 : index
    %c0_12 = arith.constant 0 : index
    %12 = vector.load %arg5[%c0_11, %c0_12] : memref<288x128xf32, #tpu.memory_space<vmem>>, vector<288x128xf32>
    tpu.vector_store %arg5[%c0_11, %c0_12], %11 {strides = array<i32>} : memref<288x128xf32, #tpu.memory_space<vmem>>, vector<288x128xf32>,
    %c0_13 = arith.constant 0 : index
    %c0_14 = arith.constant 0 : index
    %13 = vector.load %arg5[%c0_13, %c0_14] : memref<288x128xf32, #tpu.memory_space<vmem>>, vector<288x128xf32>
    %c0_15 = arith.constant 0 : index
    %c1 = arith.constant 1 : index
    %c0_16 = arith.constant 0 : index
    %14 = vector.load %arg2[%c0_15, %c1, %c0_16] : memref<1x340x128xbf16, #tpu.memory_space<vmem>>, vector<1x288x128xbf16>
    %15 = vector.shape_cast %14 : vector<1x288x128xbf16> to vector<288x128xbf16>
    %c1_17 = arith.constant 1 : index
    %c0_18 = arith.constant 0 : index
    %c0_19 = arith.constant 0 : index
    %16 = vector.load %arg3[%c1_17, %c0_18, %c0_19] : memref<9x128x128xbf16, #tpu.memory_space<vmem>>, vector<1x128x128xbf16>
    %17 = vector.shape_cast %16 : vector<1x128x128xbf16> to vector<128x128xbf16>
    %cst_20 = arith.constant dense<0.000000e+00> : vector<288x128xf32>
    %18 = tpu.matmul %15, %17, %cst_20 {dimension_numbers = #tpu.dot_dimension_numbers<[1], [0], [0], [1], [0, 0, 1, 1], [], []>} : vector<288x128xbf16>, vector<128x128xbf16>, vector<288x128xf32> -> vector<288x128xf32>
    %19 = arith.addf %13, %18 : vector<288x128xf32>
    %c0_21 = arith.constant 0 : index
    %c0_22 = arith.constant 0 : index
    %20 = vector.load %arg5[%c0_21, %c0_22] : memref<288x128xf32, #tpu.memory_space<vmem>>, vector<288x128xf32>
    tpu.vector_store %arg5[%c0_21, %c0_22], %19 {strides = array<i32>} : memref<288x128xf32, #tpu.memory_space<vmem>>, vector<288x128xf32>,
    %c0_23 = arith.constant 0 : index
    %c0_24 = arith.constant 0 : index
    %21 = vector.load %arg5[%c0_23, %c0_24] : memref<288x128xf32, #tpu.memory_space<vmem>>, vector<288x128xf32>
    %c0_25 = arith.constant 0 : index
    %c2 = arith.constant 2 : index
    %c0_26 = arith.constant 0 : index
    %22 = vector.load %arg2[%c0_25, %c2, %c0_26] : memref<1x340x128xbf16, #tpu.memory_space<vmem>>, vector<1x288x128xbf16>
    %23 = vector.shape_cast %22 : vector<1x288x128xbf16> to vector<288x128xbf16>
    %c2_27 = arith.constant 2 : index
    %c0_28 = arith.constant 0 : index
    %c0_29 = arith.constant 0 : index
    %24 = vector.load %arg3[%c2_27, %c0_28, %c0_29] : memref<9x128x128xbf16, #tpu.memory_space<vmem>>, vector<1x128x128xbf16>
    %25 = vector.shape_cast %24 : vector<1x128x128xbf16> to vector<128x128xbf16>
    %cst_30 = arith.constant dense<0.000000e+00> : vector<288x128xf32>
    %26 = tpu.matmul %23, %25, %cst_30 {dimension_numbers = #tpu.dot_dimension_numbers<[1], [0], [0], [1], [0, 0, 1, 1], [], []>} : vector<288x128xbf16>, vector<128x128xbf16>, vector<288x128xf32> -> vector<288x128xf32>
    %27 = arith.addf %21, %26 : vector<288x128xf32>
    %c0_31 = arith.constant 0 : index
    %c0_32 = arith.constant 0 : index
    %28 = vector.load %arg5[%c0_31, %c0_32] : memref<288x128xf32, #tpu.memory_space<vmem>>, vector<288x128xf32>
    tpu.vector_store %arg5[%c0_31, %c0_32], %27 {strides = array<i32>} : memref<288x128xf32, #tpu.memory_space<vmem>>, vector<288x128xf32>,
    %c0_33 = arith.constant 0 : index
    %c0_34 = arith.constant 0 : index
    %29 = vector.load %arg5[%c0_33, %c0_34] : memref<288x128xf32, #tpu.memory_space<vmem>>, vector<288x128xf32>
    %c0_35 = arith.constant 0 : index
    %c18 = arith.constant 18 : index
    %c0_36 = arith.constant 0 : index
    %30 = vector.load %arg2[%c0_35, %c18, %c0_36] : memref<1x340x128xbf16, #tpu.memory_space<vmem>>, vector<1x288x128xbf16>
    %31 = vector.shape_cast %30 : vector<1x288x128xbf16> to vector<288x128xbf16>
    %c3 = arith.constant 3 : index
    %c0_37 = arith.constant 0 : index
    %c0_38 = arith.constant 0 : index
    %32 = vector.load %arg3[%c3, %c0_37, %c0_38] : memref<9x128x128xbf16, #tpu.memory_space<vmem>>, vector<1x128x128xbf16>
    %33 = vector.shape_cast %32 : vector<1x128x128xbf16> to vector<128x128xbf16>
    %cst_39 = arith.constant dense<0.000000e+00> : vector<288x128xf32>
    %34 = tpu.matmul %31, %33, %cst_39 {dimension_numbers = #tpu.dot_dimension_numbers<[1], [0], [0], [1], [0, 0, 1, 1], [], []>} : vector<288x128xbf16>, vector<128x128xbf16>, vector<288x128xf32> -> vector<288x128xf32>
    %35 = arith.addf %29, %34 : vector<288x128xf32>
    %c0_40 = arith.constant 0 : index
    %c0_41 = arith.constant 0 : index
    %36 = vector.load %arg5[%c0_40, %c0_41] : memref<288x128xf32, #tpu.memory_space<vmem>>, vector<288x128xf32>
    tpu.vector_store %arg5[%c0_40, %c0_41], %35 {strides = array<i32>} : memref<288x128xf32, #tpu.memory_space<vmem>>, vector<288x128xf32>,
    %c0_42 = arith.constant 0 : index
    %c0_43 = arith.constant 0 : index
    %37 = vector.load %arg5[%c0_42, %c0_43] : memref<288x128xf32, #tpu.memory_space<vmem>>, vector<288x128xf32>
    %c0_44 = arith.constant 0 : index
    %c19 = arith.constant 19 : index
    %c0_45 = arith.constant 0 : index
    %38 = vector.load %arg2[%c0_44, %c19, %c0_45] : memref<1x340x128xbf16, #tpu.memory_space<vmem>>, vector<1x288x128xbf16>
    %39 = vector.shape_cast %38 : vector<1x288x128xbf16> to vector<288x128xbf16>
    %c4 = arith.constant 4 : index
    %c0_46 = arith.constant 0 : index
    %c0_47 = arith.constant 0 : index
    %40 = vector.load %arg3[%c4, %c0_46, %c0_47] : memref<9x128x128xbf16, #tpu.memory_space<vmem>>, vector<1x128x128xbf16>
    %41 = vector.shape_cast %40 : vector<1x128x128xbf16> to vector<128x128xbf16>
    %cst_48 = arith.constant dense<0.000000e+00> : vector<288x128xf32>
    %42 = tpu.matmul %39, %41, %cst_48 {dimension_numbers = #tpu.dot_dimension_numbers<[1], [0], [0], [1], [0, 0, 1, 1], [], []>} : vector<288x128xbf16>, vector<128x128xbf16>, vector<288x128xf32> -> vector<288x128xf32>
    %43 = arith.addf %37, %42 : vector<288x128xf32>
    %c0_49 = arith.constant 0 : index
    %c0_50 = arith.constant 0 : index
    %44 = vector.load %arg5[%c0_49, %c0_50] : memref<288x128xf32, #tpu.memory_space<vmem>>, vector<288x128xf32>
    tpu.vector_store %arg5[%c0_49, %c0_50], %43 {strides = array<i32>} : memref<288x128xf32, #tpu.memory_space<vmem>>, vector<288x128xf32>,
    %c0_51 = arith.constant 0 : index
    %c0_52 = arith.constant 0 : index
    %45 = vector.load %arg5[%c0_51, %c0_52] : memref<288x128xf32, #tpu.memory_space<vmem>>, vector<288x128xf32>
    %c0_53 = arith.constant 0 : index
    %c20 = arith.constant 20 : index
    %c0_54 = arith.constant 0 : index
    %46 = vector.load %arg2[%c0_53, %c20, %c0_54] : memref<1x340x128xbf16, #tpu.memory_space<vmem>>, vector<1x288x128xbf16>
    %47 = vector.shape_cast %46 : vector<1x288x128xbf16> to vector<288x128xbf16>
    %c5 = arith.constant 5 : index
    %c0_55 = arith.constant 0 : index
    %c0_56 = arith.constant 0 : index
    %48 = vector.load %arg3[%c5, %c0_55, %c0_56] : memref<9x128x128xbf16, #tpu.memory_space<vmem>>, vector<1x128x128xbf16>
    %49 = vector.shape_cast %48 : vector<1x128x128xbf16> to vector<128x128xbf16>
    %cst_57 = arith.constant dense<0.000000e+00> : vector<288x128xf32>
    %50 = tpu.matmul %47, %49, %cst_57 {dimension_numbers = #tpu.dot_dimension_numbers<[1], [0], [0], [1], [0, 0, 1, 1], [], []>} : vector<288x128xbf16>, vector<128x128xbf16>, vector<288x128xf32> -> vector<288x128xf32>
    %51 = arith.addf %45, %50 : vector<288x128xf32>
    %c0_58 = arith.constant 0 : index
    %c0_59 = arith.constant 0 : index
    %52 = vector.load %arg5[%c0_58, %c0_59] : memref<288x128xf32, #tpu.memory_space<vmem>>, vector<288x128xf32>
    tpu.vector_store %arg5[%c0_58, %c0_59], %51 {strides = array<i32>} : memref<288x128xf32, #tpu.memory_space<vmem>>, vector<288x128xf32>,
    %c0_60 = arith.constant 0 : index
    %c0_61 = arith.constant 0 : index
    %53 = vector.load %arg5[%c0_60, %c0_61] : memref<288x128xf32, #tpu.memory_space<vmem>>, vector<288x128xf32>
    %c0_62 = arith.constant 0 : index
    %c36 = arith.constant 36 : index
    %c0_63 = arith.constant 0 : index
    %54 = vector.load %arg2[%c0_62, %c36, %c0_63] : memref<1x340x128xbf16, #tpu.memory_space<vmem>>, vector<1x288x128xbf16>
    %55 = vector.shape_cast %54 : vector<1x288x128xbf16> to vector<288x128xbf16>
    %c6 = arith.constant 6 : index
    %c0_64 = arith.constant 0 : index
    %c0_65 = arith.constant 0 : index
    %56 = vector.load %arg3[%c6, %c0_64, %c0_65] : memref<9x128x128xbf16, #tpu.memory_space<vmem>>, vector<1x128x128xbf16>
    %57 = vector.shape_cast %56 : vector<1x128x128xbf16> to vector<128x128xbf16>
    %cst_66 = arith.constant dense<0.000000e+00> : vector<288x128xf32>
    %58 = tpu.matmul %55, %57, %cst_66 {dimension_numbers = #tpu.dot_dimension_numbers<[1], [0], [0], [1], [0, 0, 1, 1], [], []>} : vector<288x128xbf16>, vector<128x128xbf16>, vector<288x128xf32> -> vector<288x128xf32>
    %59 = arith.addf %53, %58 : vector<288x128xf32>
    %c0_67 = arith.constant 0 : index
    %c0_68 = arith.constant 0 : index
    %60 = vector.load %arg5[%c0_67, %c0_68] : memref<288x128xf32, #tpu.memory_space<vmem>>, vector<288x128xf32>
    tpu.vector_store %arg5[%c0_67, %c0_68], %59 {strides = array<i32>} : memref<288x128xf32, #tpu.memory_space<vmem>>, vector<288x128xf32>,
    %c0_69 = arith.constant 0 : index
    %c0_70 = arith.constant 0 : index
    %61 = vector.load %arg5[%c0_69, %c0_70] : memref<288x128xf32, #tpu.memory_space<vmem>>, vector<288x128xf32>
    %c0_71 = arith.constant 0 : index
    %c37 = arith.constant 37 : index
    %c0_72 = arith.constant 0 : index
    %62 = vector.load %arg2[%c0_71, %c37, %c0_72] : memref<1x340x128xbf16, #tpu.memory_space<vmem>>, vector<1x288x128xbf16>
    %63 = vector.shape_cast %62 : vector<1x288x128xbf16> to vector<288x128xbf16>
    %c7 = arith.constant 7 : index
    %c0_73 = arith.constant 0 : index
    %c0_74 = arith.constant 0 : index
    %64 = vector.load %arg3[%c7, %c0_73, %c0_74] : memref<9x128x128xbf16, #tpu.memory_space<vmem>>, vector<1x128x128xbf16>
    %65 = vector.shape_cast %64 : vector<1x128x128xbf16> to vector<128x128xbf16>
    %cst_75 = arith.constant dense<0.000000e+00> : vector<288x128xf32>
    %66 = tpu.matmul %63, %65, %cst_75 {dimension_numbers = #tpu.dot_dimension_numbers<[1], [0], [0], [1], [0, 0, 1, 1], [], []>} : vector<288x128xbf16>, vector<128x128xbf16>, vector<288x128xf32> -> vector<288x128xf32>
    %67 = arith.addf %61, %66 : vector<288x128xf32>
    %c0_76 = arith.constant 0 : index
    %c0_77 = arith.constant 0 : index
    %68 = vector.load %arg5[%c0_76, %c0_77] : memref<288x128xf32, #tpu.memory_space<vmem>>, vector<288x128xf32>
    tpu.vector_store %arg5[%c0_76, %c0_77], %67 {strides = array<i32>} : memref<288x128xf32, #tpu.memory_space<vmem>>, vector<288x128xf32>,
    %c0_78 = arith.constant 0 : index
    %c0_79 = arith.constant 0 : index
    %69 = vector.load %arg5[%c0_78, %c0_79] : memref<288x128xf32, #tpu.memory_space<vmem>>, vector<288x128xf32>
    %c0_80 = arith.constant 0 : index
    %c38 = arith.constant 38 : index
    %c0_81 = arith.constant 0 : index
    %70 = vector.load %arg2[%c0_80, %c38, %c0_81] : memref<1x340x128xbf16, #tpu.memory_space<vmem>>, vector<1x288x128xbf16>
    %71 = vector.shape_cast %70 : vector<1x288x128xbf16> to vector<288x128xbf16>
    %c8 = arith.constant 8 : index
    %c0_82 = arith.constant 0 : index
    %c0_83 = arith.constant 0 : index
    %72 = vector.load %arg3[%c8, %c0_82, %c0_83] : memref<9x128x128xbf16, #tpu.memory_space<vmem>>, vector<1x128x128xbf16>
    %73 = vector.shape_cast %72 : vector<1x128x128xbf16> to vector<128x128xbf16>
    %cst_84 = arith.constant dense<0.000000e+00> : vector<288x128xf32>
    %74 = tpu.matmul %71, %73, %cst_84 {dimension_numbers = #tpu.dot_dimension_numbers<[1], [0], [0], [1], [0, 0, 1, 1], [], []>} : vector<288x128xbf16>, vector<128x128xbf16>, vector<288x128xf32> -> vector<288x128xf32>
    %75 = arith.addf %69, %74 : vector<288x128xf32>
    %c0_85 = arith.constant 0 : index
    %c0_86 = arith.constant 0 : index
    %76 = vector.load %arg5[%c0_85, %c0_86] : memref<288x128xf32, #tpu.memory_space<vmem>>, vector<288x128xf32>
    tpu.vector_store %arg5[%c0_85, %c0_86], %75 {strides = array<i32>} : memref<288x128xf32, #tpu.memory_space<vmem>>, vector<288x128xf32>,
    %c0_87 = arith.constant 0 : index
    %c0_88 = arith.constant 0 : index
    %77 = vector.load %arg5[%c0_87, %c0_88] : memref<288x128xf32, #tpu.memory_space<vmem>>, vector<288x128xf32>
    %c0_89 = arith.constant 0 : index
    %c0_90 = arith.constant 0 : index
    %78 = vector.load %arg4[%c0_89, %c0_90] : memref<288x1xf32, #tpu.memory_space<vmem>>, vector<288x1xf32>
    %79 = vector.broadcast %78 : vector<288x1xf32> to vector<288x128xf32>
    %80 = arith.mulf %77, %79 : vector<288x128xf32>
    %c0_91 = arith.constant 0 : index
    %c0_92 = arith.constant 0 : index
    %81 = vector.load %arg6[%c0_91, %c0_92] : memref<2x128xf32, #tpu.memory_space<vmem>>, vector<2x128xf32>
    %cst_93 = arith.constant dense<0.000000e+00> : vector<128xf32>
    %82 = vector.multi_reduction <add>, %80, %cst_93 [0] : vector<288x128xf32> to vector<128xf32>
    %83 = vector.shape_cast %82 : vector<128xf32> to vector<1x128xf32>
    %84 = arith.mulf %80, %80 : vector<288x128xf32>
    %cst_94 = arith.constant dense<0.000000e+00> : vector<128xf32>
    %85 = vector.multi_reduction <add>, %84, %cst_94 [0] : vector<288x128xf32> to vector<128xf32>
    %86 = vector.shape_cast %85 : vector<128xf32> to vector<1x128xf32>
    %87 = tpu.concatenate %83, %86 in 0 : vector<1x128xf32>, vector<1x128xf32> -> vector<2x128xf32>
    %88 = arith.addf %81, %87 : vector<2x128xf32>
    %c0_95 = arith.constant 0 : index
    %c0_96 = arith.constant 0 : index
    %89 = vector.load %arg6[%c0_95, %c0_96] : memref<2x128xf32, #tpu.memory_space<vmem>>, vector<2x128xf32>
    tpu.vector_store %arg6[%c0_95, %c0_96], %88 {strides = array<i32>} : memref<2x128xf32, #tpu.memory_space<vmem>>, vector<2x128xf32>,
    return
  }
  func.func @transform_0(%arg0: i32, %arg1: i32) -> (i32, i32, i32) {
    %c0_i32 = arith.constant 0 : i32
    %c0_i32_0 = arith.constant 0 : i32
    %c0_i32_1 = arith.constant 0 : i32
    return %arg1, %c0_i32, %c0_i32_0 : i32, i32, i32
  }
  func.func @transform_1(%arg0: i32, %arg1: i32) -> (i32, i32, i32) {
    %c0_i32 = arith.constant 0 : i32
    %c0_i32_0 = arith.constant 0 : i32
    %c0_i32_1 = arith.constant 0 : i32
    return %c0_i32, %c0_i32_0, %arg0 : i32, i32, i32
  }
  func.func @transform_2(%arg0: i32, %arg1: i32) -> (i32, i32) {
    %c0_i32 = arith.constant 0 : i32
    %c0_i32_0 = arith.constant 0 : i32
    %c0_i32_1 = arith.constant 0 : i32
    return %c0_i32, %c0_i32_0 : i32, i32
  }
  func.func @transform_3(%arg0: i32, %arg1: i32) -> (i32, i32) {
    %c0_i32 = arith.constant 0 : i32
    return %arg1, %arg0 : i32, i32
  }
  func.func @transform_4(%arg0: i32, %arg1: i32) -> (i32, i32) {
    %c0_i32 = arith.constant 0 : i32
    %c0_i32_0 = arith.constant 0 : i32
    return %c0_i32, %arg0 : i32, i32
  }
}

module attributes {stable_mosaic.version = 11 : i64} {
  func.func @_bn_relu_kernel(%arg0: i32, %arg1: i32, %arg2: memref<512x128xf32, #tpu.memory_space<vmem>>, %arg3: memref<1x128xf32, #tpu.memory_space<vmem>>, %arg4: memref<1x128xf32, #tpu.memory_space<vmem>>, %arg5: memref<512x128xf32, #tpu.memory_space<vmem>>) attributes {dimension_semantics = [#tpu.dimension_semantics<parallel>, #tpu.dimension_semantics<parallel>], iteration_bounds = array<i64: 1, 1>, scalar_prefetch = 0 : i64, scratch_operands = 0 : i64, tpu.core_type = #tpu.core_type<tc>, window_params = [{transform_indices = @transform_0, window_bounds = array<i64: 512, 128>}, {transform_indices = @transform_1, window_bounds = array<i64: 1, 128>}, {transform_indices = @transform_2, window_bounds = array<i64: 1, 128>}, {transform_indices = @transform_3, window_bounds = array<i64: 512, 128>}]} {
    %c0 = arith.constant 0 : index
    %c0_0 = arith.constant 0 : index
    %0 = vector.load %arg2[%c0, %c0_0] : memref<512x128xf32, #tpu.memory_space<vmem>>, vector<512x128xf32>
    %c0_1 = arith.constant 0 : index
    %c0_2 = arith.constant 0 : index
    %1 = vector.load %arg3[%c0_1, %c0_2] : memref<1x128xf32, #tpu.memory_space<vmem>>, vector<1x128xf32>
    %2 = vector.broadcast %1 : vector<1x128xf32> to vector<512x128xf32>
    %3 = arith.mulf %0, %2 : vector<512x128xf32>
    %c0_3 = arith.constant 0 : index
    %c0_4 = arith.constant 0 : index
    %4 = vector.load %arg4[%c0_3, %c0_4] : memref<1x128xf32, #tpu.memory_space<vmem>>, vector<1x128xf32>
    %5 = vector.broadcast %4 : vector<1x128xf32> to vector<512x128xf32>
    %6 = arith.addf %3, %5 : vector<512x128xf32>
    %cst = arith.constant 0.000000e+00 : f32
    %7 = vector.broadcast %cst : f32 to vector<512x128xf32>
    %8 = arith.maximumf %6, %7 : vector<512x128xf32>
    %c0_5 = arith.constant 0 : index
    %c0_6 = arith.constant 0 : index
    %9 = vector.load %arg5[%c0_5, %c0_6] : memref<512x128xf32, #tpu.memory_space<vmem>>, vector<512x128xf32>
    tpu.vector_store %arg5[%c0_5, %c0_6], %8 {strides = array<i32>} : memref<512x128xf32, #tpu.memory_space<vmem>>, vector<512x128xf32>,
    return
  }
  func.func @transform_0(%arg0: i32, %arg1: i32) -> (i32, i32) {
    %c0_i32 = arith.constant 0 : i32
    return %arg0, %arg1 : i32, i32
  }
  func.func @transform_1(%arg0: i32, %arg1: i32) -> (i32, i32) {
    %c0_i32 = arith.constant 0 : i32
    %c0_i32_0 = arith.constant 0 : i32
    return %c0_i32, %arg1 : i32, i32
  }
  func.func @transform_2(%arg0: i32, %arg1: i32) -> (i32, i32) {
    %c0_i32 = arith.constant 0 : i32
    %c0_i32_0 = arith.constant 0 : i32
    return %c0_i32, %arg1 : i32, i32
  }
  func.func @transform_3(%arg0: i32, %arg1: i32) -> (i32, i32) {
    %c0_i32 = arith.constant 0 : i32
    return %arg0, %arg1 : i32, i32
  }
}

module attributes {stable_mosaic.version = 11 : i64} {
  func.func @_bn_add_relu_kernel(%arg0: i32, %arg1: i32, %arg2: memref<512x128xf32, #tpu.memory_space<vmem>>, %arg3: memref<1x128xf32, #tpu.memory_space<vmem>>, %arg4: memref<1x128xf32, #tpu.memory_space<vmem>>, %arg5: memref<512x128xf32, #tpu.memory_space<vmem>>, %arg6: memref<1x128xf32, #tpu.memory_space<vmem>>, %arg7: memref<1x128xf32, #tpu.memory_space<vmem>>, %arg8: memref<512x128xf32, #tpu.memory_space<vmem>>) attributes {dimension_semantics = [#tpu.dimension_semantics<parallel>, #tpu.dimension_semantics<parallel>], iteration_bounds = array<i64: 1, 1>, scalar_prefetch = 0 : i64, scratch_operands = 0 : i64, tpu.core_type = #tpu.core_type<tc>, window_params = [{transform_indices = @transform_0, window_bounds = array<i64: 512, 128>}, {transform_indices = @transform_1, window_bounds = array<i64: 1, 128>}, {transform_indices = @transform_2, window_bounds = array<i64: 1, 128>}, {transform_indices = @transform_3, window_bounds = array<i64: 512, 128>}, {transform_indices = @transform_4, window_bounds = array<i64: 1, 128>}, {transform_indices = @transform_5, window_bounds = array<i64: 1, 128>}, {transform_indices = @transform_6, window_bounds = array<i64: 512, 128>}]} {
    %c0 = arith.constant 0 : index
    %c0_0 = arith.constant 0 : index
    %0 = vector.load %arg2[%c0, %c0_0] : memref<512x128xf32, #tpu.memory_space<vmem>>, vector<512x128xf32>
    %c0_1 = arith.constant 0 : index
    %c0_2 = arith.constant 0 : index
    %1 = vector.load %arg3[%c0_1, %c0_2] : memref<1x128xf32, #tpu.memory_space<vmem>>, vector<1x128xf32>
    %2 = vector.broadcast %1 : vector<1x128xf32> to vector<512x128xf32>
    %3 = arith.mulf %0, %2 : vector<512x128xf32>
    %c0_3 = arith.constant 0 : index
    %c0_4 = arith.constant 0 : index
    %4 = vector.load %arg4[%c0_3, %c0_4] : memref<1x128xf32, #tpu.memory_space<vmem>>, vector<1x128xf32>
    %5 = vector.broadcast %4 : vector<1x128xf32> to vector<512x128xf32>
    %6 = arith.addf %3, %5 : vector<512x128xf32>
    %c0_5 = arith.constant 0 : index
    %c0_6 = arith.constant 0 : index
    %7 = vector.load %arg5[%c0_5, %c0_6] : memref<512x128xf32, #tpu.memory_space<vmem>>, vector<512x128xf32>
    %c0_7 = arith.constant 0 : index
    %c0_8 = arith.constant 0 : index
    %8 = vector.load %arg6[%c0_7, %c0_8] : memref<1x128xf32, #tpu.memory_space<vmem>>, vector<1x128xf32>
    %9 = vector.broadcast %8 : vector<1x128xf32> to vector<512x128xf32>
    %10 = arith.mulf %7, %9 : vector<512x128xf32>
    %11 = arith.addf %6, %10 : vector<512x128xf32>
    %c0_9 = arith.constant 0 : index
    %c0_10 = arith.constant 0 : index
    %12 = vector.load %arg7[%c0_9, %c0_10] : memref<1x128xf32, #tpu.memory_space<vmem>>, vector<1x128xf32>
    %13 = vector.broadcast %12 : vector<1x128xf32> to vector<512x128xf32>
    %14 = arith.addf %11, %13 : vector<512x128xf32>
    %cst = arith.constant 0.000000e+00 : f32
    %15 = vector.broadcast %cst : f32 to vector<512x128xf32>
    %16 = arith.maximumf %14, %15 : vector<512x128xf32>
    %c0_11 = arith.constant 0 : index
    %c0_12 = arith.constant 0 : index
    %17 = vector.load %arg8[%c0_11, %c0_12] : memref<512x128xf32, #tpu.memory_space<vmem>>, vector<512x128xf32>
    tpu.vector_store %arg8[%c0_11, %c0_12], %16 {strides = array<i32>} : memref<512x128xf32, #tpu.memory_space<vmem>>, vector<512x128xf32>,
    return
  }
  func.func @transform_0(%arg0: i32, %arg1: i32) -> (i32, i32) {
    %c0_i32 = arith.constant 0 : i32
    return %arg0, %arg1 : i32, i32
  }
  func.func @transform_1(%arg0: i32, %arg1: i32) -> (i32, i32) {
    %c0_i32 = arith.constant 0 : i32
    %c0_i32_0 = arith.constant 0 : i32
    return %c0_i32, %arg1 : i32, i32
  }
  func.func @transform_2(%arg0: i32, %arg1: i32) -> (i32, i32) {
    %c0_i32 = arith.constant 0 : i32
    %c0_i32_0 = arith.constant 0 : i32
    return %c0_i32, %arg1 : i32, i32
  }
  func.func @transform_3(%arg0: i32, %arg1: i32) -> (i32, i32) {
    %c0_i32 = arith.constant 0 : i32
    return %arg0, %arg1 : i32, i32
  }
  func.func @transform_4(%arg0: i32, %arg1: i32) -> (i32, i32) {
    %c0_i32 = arith.constant 0 : i32
    %c0_i32_0 = arith.constant 0 : i32
    return %c0_i32, %arg1 : i32, i32
  }
  func.func @transform_5(%arg0: i32, %arg1: i32) -> (i32, i32) {
    %c0_i32 = arith.constant 0 : i32
    %c0_i32_0 = arith.constant 0 : i32
    return %c0_i32, %arg1 : i32, i32
  }
  func.func @transform_6(%arg0: i32, %arg1: i32) -> (i32, i32) {
    %c0_i32 = arith.constant 0 : i32
    return %arg0, %arg1 : i32, i32
  }
}

</mosaic_0001>

<bundles_post_ra>
// kernel: custom_residual_block.5
= control target key start
LH: loop header
LB: loop body
LE: loop exit
PB: predicated region body
PF: predicated region fallthrough
CT: control target
= control target key end

     0   :  { %s893_s0 = inlined_call_operand.vmem [shape: f32[512,128], index: 0, kind: input, shape index: {}]   ;;  %s894_s1 = inlined_call_operand.vmem [shape: f32[1,128], index: 1, kind: input, shape index: {}]   ;;  %s895_s2 = inlined_call_operand.vmem [shape: f32[1,128], index: 2, kind: input, shape index: {}]   ;;  %s896_s3 = inlined_call_operand.vmem [shape: f32[512,128], index: 3, kind: output, shape index: {}]  }
   0x1   :  { %v14_v0 = vld [vmem:[%s893_s0] sm:$0xff]  ;;  %v15_v3 = vld [vmem:[%s893_s0 + $0x8] sm:$0xff]  ;;  %v16_v6 = vld [vmem:[%s893_s0 + $0x10] sm:$0xff] }
   0x2   :  { %v374_v1 = vld [vmem:[%s894_s1] ss:$0 sm:$0xff]  ;;  %v17_v7 = vld [vmem:[%s893_s0 + $0x18] sm:$0xff]  ;;  %v19_v12 = vld [vmem:[%s893_s0 + $0x28] sm:$0xff] }
   0x3   :  { %v379_v2 = vld [vmem:[%s895_s2] ss:$0 sm:$0xff]  ;;  %v82_v4 = vmul.f32 %v374_v1, %v14_v0  ;;  %v83_v5 = vmul.f32 %v374_v1, %v15_v3  ;;  %v84_v9 = vmul.f32 %v374_v1, %v16_v6  ;;  %v85_v10 = vmul.f32 %v374_v1, %v17_v7  ;;  %v20_v13 = vld [vmem:[%s893_s0 + $0x30] sm:$0xff]  ;;  %v21_v14 = vld [vmem:[%s893_s0 + $0x38] sm:$0xff] }
   0x4   :  { %v18_v8 = vld [vmem:[%s893_s0 + $0x20] sm:$0xff]  ;;  %v87_v17 = vmul.f32 %v374_v1, %v19_v12  ;;  %v88_v18 = vmul.f32 %v374_v1, %v20_v13  ;;  %v89_v22 = vmul.f32 %v374_v1, %v21_v14  ;;  %v23_v24 = vld [vmem:[%s893_s0 + $0x48] sm:$0xff]  ;;  %v24_v29 = vld [vmem:[%s893_s0 + $0x50] sm:$0xff] }
   0x5   :  { %v86_v11 = vmul.f32 %v374_v1, %v18_v8  ;;  %v150_v15 = vadd.f32 %v379_v2, %v82_v4  ;;  %v151_v16 = vadd.f32 %v379_v2, %v83_v5  ;;  %v152_v19 = vadd.f32 %v379_v2, %v84_v9  ;;  %v22_v23 = vld [vmem:[%s893_s0 + $0x40] sm:$0xff]  ;;  %v25_v30 = vld [vmem:[%s893_s0 + $0x58] sm:$0xff]  ;;  %v27_v35 = vld [vmem:[%s893_s0 + $0x68] sm:$0xff] }
   0x6   :  { %v153_v20 = vadd.f32 %v379_v2, %v85_v10  ;;  %v155_v27 = vadd.f32 %v379_v2, %v87_v17  ;;  %v156_v28 = vadd.f32 %v379_v2, %v88_v18  ;;  %v26_v31 = vld [vmem:[%s893_s0 + $0x60] sm:$0xff]  ;;  %v157_v34 = vadd.f32 %v379_v2, %v89_v22  ;;  %v28_v36 = vld [vmem:[%s893_s0 + $0x70] sm:$0xff]  ;;  %v29_v41 = vld [vmem:[%s893_s0 + $0x78] sm:$0xff] }
   0x7   :  { %v154_v21 = vadd.f32 %v379_v2, %v86_v11  ;;  %v214_v25 = vmax.f32 %v150_v15, 0.0  ;;  %v215_v26 = vmax.f32 %v151_v16, 0.0  ;;  %v216_v32 = vmax.f32 %v152_v19, 0.0  ;;  %v30_v54 = vld [vmem:[%s893_s0 + $0x80] sm:$0xff]  ;;  %v31_v55 = vld [vmem:[%s893_s0 + $0x88] sm:$0xff]  ;;  %v32_v58 = vld [vmem:[%s893_s0 + $0x90] sm:$0xff] }
   0x8   :  { %v217_v33 = vmax.f32 %v153_v20, 0.0  ;;  %v219_v38 = vmax.f32 %v155_v27, 0.0  ;;  %v90_v39 = vmul.f32 %v374_v1, %v22_v23  ;;  %v91_v40 = vmul.f32 %v374_v1, %v23_v24  ;;  %v33_v59 = vld [vmem:[%s893_s0 + $0x98] sm:$0xff]  ;;  %v34_v62 = vld [vmem:[%s893_s0 + $0xa0] sm:$0xff]  ;;  %v35_v5 = vld [vmem:[%s893_s0 + $0xa8] sm:$0xff] }
   0x9   :  { %278 = vst [vmem:[%s896_s3] sm:$0xff] %v214_v25  ;;  %v218_v37 = vmax.f32 %v154_v21, 0.0  ;;  %v220_v42 = vmax.f32 %v156_v28, 0.0  ;;  %v92_v43 = vmul.f32 %v374_v1, %v24_v29  ;;  %v93_v44 = vmul.f32 %v374_v1, %v25_v30  ;;  %v36_v10 = vld [vmem:[%s893_s0 + $0xb0] sm:$0xff]  ;;  %v37_v14 = vld [vmem:[%s893_s0 + $0xb8] sm:$0xff]  ;;  %v38_v18 = vld [vmem:[%s893_s0 + $0xc0] sm:$0xff] }
   0xa   :  { %279 = vst [vmem:[%s896_s3 + $0x8] sm:$0xff] %v215_v26  ;;  %v94_v45 = vmul.f32 %v374_v1, %v26_v31  ;;  %v158_v46 = vadd.f32 %v379_v2, %v90_v39  ;;  %v159_v47 = vadd.f32 %v379_v2, %v91_v40  ;;  %v95_v48 = vmul.f32 %v374_v1, %v27_v35  ;;  %v39_v22 = vld [vmem:[%s893_s0 + $0xc8] sm:$0xff]  ;;  %v40_v26 = vld [vmem:[%s893_s0 + $0xd0] sm:$0xff]  ;;  %v41_v30 = vld [vmem:[%s893_s0 + $0xd8] sm:$0xff] }
   0xb   :  { %280 = vst [vmem:[%s896_s3 + $0x10] sm:$0xff] %v216_v32  ;;  %v96_v49 = vmul.f32 %v374_v1, %v28_v36  ;;  %v221_v50 = vmax.f32 %v157_v34, 0.0  ;;  %v160_v51 = vadd.f32 %v379_v2, %v92_v43  ;;  %v161_v52 = vadd.f32 %v379_v2, %v93_v44  ;;  %v42_v34 = vld [vmem:[%s893_s0 + $0xe0] sm:$0xff] }
   0xc   :  { %281 = vst [vmem:[%s896_s3 + $0x18] sm:$0xff] %v217_v33  ;;  %v97_v53 = vmul.f32 %v374_v1, %v29_v41  ;;  %v222_v56 = vmax.f32 %v158_v46, 0.0  ;;  %v162_v57 = vadd.f32 %v379_v2, %v94_v45  ;;  %v223_v60 = vmax.f32 %v159_v47, 0.0  ;;  %v45_v46 = vld [vmem:[%s893_s0 + $0xf8] sm:$0xff] }
   0xd   :  { %282 = vst [vmem:[%s896_s3 + $0x20] sm:$0xff] %v218_v37  ;;  %v163_v61 = vadd.f32 %v379_v2, %v95_v48  ;;  %v224_v63 = vmax.f32 %v160_v51, 0.0  ;;  %v164_v0 = vadd.f32 %v379_v2, %v96_v49  ;;  %v98_v3 = vmul.f32 %v374_v1, %v30_v54  ;;  %v47_v54 = vld [vmem:[%s893_s0 + $0x108] sm:$0xff] }
   0xe   :  { %283 = vst [vmem:[%s896_s3 + $0x28] sm:$0xff] %v219_v38  ;;  %v99_v4 = vmul.f32 %v374_v1, %v31_v55  ;;  %v225_v6 = vmax.f32 %v161_v52, 0.0  ;;  %v165_v7 = vadd.f32 %v379_v2, %v97_v53  ;;  %v100_v8 = vmul.f32 %v374_v1, %v32_v58  ;;  %v43_v38 = vld [vmem:[%s893_s0 + $0xe8] sm:$0xff]  ;;  %v48_v58 = vld [vmem:[%s893_s0 + $0x110] sm:$0xff] }
   0xf   :  { %284 = vst [vmem:[%s896_s3 + $0x30] sm:$0xff] %v220_v42  ;;  %v101_v9 = vmul.f32 %v374_v1, %v33_v59  ;;  %v226_v11 = vmax.f32 %v162_v57, 0.0  ;;  %v166_v12 = vadd.f32 %v379_v2, %v98_v3  ;;  %v102_v13 = vmul.f32 %v374_v1, %v34_v62  ;;  %v44_v42 = vld [vmem:[%s893_s0 + $0xf0] sm:$0xff]  ;;  %v49_v62 = vld [vmem:[%s893_s0 + $0x118] sm:$0xff] }
  0x10   :  { %285 = vst [vmem:[%s896_s3 + $0x38] sm:$0xff] %v221_v50  ;;  %v227_v15 = vmax.f32 %v163_v61, 0.0  ;;  %v167_v16 = vadd.f32 %v379_v2, %v99_v4  ;;  %v103_v17 = vmul.f32 %v374_v1, %v35_v5  ;;  %v228_v19 = vmax.f32 %v164_v0, 0.0  ;;  %v46_v50 = vld [vmem:[%s893_s0 + $0x100] sm:$0xff] }
  0x11   :  { %286 = vst [vmem:[%s896_s3 + $0x40] sm:$0xff] %v222_v56  ;;  %v168_v20 = vadd.f32 %v379_v2, %v100_v8  ;;  %v104_v21 = vmul.f32 %v374_v1, %v36_v10  ;;  %v229_v23 = vmax.f32 %v165_v7, 0.0  ;;  %v169_v24 = vadd.f32 %v379_v2, %v101_v9  ;;  %v50_v4 = vld [vmem:[%s893_s0 + $0x120] sm:$0xff]  ;;  %v51_v8 = vld [vmem:[%s893_s0 + $0x128] sm:$0xff] }
  0x12   :  { %287 = vst [vmem:[%s896_s3 + $0x48] sm:$0xff] %v223_v60  ;;  %v105_v25 = vmul.f32 %v374_v1, %v37_v14  ;;  %v230_v27 = vmax.f32 %v166_v12, 0.0  ;;  %v170_v28 = vadd.f32 %v379_v2, %v102_v13  ;;  %v106_v29 = vmul.f32 %v374_v1, %v38_v18  ;;  %v52_v12 = vld [vmem:[%s893_s0 + $0x130] sm:$0xff] }
  0x13   :  { %288 = vst [vmem:[%s896_s3 + $0x50] sm:$0xff] %v224_v63  ;;  %v231_v31 = vmax.f32 %v167_v16, 0.0  ;;  %v171_v32 = vadd.f32 %v379_v2, %v103_v17  ;;  %v107_v33 = vmul.f32 %v374_v1, %v39_v22  ;;  %v232_v35 = vmax.f32 %v168_v20, 0.0  ;;  %v53_v16 = vld [vmem:[%s893_s0 + $0x138] sm:$0xff]  ;;  %v54_v20 = vld [vmem:[%s893_s0 + $0x140] sm:$0xff] }
  0x14   :  { %289 = vst [vmem:[%s896_s3 + $0x58] sm:$0xff] %v225_v6  ;;  %v172_v36 = vadd.f32 %v379_v2, %v104_v21  ;;  %v108_v37 = vmul.f32 %v374_v1, %v40_v26  ;;  %v233_v39 = vmax.f32 %v169_v24, 0.0  ;;  %v173_v40 = vadd.f32 %v379_v2, %v105_v25  ;;  %v55_v24 = vld [vmem:[%s893_s0 + $0x148] sm:$0xff] }
  0x15   :  { %290 = vst [vmem:[%s896_s3 + $0x60] sm:$0xff] %v226_v11  ;;  %v109_v41 = vmul.f32 %v374_v1, %v41_v30  ;;  %v234_v43 = vmax.f32 %v170_v28, 0.0  ;;  %v174_v44 = vadd.f32 %v379_v2, %v106_v29  ;;  %v110_v45 = vmul.f32 %v374_v1, %v42_v34  ;;  %v56_v28 = vld [vmem:[%s893_s0 + $0x150] sm:$0xff] }
  0x16   :  { %291 = vst [vmem:[%s896_s3 + $0x68] sm:$0xff] %v227_v15  ;;  %v235_v47 = vmax.f32 %v171_v32, 0.0  ;;  %v175_v48 = vadd.f32 %v379_v2, %v107_v33  ;;  %v111_v49 = vmul.f32 %v374_v1, %v43_v38  ;;  %v236_v51 = vmax.f32 %v172_v36, 0.0  ;;  %v57_v32 = vld [vmem:[%s893_s0 + $0x158] sm:$0xff]  ;;  %v58_v36 = vld [vmem:[%s893_s0 + $0x160] sm:$0xff] }
  0x17   :  { %292 = vst [vmem:[%s896_s3 + $0x70] sm:$0xff] %v228_v19  ;;  %v176_v52 = vadd.f32 %v379_v2, %v108_v37  ;;  %v112_v53 = vmul.f32 %v374_v1, %v44_v42  ;;  %v237_v55 = vmax.f32 %v173_v40, 0.0  ;;  %v177_v56 = vadd.f32 %v379_v2, %v109_v41  ;;  %v59_v40 = vld [vmem:[%s893_s0 + $0x168] sm:$0xff] }
  0x18   :  { %293 = vst [vmem:[%s896_s3 + $0x78] sm:$0xff] %v229_v23  ;;  %v113_v57 = vmul.f32 %v374_v1, %v45_v46  ;;  %v238_v59 = vmax.f32 %v174_v44, 0.0  ;;  %v178_v60 = vadd.f32 %v379_v2, %v110_v45  ;;  %v114_v61 = vmul.f32 %v374_v1, %v46_v50  ;;  %v60_v44 = vld [vmem:[%s893_s0 + $0x170] sm:$0xff] }
  0x19   :  { %294 = vst [vmem:[%s896_s3 + $0x80] sm:$0xff] %v230_v27  ;;  %v239_v63 = vmax.f32 %v175_v48, 0.0  ;;  %v179_v0 = vadd.f32 %v379_v2, %v111_v49  ;;  %v115_v3 = vmul.f32 %v374_v1, %v47_v54  ;;  %v240_v5 = vmax.f32 %v176_v52, 0.0  ;;  %v61_v48 = vld [vmem:[%s893_s0 + $0x178] sm:$0xff]  ;;  %v62_v52 = vld [vmem:[%s893_s0 + $0x180] sm:$0xff] }
  0x1a   :  { %295 = vst [vmem:[%s896_s3 + $0x88] sm:$0xff] %v231_v31  ;;  %v180_v6 = vadd.f32 %v379_v2, %v112_v53  ;;  %v116_v7 = vmul.f32 %v374_v1, %v48_v58  ;;  %v241_v9 = vmax.f32 %v177_v56, 0.0  ;;  %v181_v10 = vadd.f32 %v379_v2, %v113_v57  ;;  %v63_v56 = vld [vmem:[%s893_s0 + $0x188] sm:$0xff] }
  0x1b   :  { %296 = vst [vmem:[%s896_s3 + $0x90] sm:$0xff] %v232_v35  ;;  %v117_v11 = vmul.f32 %v374_v1, %v49_v62  ;;  %v242_v13 = vmax.f32 %v178_v60, 0.0  ;;  %v182_v14 = vadd.f32 %v379_v2, %v114_v61  ;;  %v118_v15 = vmul.f32 %v374_v1, %v50_v4  ;;  %v64_v60 = vld [vmem:[%s893_s0 + $0x190] sm:$0xff] }
  0x1c   :  { %297 = vst [vmem:[%s896_s3 + $0x98] sm:$0xff] %v233_v39  ;;  %v243_v17 = vmax.f32 %v179_v0, 0.0  ;;  %v183_v18 = vadd.f32 %v379_v2, %v115_v3  ;;  %v119_v19 = vmul.f32 %v374_v1, %v51_v8  ;;  %v244_v21 = vmax.f32 %v180_v6, 0.0  ;;  %v65_v0 = vld [vmem:[%s893_s0 + $0x198] sm:$0xff] }
  0x1d   :  { %298 = vst [vmem:[%s896_s3 + $0xa0] sm:$0xff] %v234_v43  ;;  %v184_v22 = vadd.f32 %v379_v2, %v116_v7  ;;  %v120_v23 = vmul.f32 %v374_v1, %v52_v12  ;;  %v245_v25 = vmax.f32 %v181_v10, 0.0  ;;  %v185_v26 = vadd.f32 %v379_v2, %v117_v11  ;;  %v77_v3 = vld [vmem:[%s893_s0 + $0x1f8] sm:$0xff]  ;;  %v66_v7 = vld [vmem:[%s893_s0 + $0x1a0] sm:$0xff]  ;;  %v67_v11 = vld [vmem:[%s893_s0 + $0x1a8] sm:$0xff] }
  0x1e   :  { %299 = vst [vmem:[%s896_s3 + $0xa8] sm:$0xff] %v235_v47  ;;  %v121_v27 = vmul.f32 %v374_v1, %v53_v16  ;;  %v246_v29 = vmax.f32 %v182_v14, 0.0  ;;  %v186_v30 = vadd.f32 %v379_v2, %v118_v15  ;;  %v122_v31 = vmul.f32 %v374_v1, %v54_v20  ;;  %v68_v15 = vld [vmem:[%s893_s0 + $0x1b0] sm:$0xff]  ;;  %v69_v20 = vld [vmem:[%s893_s0 + $0x1b8] sm:$0xff] }
  0x1f   :  { %300 = vst [vmem:[%s896_s3 + $0xb0] sm:$0xff] %v236_v51  ;;  %v247_v33 = vmax.f32 %v183_v18, 0.0  ;;  %v187_v34 = vadd.f32 %v379_v2, %v119_v19  ;;  %v123_v35 = vmul.f32 %v374_v1, %v55_v24  ;;  %v248_v37 = vmax.f32 %v184_v22, 0.0  ;;  %v70_v24 = vld [vmem:[%s893_s0 + $0x1c0] sm:$0xff] }
  0x20   :  { %301 = vst [vmem:[%s896_s3 + $0xb8] sm:$0xff] %v237_v55  ;;  %v188_v38 = vadd.f32 %v379_v2, %v120_v23  ;;  %v124_v39 = vmul.f32 %v374_v1, %v56_v28  ;;  %v249_v41 = vmax.f32 %v185_v26, 0.0  ;;  %v189_v42 = vadd.f32 %v379_v2, %v121_v27 }
  0x21   :  { %302 = vst [vmem:[%s896_s3 + $0xc0] sm:$0xff] %v238_v59  ;;  %v125_v43 = vmul.f32 %v374_v1, %v57_v32  ;;  %v250_v45 = vmax.f32 %v186_v30, 0.0  ;;  %v190_v46 = vadd.f32 %v379_v2, %v122_v31  ;;  %v126_v47 = vmul.f32 %v374_v1, %v58_v36 }
  0x22   :  { %303 = vst [vmem:[%s896_s3 + $0xc8] sm:$0xff] %v239_v63  ;;  %v251_v49 = vmax.f32 %v187_v34, 0.0  ;;  %v191_v50 = vadd.f32 %v379_v2, %v123_v35  ;;  %v127_v51 = vmul.f32 %v374_v1, %v59_v40  ;;  %v252_v53 = vmax.f32 %v188_v38, 0.0 }
  0x23   :  { %304 = vst [vmem:[%s896_s3 + $0xd0] sm:$0xff] %v240_v5  ;;  %v192_v54 = vadd.f32 %v379_v2, %v124_v39  ;;  %v128_v55 = vmul.f32 %v374_v1, %v60_v44  ;;  %v253_v57 = vmax.f32 %v189_v42, 0.0  ;;  %v193_v58 = vadd.f32 %v379_v2, %v125_v43 }
  0x24   :  { %305 = vst [vmem:[%s896_s3 + $0xd8] sm:$0xff] %v241_v9  ;;  %v129_v59 = vmul.f32 %v374_v1, %v61_v48  ;;  %v254_v61 = vmax.f32 %v190_v46, 0.0  ;;  %v194_v62 = vadd.f32 %v379_v2, %v126_v47  ;;  %v130_v63 = vmul.f32 %v374_v1, %v62_v52 }
  0x25   :  { %306 = vst [vmem:[%s896_s3 + $0xe0] sm:$0xff] %v242_v13  ;;  %v255_v4 = vmax.f32 %v191_v50, 0.0  ;;  %v195_v5 = vadd.f32 %v379_v2, %v127_v51  ;;  %v131_v6 = vmul.f32 %v374_v1, %v63_v56  ;;  %v256_v8 = vmax.f32 %v192_v54, 0.0 }
  0x26   :  { %307 = vst [vmem:[%s896_s3 + $0xe8] sm:$0xff] %v243_v17  ;;  %v196_v9 = vadd.f32 %v379_v2, %v128_v55  ;;  %v132_v10 = vmul.f32 %v374_v1, %v64_v60  ;;  %v257_v12 = vmax.f32 %v193_v58, 0.0  ;;  %v197_v13 = vadd.f32 %v379_v2, %v129_v59 }
  0x27   :  { %308 = vst [vmem:[%s896_s3 + $0xf0] sm:$0xff] %v244_v21  ;;  %v133_v14 = vmul.f32 %v374_v1, %v65_v0  ;;  %v145_v16 = vmul.f32 %v374_v1, %v77_v3  ;;  %v258_v17 = vmax.f32 %v194_v62, 0.0  ;;  %v198_v18 = vadd.f32 %v379_v2, %v130_v63 }
  0x28   :  { %309 = vst [vmem:[%s896_s3 + $0xf8] sm:$0xff] %v245_v25  ;;  %v134_v19 = vmul.f32 %v374_v1, %v66_v7  ;;  %v259_v21 = vmax.f32 %v195_v5, 0.0  ;;  %v199_v22 = vadd.f32 %v379_v2, %v131_v6  ;;  %v135_v23 = vmul.f32 %v374_v1, %v67_v11 }
  0x29   :  { %310 = vst [vmem:[%s896_s3 + $0x100] sm:$0xff] %v246_v29  ;;  %v784_v25 = vadd.f32 %v379_v2, %v145_v16  ;;  %v260_v26 = vmax.f32 %v196_v9, 0.0  ;;  %v200_v27 = vadd.f32 %v379_v2, %v132_v10  ;;  %v136_v28 = vmul.f32 %v374_v1, %v68_v15  ;;  %v71_v29 = vld [vmem:[%s893_s0 + $0x1c8] sm:$0xff] }
  0x2a   :  { %311 = vst [vmem:[%s896_s3 + $0x108] sm:$0xff] %v247_v33  ;;  %v261_v30 = vmax.f32 %v197_v13, 0.0  ;;  %v201_v31 = vadd.f32 %v379_v2, %v133_v14  ;;  %v137_v32 = vmul.f32 %v374_v1, %v69_v20  ;;  %v72_v33 = vld [vmem:[%s893_s0 + $0x1d0] sm:$0xff]  ;;  %v262_v34 = vmax.f32 %v198_v18, 0.0 }
  0x2b   :  { %312 = vst [vmem:[%s896_s3 + $0x110] sm:$0xff] %v248_v37  ;;  %v202_v35 = vadd.f32 %v379_v2, %v134_v19  ;;  %v138_v36 = vmul.f32 %v374_v1, %v70_v24  ;;  %v73_v37 = vld [vmem:[%s893_s0 + $0x1d8] sm:$0xff]  ;;  %v263_v38 = vmax.f32 %v199_v22, 0.0  ;;  %v203_v39 = vadd.f32 %v379_v2, %v135_v23 }
  0x2c   :  { %313 = vst [vmem:[%s896_s3 + $0x118] sm:$0xff] %v249_v41  ;;  %v139_v40 = vmul.f32 %v374_v1, %v71_v29  ;;  %v74_v41 = vld [vmem:[%s893_s0 + $0x1e0] sm:$0xff]  ;;  %v264_v42 = vmax.f32 %v200_v27, 0.0  ;;  %v204_v43 = vadd.f32 %v379_v2, %v136_v28  ;;  %v140_v44 = vmul.f32 %v374_v1, %v72_v33 }
  0x2d   :  { %314 = vst [vmem:[%s896_s3 + $0x120] sm:$0xff] %v250_v45  ;;  %v75_v45 = vld [vmem:[%s893_s0 + $0x1e8] sm:$0xff]  ;;  %v265_v46 = vmax.f32 %v201_v31, 0.0  ;;  %v205_v47 = vadd.f32 %v379_v2, %v137_v32  ;;  %v141_v48 = vmul.f32 %v374_v1, %v73_v37  ;;  %v266_v50 = vmax.f32 %v202_v35, 0.0 }
  0x2e   :  { %315 = vst [vmem:[%s896_s3 + $0x128] sm:$0xff] %v251_v49  ;;  %v76_v49 = vld [vmem:[%s893_s0 + $0x1f0] sm:$0xff]  ;;  %v206_v51 = vadd.f32 %v379_v2, %v138_v36  ;;  %v142_v52 = vmul.f32 %v374_v1, %v74_v41  ;;  %v207_v54 = vadd.f32 %v379_v2, %v139_v40  ;;  %v143_v55 = vmul.f32 %v374_v1, %v75_v45 }
  0x2f   :  { %316 = vst [vmem:[%s896_s3 + $0x130] sm:$0xff] %v252_v53  ;;  %v267_v53 = vmax.f32 %v203_v39, 0.0  ;;  %v268_v56 = vmax.f32 %v204_v43, 0.0  ;;  %v144_v58 = vmul.f32 %v374_v1, %v76_v49  ;;  %v269_v59 = vmax.f32 %v205_v47, 0.0 }
  0x30   :  { %317 = vst [vmem:[%s896_s3 + $0x138] sm:$0xff] %v253_v57  ;;  %v208_v57 = vadd.f32 %v379_v2, %v140_v44  ;;  %v209_v60 = vadd.f32 %v379_v2, %v141_v48  ;;  %v210_v62 = vadd.f32 %v379_v2, %v142_v52  ;;  %v271_v63 = vmax.f32 %v207_v54, 0.0 }
  0x31   :  { %318 = vst [vmem:[%s896_s3 + $0x140] sm:$0xff] %v254_v61  ;;  %v270_v61 = vmax.f32 %v206_v51, 0.0  ;;  %v211_v1 = vadd.f32 %v379_v2, %v143_v55  ;;  %v212_v3 = vadd.f32 %v379_v2, %v144_v58  ;;  %v277_v7 = vmax.f32 %v784_v25, 0.0 }
  0x32   :  { %319 = vst [vmem:[%s896_s3 + $0x148] sm:$0xff] %v255_v4  ;;  %v272_v0 = vmax.f32 %v208_v57, 0.0  ;;  %v273_v4 = vmax.f32 %v209_v60, 0.0  ;;  %v274_v5 = vmax.f32 %v210_v62, 0.0 }
  0x33   :  { %320 = vst [vmem:[%s896_s3 + $0x150] sm:$0xff] %v256_v8  ;;  %v275_v6 = vmax.f32 %v211_v1, 0.0  ;;  %v276_v2 = vmax.f32 %v212_v3, 0.0 }
  0x34   :  { %321 = vst [vmem:[%s896_s3 + $0x158] sm:$0xff] %v257_v12 }
  0x35   :  { %322 = vst [vmem:[%s896_s3 + $0x160] sm:$0xff] %v258_v17 }
  0x36   :  { %323 = vst [vmem:[%s896_s3 + $0x168] sm:$0xff] %v259_v21 }
  0x37   :  { %324 = vst [vmem:[%s896_s3 + $0x170] sm:$0xff] %v260_v26 }
  0x38   :  { %325 = vst [vmem:[%s896_s3 + $0x178] sm:$0xff] %v261_v30 }
  0x39   :  { %326 = vst [vmem:[%s896_s3 + $0x180] sm:$0xff] %v262_v34 }
  0x3a   :  { %327 = vst [vmem:[%s896_s3 + $0x188] sm:$0xff] %v263_v38 }
  0x3b   :  { %328 = vst [vmem:[%s896_s3 + $0x190] sm:$0xff] %v264_v42 }
  0x3c   :  { %329 = vst [vmem:[%s896_s3 + $0x198] sm:$0xff] %v265_v46 }
  0x3d   :  { %330 = vst [vmem:[%s896_s3 + $0x1a0] sm:$0xff] %v266_v50 }
  0x3e   :  { %331 = vst [vmem:[%s896_s3 + $0x1a8] sm:$0xff] %v267_v53 }
  0x3f   :  { %332 = vst [vmem:[%s896_s3 + $0x1b0] sm:$0xff] %v268_v56 }
  0x40   :  { %333 = vst [vmem:[%s896_s3 + $0x1b8] sm:$0xff] %v269_v59 }
  0x41   :  { %334 = vst [vmem:[%s896_s3 + $0x1c0] sm:$0xff] %v270_v61 }
  0x42   :  { %335 = vst [vmem:[%s896_s3 + $0x1c8] sm:$0xff] %v271_v63 }
  0x43   :  { %336 = vst [vmem:[%s896_s3 + $0x1d0] sm:$0xff] %v272_v0 }
  0x44   :  { %337 = vst [vmem:[%s896_s3 + $0x1d8] sm:$0xff] %v273_v4 }
  0x45   :  { %338 = vst [vmem:[%s896_s3 + $0x1e0] sm:$0xff] %v274_v5 }
  0x46   :  { %339 = vst [vmem:[%s896_s3 + $0x1e8] sm:$0xff] %v275_v6 }
  0x47   :  { %340 = vst [vmem:[%s896_s3 + $0x1f0] sm:$0xff] %v276_v2 }
  0x48   :  { %341 = vst [vmem:[%s896_s3 + $0x1f8] sm:$0xff] %v277_v7 }

// kernel: custom_residual_block.7
= control target key start
LH: loop header
LB: loop body
LE: loop exit
PB: predicated region body
PF: predicated region fallthrough
CT: control target
= control target key end

     0   :  { %s1497_s0 = inlined_call_operand.vmem [shape: f32[512,128], index: 0, kind: input, shape index: {}]   ;;  %s1498_s1 = inlined_call_operand.vmem [shape: f32[1,128], index: 1, kind: input, shape index: {}]   ;;  %s1499_s2 = inlined_call_operand.vmem [shape: f32[1,128], index: 2, kind: input, shape index: {}]   ;;  %s1500_s3 = inlined_call_operand.vmem [shape: f32[512,128], index: 3, kind: input, shape index: {}]   ;;  %s1501_s4 = inlined_call_operand.vmem [shape: f32[1,128], index: 4, kind: input, shape index: {}]   ;;  %s1502_s5 = inlined_call_operand.vmem [shape: f32[1,128], index: 5, kind: input, shape index: {}]   ;;  %s1503_s6 = inlined_call_operand.vmem [shape: f32[512,128], index: 6, kind: output, shape index: {}]  }
   0x1   :  { %v23_v0 = vld [vmem:[%s1497_s0] sm:$0xff]  ;;  %v24_v7 = vld [vmem:[%s1497_s0 + $0x8] sm:$0xff]  ;;  %v25_v13 = vld [vmem:[%s1497_s0 + $0x10] sm:$0xff] }
   0x2   :  { %v668_v1 = vld [vmem:[%s1498_s1] ss:$0 sm:$0xff]  ;;  %v224_v8 = vld [vmem:[%s1500_s3 + $0x8] sm:$0xff]  ;;  %v225_v14 = vld [vmem:[%s1500_s3 + $0x10] sm:$0xff] }
   0x3   :  { %v673_v2 = vld [vmem:[%s1499_s2] ss:$0 sm:$0xff]  ;;  %v91_v4 = vmul.f32 %v668_v1, %v23_v0  ;;  %v92_v11 = vmul.f32 %v668_v1, %v24_v7  ;;  %v26_v15 = vld [vmem:[%s1497_s0 + $0x18] sm:$0xff]  ;;  %v93_v16 = vmul.f32 %v668_v1, %v25_v13  ;;  %v28_v26 = vld [vmem:[%s1497_s0 + $0x28] sm:$0xff] }
   0x4   :  { %v223_v3 = vld [vmem:[%s1500_s3] sm:$0xff]  ;;  %v94_v18 = vmul.f32 %v668_v1, %v26_v15  ;;  %v226_v19 = vld [vmem:[%s1500_s3 + $0x18] sm:$0xff]  ;;  %v228_v27 = vld [vmem:[%s1500_s3 + $0x28] sm:$0xff]  ;;  %v96_v32 = vmul.f32 %v668_v1, %v28_v26 }
   0x5   :  { %v682_v5 = vld [vmem:[%s1501_s4] ss:$0 sm:$0xff]  ;;  %v159_v9 = vadd.f32 %v673_v2, %v91_v4  ;;  %v160_v23 = vadd.f32 %v673_v2, %v92_v11  ;;  %v29_v28 = vld [vmem:[%s1497_s0 + $0x30] sm:$0xff]  ;;  %v161_v29 = vadd.f32 %v673_v2, %v93_v16  ;;  %v30_v42 = vld [vmem:[%s1497_s0 + $0x38] sm:$0xff] }
   0x6   :  { %v687_v6 = vld [vmem:[%s1502_s5] ss:$0 sm:$0xff]  ;;  %v291_v10 = vmul.f32 %v682_v5, %v223_v3  ;;  %v292_v12 = vmul.f32 %v682_v5, %v224_v8  ;;  %v293_v17 = vmul.f32 %v682_v5, %v225_v14  ;;  %v294_v24 = vmul.f32 %v682_v5, %v226_v19  ;;  %v229_v33 = vld [vmem:[%s1500_s3 + $0x30] sm:$0xff]  ;;  %v230_v43 = vld [vmem:[%s1500_s3 + $0x38] sm:$0xff] }
   0x7   :  { %v27_v20 = vld [vmem:[%s1497_s0 + $0x20] sm:$0xff]  ;;  %v162_v30 = vadd.f32 %v673_v2, %v94_v18  ;;  %v296_v37 = vmul.f32 %v682_v5, %v228_v27  ;;  %v164_v40 = vadd.f32 %v673_v2, %v96_v32  ;;  %v97_v41 = vmul.f32 %v668_v1, %v29_v28  ;;  %v32_v58 = vld [vmem:[%s1497_s0 + $0x48] sm:$0xff]  ;;  %v33_v0 = vld [vmem:[%s1497_s0 + $0x50] sm:$0xff] }
   0x8   :  { %v227_v21 = vld [vmem:[%s1500_s3 + $0x20] sm:$0xff]  ;;  %v355_v22 = vadd.f32 %v291_v10, %v159_v9  ;;  %v95_v25 = vmul.f32 %v668_v1, %v27_v20  ;;  %v356_v35 = vadd.f32 %v292_v12, %v160_v23  ;;  %v357_v38 = vadd.f32 %v293_v17, %v161_v29  ;;  %v232_v59 = vld [vmem:[%s1500_s3 + $0x48] sm:$0xff]  ;;  %v233_v3 = vld [vmem:[%s1500_s3 + $0x50] sm:$0xff] }
   0x9   :  { %v295_v31 = vmul.f32 %v682_v5, %v227_v21  ;;  %v358_v39 = vadd.f32 %v294_v24, %v162_v30  ;;  %v297_v47 = vmul.f32 %v682_v5, %v229_v33  ;;  %v360_v50 = vadd.f32 %v296_v37, %v164_v40  ;;  %v31_v52 = vld [vmem:[%s1497_s0 + $0x40] sm:$0xff]  ;;  %v34_v10 = vld [vmem:[%s1497_s0 + $0x58] sm:$0xff] }
   0xa   :  { %v423_v34 = vadd.f32 %v687_v6, %v355_v22  ;;  %v163_v36 = vadd.f32 %v673_v2, %v95_v25  ;;  %v424_v45 = vadd.f32 %v687_v6, %v356_v35  ;;  %v425_v48 = vadd.f32 %v687_v6, %v357_v38  ;;  %v231_v53 = vld [vmem:[%s1500_s3 + $0x40] sm:$0xff]  ;;  %v234_v11 = vld [vmem:[%s1500_s3 + $0x58] sm:$0xff]  ;;  %v36_v22 = vld [vmem:[%s1497_s0 + $0x68] sm:$0xff] }
   0xb   :  { %v426_v49 = vadd.f32 %v687_v6, %v358_v39  ;;  %v165_v51 = vadd.f32 %v673_v2, %v97_v41  ;;  %v98_v56 = vmul.f32 %v668_v1, %v30_v42  ;;  %v298_v57 = vmul.f32 %v682_v5, %v230_v43  ;;  %v35_v16 = vld [vmem:[%s1497_s0 + $0x60] sm:$0xff]  ;;  %v237_v41 = vld [vmem:[%s1500_s3 + $0x70] sm:$0xff] }
   0xc   :  { %v487_v44 = vmax.f32 %v423_v34, 0.0  ;;  %v359_v46 = vadd.f32 %v295_v31, %v163_v36  ;;  %v488_v54 = vmax.f32 %v424_v45, 0.0  ;;  %v489_v60 = vmax.f32 %v425_v48, 0.0  ;;  %v235_v21 = vld [vmem:[%s1500_s3 + $0x60] sm:$0xff]  ;;  %v236_v31 = vld [vmem:[%s1500_s3 + $0x68] sm:$0xff]  ;;  %v37_v36 = vld [vmem:[%s1497_s0 + $0x70] sm:$0xff] }
   0xd   :  { %v490_v61 = vmax.f32 %v426_v49, 0.0  ;;  %v428_v62 = vadd.f32 %v687_v6, %v360_v50  ;;  %v361_v63 = vadd.f32 %v297_v47, %v165_v51  ;;  %v166_v7 = vadd.f32 %v673_v2, %v98_v56  ;;  %v238_v51 = vld [vmem:[%s1500_s3 + $0x78] sm:$0xff] }
   0xe   :  { %551 = vst [vmem:[%s1503_s6] sm:$0xff] %v487_v44  ;;  %v427_v55 = vadd.f32 %v687_v6, %v359_v46  ;;  %v99_v8 = vmul.f32 %v668_v1, %v31_v52  ;;  %v299_v9 = vmul.f32 %v682_v5, %v231_v53  ;;  %v100_v14 = vmul.f32 %v668_v1, %v32_v58  ;;  %v38_v46 = vld [vmem:[%s1497_s0 + $0x78] sm:$0xff]  ;;  %v39_v52 = vld [vmem:[%s1497_s0 + $0x80] sm:$0xff] }
   0xf   :  { %552 = vst [vmem:[%s1503_s6 + $0x8] sm:$0xff] %v488_v54  ;;  %v492_v12 = vmax.f32 %v428_v62, 0.0  ;;  %v429_v13 = vadd.f32 %v687_v6, %v361_v63  ;;  %v300_v15 = vmul.f32 %v682_v5, %v232_v59  ;;  %v362_v17 = vadd.f32 %v298_v57, %v166_v7  ;;  %v239_v57 = vld [vmem:[%s1500_s3 + $0x80] sm:$0xff]  ;;  %v40_v62 = vld [vmem:[%s1497_s0 + $0x88] sm:$0xff] }
  0x10   :  { %v491_v4 = vmax.f32 %v427_v55, 0.0  ;;  %553 = vst [vmem:[%s1503_s6 + $0x10] sm:$0xff] %v489_v60  ;;  %v167_v18 = vadd.f32 %v673_v2, %v99_v8  ;;  %v101_v19 = vmul.f32 %v668_v1, %v33_v0  ;;  %v301_v20 = vmul.f32 %v682_v5, %v233_v3  ;;  %v240_v63 = vld [vmem:[%s1500_s3 + $0x88] sm:$0xff]  ;;  %v41_v8 = vld [vmem:[%s1497_s0 + $0x90] sm:$0xff] }
  0x11   :  { %554 = vst [vmem:[%s1503_s6 + $0x18] sm:$0xff] %v490_v61  ;;  %v493_v23 = vmax.f32 %v429_v13, 0.0  ;;  %v168_v24 = vadd.f32 %v673_v2, %v100_v14  ;;  %v102_v25 = vmul.f32 %v668_v1, %v34_v10  ;;  %v302_v26 = vmul.f32 %v682_v5, %v234_v11  ;;  %v42_v14 = vld [vmem:[%s1497_s0 + $0x98] sm:$0xff] }
  0x12   :  { %555 = vst [vmem:[%s1503_s6 + $0x20] sm:$0xff] %v491_v4  ;;  %v430_v27 = vadd.f32 %v687_v6, %v362_v17  ;;  %v363_v28 = vadd.f32 %v299_v9, %v167_v18  ;;  %v169_v29 = vadd.f32 %v673_v2, %v101_v19  ;;  %v103_v30 = vmul.f32 %v668_v1, %v35_v16  ;;  %v241_v9 = vld [vmem:[%s1500_s3 + $0x90] sm:$0xff] }
  0x13   :  { %556 = vst [vmem:[%s1503_s6 + $0x28] sm:$0xff] %v492_v12  ;;  %v364_v32 = vadd.f32 %v300_v15, %v168_v24  ;;  %v170_v33 = vadd.f32 %v673_v2, %v102_v25  ;;  %v303_v34 = vmul.f32 %v682_v5, %v235_v21  ;;  %v104_v35 = vmul.f32 %v668_v1, %v36_v22  ;;  %v242_v15 = vld [vmem:[%s1500_s3 + $0x98] sm:$0xff]  ;;  %v243_v25 = vld [vmem:[%s1500_s3 + $0xa0] sm:$0xff] }
  0x14   :  { %557 = vst [vmem:[%s1503_s6 + $0x30] sm:$0xff] %v493_v23  ;;  %v494_v37 = vmax.f32 %v430_v27, 0.0  ;;  %v431_v38 = vadd.f32 %v687_v6, %v363_v28  ;;  %v365_v39 = vadd.f32 %v301_v20, %v169_v29  ;;  %v171_v40 = vadd.f32 %v673_v2, %v103_v30  ;;  %v43_v20 = vld [vmem:[%s1497_s0 + $0xa0] sm:$0xff]  ;;  %v44_v30 = vld [vmem:[%s1497_s0 + $0xa8] sm:$0xff] }
  0x15   :  { %v432_v42 = vadd.f32 %v687_v6, %v364_v32  ;;  %v366_v43 = vadd.f32 %v302_v26, %v170_v33  ;;  %v172_v44 = vadd.f32 %v673_v2, %v104_v35  ;;  %v304_v45 = vmul.f32 %v682_v5, %v236_v31  ;;  %v244_v35 = vld [vmem:[%s1500_s3 + $0xa8] sm:$0xff] }
  0x16   :  { %558 = vst [vmem:[%s1503_s6 + $0x38] sm:$0xff] %v494_v37  ;;  %v495_v47 = vmax.f32 %v431_v38, 0.0  ;;  %v433_v48 = vadd.f32 %v687_v6, %v365_v39  ;;  %v367_v49 = vadd.f32 %v303_v34, %v171_v40  ;;  %v105_v50 = vmul.f32 %v668_v1, %v37_v36  ;;  %v45_v40 = vld [vmem:[%s1497_s0 + $0xb0] sm:$0xff] }
  0x17   :  { %v496_v53 = vmax.f32 %v432_v42, 0.0  ;;  %v434_v54 = vadd.f32 %v687_v6, %v366_v43  ;;  %v368_v55 = vadd.f32 %v304_v45, %v172_v44  ;;  %v305_v56 = vmul.f32 %v682_v5, %v237_v41  ;;  %v245_v45 = vld [vmem:[%s1500_s3 + $0xb0] sm:$0xff] }
  0x18   :  { %559 = vst [vmem:[%s1503_s6 + $0x40] sm:$0xff] %v495_v47  ;;  %v497_v58 = vmax.f32 %v433_v48, 0.0  ;;  %v435_v59 = vadd.f32 %v687_v6, %v367_v49  ;;  %v173_v60 = vadd.f32 %v673_v2, %v105_v50  ;;  %v106_v61 = vmul.f32 %v668_v1, %v38_v46  ;;  %v46_v46 = vld [vmem:[%s1497_s0 + $0xb8] sm:$0xff] }
  0x19   :  { %560 = vst [vmem:[%s1503_s6 + $0x48] sm:$0xff] %v496_v53  ;;  %v498_v0 = vmax.f32 %v434_v54, 0.0  ;;  %v436_v3 = vadd.f32 %v687_v6, %v368_v55  ;;  %v306_v4 = vmul.f32 %v682_v5, %v238_v51  ;;  %v107_v7 = vmul.f32 %v668_v1, %v39_v52  ;;  %v246_v55 = vld [vmem:[%s1500_s3 + $0xb8] sm:$0xff] }
  0x1a   :  { %561 = vst [vmem:[%s1503_s6 + $0x50] sm:$0xff] %v497_v58  ;;  %v499_v10 = vmax.f32 %v435_v59, 0.0  ;;  %v369_v11 = vadd.f32 %v305_v56, %v173_v60  ;;  %v174_v12 = vadd.f32 %v673_v2, %v106_v61  ;;  %v307_v13 = vmul.f32 %v682_v5, %v239_v57  ;;  %v47_v56 = vld [vmem:[%s1497_s0 + $0xc0] sm:$0xff] }
  0x1b   :  { %562 = vst [vmem:[%s1503_s6 + $0x58] sm:$0xff] %v498_v0  ;;  %v500_v16 = vmax.f32 %v436_v3, 0.0  ;;  %v175_v17 = vadd.f32 %v673_v2, %v107_v7  ;;  %v108_v18 = vmul.f32 %v668_v1, %v40_v62  ;;  %v308_v19 = vmul.f32 %v682_v5, %v240_v63  ;;  %v247_v61 = vld [vmem:[%s1500_s3 + $0xc0] sm:$0xff]  ;;  %v248_v7 = vld [vmem:[%s1500_s3 + $0xc8] sm:$0xff] }
  0x1c   :  { %563 = vst [vmem:[%s1503_s6 + $0x60] sm:$0xff] %v499_v10  ;;  %v437_v21 = vadd.f32 %v687_v6, %v369_v11  ;;  %v370_v22 = vadd.f32 %v306_v4, %v174_v12  ;;  %v109_v23 = vmul.f32 %v668_v1, %v41_v8  ;;  %v309_v24 = vmul.f32 %v682_v5, %v241_v9  ;;  %v48_v4 = vld [vmem:[%s1497_s0 + $0xc8] sm:$0xff]  ;;  %v49_v12 = vld [vmem:[%s1497_s0 + $0xd0] sm:$0xff] }
  0x1d   :  { %564 = vst [vmem:[%s1503_s6 + $0x68] sm:$0xff] %v500_v16  ;;  %v371_v26 = vadd.f32 %v307_v13, %v175_v17  ;;  %v176_v27 = vadd.f32 %v673_v2, %v108_v18  ;;  %v110_v28 = vmul.f32 %v668_v1, %v42_v14  ;;  %v310_v29 = vmul.f32 %v682_v5, %v242_v15  ;;  %v249_v13 = vld [vmem:[%s1500_s3 + $0xd0] sm:$0xff]  ;;  %v50_v18 = vld [vmem:[%s1497_s0 + $0xd8] sm:$0xff] }
  0x1e   :  { %v501_v31 = vmax.f32 %v437_v21, 0.0  ;;  %v438_v32 = vadd.f32 %v687_v6, %v370_v22  ;;  %v177_v33 = vadd.f32 %v673_v2, %v109_v23  ;;  %v111_v34 = vmul.f32 %v668_v1, %v43_v20  ;;  %v250_v23 = vld [vmem:[%s1500_s3 + $0xd8] sm:$0xff] }
  0x1f   :  { %v439_v36 = vadd.f32 %v687_v6, %v371_v26  ;;  %v372_v37 = vadd.f32 %v308_v19, %v176_v27  ;;  %v178_v38 = vadd.f32 %v673_v2, %v110_v28  ;;  %v311_v39 = vmul.f32 %v682_v5, %v243_v25 }
  0x20   :  { %565 = vst [vmem:[%s1503_s6 + $0x70] sm:$0xff] %v501_v31  ;;  %v502_v41 = vmax.f32 %v438_v32, 0.0  ;;  %v373_v42 = vadd.f32 %v309_v24, %v177_v33  ;;  %v179_v43 = vadd.f32 %v673_v2, %v111_v34  ;;  %v112_v44 = vmul.f32 %v668_v1, %v44_v30  ;;  %v51_v24 = vld [vmem:[%s1497_s0 + $0xe0] sm:$0xff]  ;;  %v52_v34 = vld [vmem:[%s1497_s0 + $0xe8] sm:$0xff] }
  0x21   :  { %v503_v47 = vmax.f32 %v439_v36, 0.0  ;;  %v440_v48 = vadd.f32 %v687_v6, %v372_v37  ;;  %v374_v49 = vadd.f32 %v310_v29, %v178_v38  ;;  %v312_v50 = vmul.f32 %v682_v5, %v244_v35  ;;  %v251_v33 = vld [vmem:[%s1500_s3 + $0xe0] sm:$0xff] }
  0x22   :  { %566 = vst [vmem:[%s1503_s6 + $0x78] sm:$0xff] %v502_v41  ;;  %v441_v51 = vadd.f32 %v687_v6, %v373_v42  ;;  %v375_v52 = vadd.f32 %v311_v39, %v179_v43  ;;  %v180_v53 = vadd.f32 %v673_v2, %v112_v44  ;;  %v113_v54 = vmul.f32 %v668_v1, %v45_v40  ;;  %v252_v39 = vld [vmem:[%s1500_s3 + $0xe8] sm:$0xff]  ;;  %v53_v44 = vld [vmem:[%s1497_s0 + $0xf0] sm:$0xff] }
  0x23   :  { %567 = vst [vmem:[%s1503_s6 + $0x80] sm:$0xff] %v503_v47  ;;  %v504_v57 = vmax.f32 %v440_v48, 0.0  ;;  %v442_v58 = vadd.f32 %v687_v6, %v374_v49  ;;  %v313_v59 = vmul.f32 %v682_v5, %v245_v45  ;;  %v114_v60 = vmul.f32 %v668_v1, %v46_v46  ;;  %v253_v49 = vld [vmem:[%s1500_s3 + $0xf0] sm:$0xff] }
  0x24   :  { %v505_v62 = vmax.f32 %v441_v51, 0.0  ;;  %v443_v63 = vadd.f32 %v687_v6, %v375_v52  ;;  %v376_v0 = vadd.f32 %v312_v50, %v180_v53  ;;  %v181_v3 = vadd.f32 %v673_v2, %v113_v54  ;;  %v54_v50 = vld [vmem:[%s1497_s0 + $0xf8] sm:$0xff] }
  0x25   :  { %568 = vst [vmem:[%s1503_s6 + $0x88] sm:$0xff] %v504_v57  ;;  %v506_v8 = vmax.f32 %v442_v58, 0.0  ;;  %v182_v9 = vadd.f32 %v673_v2, %v114_v60  ;;  %v314_v10 = vmul.f32 %v682_v5, %v246_v55  ;;  %v115_v11 = vmul.f32 %v668_v1, %v47_v56  ;;  %v55_v60 = vld [vmem:[%s1497_s0 + $0x100] sm:$0xff] }
  0x26   :  { %569 = vst [vmem:[%s1503_s6 + $0x90] sm:$0xff] %v505_v62  ;;  %v507_v14 = vmax.f32 %v443_v63, 0.0  ;;  %v444_v15 = vadd.f32 %v687_v6, %v376_v0  ;;  %v377_v16 = vadd.f32 %v313_v59, %v181_v3  ;;  %v315_v17 = vmul.f32 %v682_v5, %v247_v61  ;;  %v254_v59 = vld [vmem:[%s1500_s3 + $0xf8] sm:$0xff]  ;;  %v255_v3 = vld [vmem:[%s1500_s3 + $0x100] sm:$0xff] }
  0x27   :  { %570 = vst [vmem:[%s1503_s6 + $0x98] sm:$0xff] %v506_v8  ;;  %v378_v19 = vadd.f32 %v314_v10, %v182_v9  ;;  %v183_v20 = vadd.f32 %v673_v2, %v115_v11  ;;  %v116_v21 = vmul.f32 %v668_v1, %v48_v4  ;;  %v316_v22 = vmul.f32 %v682_v5, %v248_v7  ;;  %v56_v10 = vld [vmem:[%s1497_s0 + $0x108] sm:$0xff] }
  0x28   :  { %571 = vst [vmem:[%s1503_s6 + $0xa0] sm:$0xff] %v507_v14  ;;  %v508_v25 = vmax.f32 %v444_v15, 0.0  ;;  %v445_v26 = vadd.f32 %v687_v6, %v377_v16  ;;  %v117_v27 = vmul.f32 %v668_v1, %v49_v12  ;;  %v317_v28 = vmul.f32 %v682_v5, %v249_v13  ;;  %v256_v11 = vld [vmem:[%s1500_s3 + $0x108] sm:$0xff]  ;;  %v57_v16 = vld [vmem:[%s1497_s0 + $0x110] sm:$0xff] }
  0x29   :  { %v446_v29 = vadd.f32 %v687_v6, %v378_v19  ;;  %v379_v30 = vadd.f32 %v315_v17, %v183_v20  ;;  %v184_v31 = vadd.f32 %v673_v2, %v116_v21  ;;  %v118_v32 = vmul.f32 %v668_v1, %v50_v18  ;;  %v257_v17 = vld [vmem:[%s1500_s3 + $0x110] sm:$0xff] }
  0x2a   :  { %572 = vst [vmem:[%s1503_s6 + $0xa8] sm:$0xff] %v508_v25  ;;  %v509_v35 = vmax.f32 %v445_v26, 0.0  ;;  %v185_v36 = vadd.f32 %v673_v2, %v117_v27  ;;  %v318_v37 = vmul.f32 %v682_v5, %v250_v23  ;;  %v119_v38 = vmul.f32 %v668_v1, %v51_v24  ;;  %v258_v27 = vld [vmem:[%s1500_s3 + $0x118] sm:$0xff] }
  0x2b   :  { %v510_v40 = vmax.f32 %v446_v29, 0.0  ;;  %v447_v41 = vadd.f32 %v687_v6, %v379_v30  ;;  %v380_v42 = vadd.f32 %v316_v22, %v184_v31  ;;  %v186_v43 = vadd.f32 %v673_v2, %v118_v32  ;;  %v58_v22 = vld [vmem:[%s1497_s0 + $0x118] sm:$0xff] }
  0x2c   :  { %573 = vst [vmem:[%s1503_s6 + $0xb0] sm:$0xff] %v509_v35  ;;  %v381_v45 = vadd.f32 %v317_v28, %v185_v36  ;;  %v187_v46 = vadd.f32 %v673_v2, %v119_v38  ;;  %v319_v47 = vmul.f32 %v682_v5, %v251_v33  ;;  %v120_v48 = vmul.f32 %v668_v1, %v52_v34  ;;  %v59_v28 = vld [vmem:[%s1497_s0 + $0x120] sm:$0xff]  ;;  %v60_v38 = vld [vmem:[%s1497_s0 + $0x128] sm:$0xff] }
  0x2d   :  { %574 = vst [vmem:[%s1503_s6 + $0xb8] sm:$0xff] %v510_v40  ;;  %v511_v51 = vmax.f32 %v447_v41, 0.0  ;;  %v448_v52 = vadd.f32 %v687_v6, %v380_v42  ;;  %v382_v53 = vadd.f32 %v318_v37, %v186_v43  ;;  %v320_v54 = vmul.f32 %v682_v5, %v252_v39  ;;  %v259_v37 = vld [vmem:[%s1500_s3 + $0x120] sm:$0xff]  ;;  %v260_v43 = vld [vmem:[%s1500_s3 + $0x128] sm:$0xff] }
  0x2e   :  { %v449_v55 = vadd.f32 %v687_v6, %v381_v45  ;;  %v383_v56 = vadd.f32 %v319_v47, %v187_v46  ;;  %v188_v57 = vadd.f32 %v673_v2, %v120_v48  ;;  %v121_v58 = vmul.f32 %v668_v1, %v53_v44  ;;  %v61_v48 = vld [vmem:[%s1497_s0 + $0x130] sm:$0xff] }
  0x2f   :  { %575 = vst [vmem:[%s1503_s6 + $0xc0] sm:$0xff] %v511_v51  ;;  %v512_v61 = vmax.f32 %v448_v52, 0.0  ;;  %v450_v62 = vadd.f32 %v687_v6, %v382_v53  ;;  %v321_v63 = vmul.f32 %v682_v5, %v253_v49  ;;  %v122_v0 = vmul.f32 %v668_v1, %v54_v50  ;;  %v261_v53 = vld [vmem:[%s1500_s3 + $0x130] sm:$0xff] }
  0x30   :  { %v513_v4 = vmax.f32 %v449_v55, 0.0  ;;  %v451_v7 = vadd.f32 %v687_v6, %v383_v56  ;;  %v384_v8 = vadd.f32 %v320_v54, %v188_v57  ;;  %v189_v9 = vadd.f32 %v673_v2, %v121_v58  ;;  %v62_v54 = vld [vmem:[%s1497_s0 + $0x138] sm:$0xff] }
  0x31   :  { %576 = vst [vmem:[%s1503_s6 + $0xc8] sm:$0xff] %v512_v61  ;;  %v514_v12 = vmax.f32 %v450_v62, 0.0  ;;  %v190_v13 = vadd.f32 %v673_v2, %v122_v0  ;;  %v322_v14 = vmul.f32 %v682_v5, %v254_v59  ;;  %v123_v15 = vmul.f32 %v668_v1, %v55_v60  ;;  %v63_v0 = vld [vmem:[%s1497_s0 + $0x140] sm:$0xff] }
  0x32   :  { %577 = vst [vmem:[%s1503_s6 + $0xd0] sm:$0xff] %v513_v4  ;;  %v515_v18 = vmax.f32 %v451_v7, 0.0  ;;  %v452_v19 = vadd.f32 %v687_v6, %v384_v8  ;;  %v385_v20 = vadd.f32 %v321_v63, %v189_v9  ;;  %v323_v21 = vmul.f32 %v682_v5, %v255_v3  ;;  %v262_v63 = vld [vmem:[%s1500_s3 + $0x138] sm:$0xff]  ;;  %v263_v9 = vld [vmem:[%s1500_s3 + $0x140] sm:$0xff] }
  0x33   :  { %578 = vst [vmem:[%s1503_s6 + $0xd8] sm:$0xff] %v514_v12  ;;  %v386_v23 = vadd.f32 %v322_v14, %v190_v13  ;;  %v191_v24 = vadd.f32 %v673_v2, %v123_v15  ;;  %v124_v25 = vmul.f32 %v668_v1, %v56_v10  ;;  %v324_v26 = vmul.f32 %v682_v5, %v256_v11  ;;  %v64_v14 = vld [vmem:[%s1497_s0 + $0x148] sm:$0xff] }
  0x34   :  { %579 = vst [vmem:[%s1503_s6 + $0xe0] sm:$0xff] %v515_v18  ;;  %v516_v29 = vmax.f32 %v452_v19, 0.0  ;;  %v453_v30 = vadd.f32 %v687_v6, %v385_v20  ;;  %v125_v31 = vmul.f32 %v668_v1, %v57_v16  ;;  %v325_v32 = vmul.f32 %v682_v5, %v257_v17  ;;  %v264_v15 = vld [vmem:[%s1500_s3 + $0x148] sm:$0xff]  ;;  %v65_v20 = vld [vmem:[%s1497_s0 + $0x150] sm:$0xff] }
  0x35   :  { %v454_v33 = vadd.f32 %v687_v6, %v386_v23  ;;  %v387_v34 = vadd.f32 %v323_v21, %v191_v24  ;;  %v192_v35 = vadd.f32 %v673_v2, %v124_v25  ;;  %v126_v36 = vmul.f32 %v668_v1, %v58_v22  ;;  %v265_v21 = vld [vmem:[%s1500_s3 + $0x150] sm:$0xff] }
  0x36   :  { %580 = vst [vmem:[%s1503_s6 + $0xe8] sm:$0xff] %v516_v29  ;;  %v517_v39 = vmax.f32 %v453_v30, 0.0  ;;  %v193_v40 = vadd.f32 %v673_v2, %v125_v31  ;;  %v326_v41 = vmul.f32 %v682_v5, %v258_v27  ;;  %v127_v42 = vmul.f32 %v668_v1, %v59_v28  ;;  %v266_v31 = vld [vmem:[%s1500_s3 + $0x158] sm:$0xff] }
  0x37   :  { %v518_v44 = vmax.f32 %v454_v33, 0.0  ;;  %v455_v45 = vadd.f32 %v687_v6, %v387_v34  ;;  %v388_v46 = vadd.f32 %v324_v26, %v192_v35  ;;  %v194_v47 = vadd.f32 %v673_v2, %v126_v36  ;;  %v66_v26 = vld [vmem:[%s1497_s0 + $0x158] sm:$0xff] }
  0x38   :  { %581 = vst [vmem:[%s1503_s6 + $0xf0] sm:$0xff] %v517_v39  ;;  %v389_v49 = vadd.f32 %v325_v32, %v193_v40  ;;  %v195_v50 = vadd.f32 %v673_v2, %v127_v42  ;;  %v327_v51 = vmul.f32 %v682_v5, %v259_v37  ;;  %v128_v52 = vmul.f32 %v668_v1, %v60_v38  ;;  %v67_v32 = vld [vmem:[%s1497_s0 + $0x160] sm:$0xff]  ;;  %v68_v42 = vld [vmem:[%s1497_s0 + $0x168] sm:$0xff] }
  0x39   :  { %582 = vst [vmem:[%s1503_s6 + $0xf8] sm:$0xff] %v518_v44  ;;  %v519_v55 = vmax.f32 %v455_v45, 0.0  ;;  %v456_v56 = vadd.f32 %v687_v6, %v388_v46  ;;  %v390_v57 = vadd.f32 %v326_v41, %v194_v47  ;;  %v328_v58 = vmul.f32 %v682_v5, %v260_v43  ;;  %v267_v41 = vld [vmem:[%s1500_s3 + $0x160] sm:$0xff]  ;;  %v268_v47 = vld [vmem:[%s1500_s3 + $0x168] sm:$0xff] }
  0x3a   :  { %v457_v59 = vadd.f32 %v687_v6, %v389_v49  ;;  %v391_v60 = vadd.f32 %v327_v51, %v195_v50  ;;  %v196_v61 = vadd.f32 %v673_v2, %v128_v52  ;;  %v129_v62 = vmul.f32 %v668_v1, %v61_v48  ;;  %v69_v52 = vld [vmem:[%s1497_s0 + $0x170] sm:$0xff] }
  0x3b   :  { %583 = vst [vmem:[%s1503_s6 + $0x100] sm:$0xff] %v519_v55  ;;  %v520_v3 = vmax.f32 %v456_v56, 0.0  ;;  %v458_v4 = vadd.f32 %v687_v6, %v390_v57  ;;  %v329_v7 = vmul.f32 %v682_v5, %v261_v53  ;;  %v130_v8 = vmul.f32 %v668_v1, %v62_v54  ;;  %v269_v57 = vld [vmem:[%s1500_s3 + $0x170] sm:$0xff] }
  0x3c   :  { %v521_v10 = vmax.f32 %v457_v59, 0.0  ;;  %v459_v11 = vadd.f32 %v687_v6, %v391_v60  ;;  %v392_v12 = vadd.f32 %v328_v58, %v196_v61  ;;  %v197_v13 = vadd.f32 %v673_v2, %v129_v62  ;;  %v70_v58 = vld [vmem:[%s1497_s0 + $0x178] sm:$0xff] }
  0x3d   :  { %584 = vst [vmem:[%s1503_s6 + $0x108] sm:$0xff] %v520_v3  ;;  %v522_v16 = vmax.f32 %v458_v4, 0.0  ;;  %v198_v17 = vadd.f32 %v673_v2, %v130_v8  ;;  %v330_v18 = vmul.f32 %v682_v5, %v262_v63  ;;  %v131_v19 = vmul.f32 %v668_v1, %v63_v0  ;;  %v71_v8 = vld [vmem:[%s1497_s0 + $0x180] sm:$0xff] }
  0x3e   :  { %585 = vst [vmem:[%s1503_s6 + $0x110] sm:$0xff] %v521_v10  ;;  %v523_v22 = vmax.f32 %v459_v11, 0.0  ;;  %v460_v23 = vadd.f32 %v687_v6, %v392_v12  ;;  %v393_v24 = vadd.f32 %v329_v7, %v197_v13  ;;  %v331_v25 = vmul.f32 %v682_v5, %v263_v9  ;;  %v270_v7 = vld [vmem:[%s1500_s3 + $0x178] sm:$0xff]  ;;  %v271_v13 = vld [vmem:[%s1500_s3 + $0x180] sm:$0xff] }
  0x3f   :  { %586 = vst [vmem:[%s1503_s6 + $0x118] sm:$0xff] %v522_v16  ;;  %v394_v27 = vadd.f32 %v330_v18, %v198_v17  ;;  %v199_v28 = vadd.f32 %v673_v2, %v131_v19  ;;  %v132_v29 = vmul.f32 %v668_v1, %v64_v14  ;;  %v332_v30 = vmul.f32 %v682_v5, %v264_v15  ;;  %v72_v18 = vld [vmem:[%s1497_s0 + $0x188] sm:$0xff] }
  0x40   :  { %587 = vst [vmem:[%s1503_s6 + $0x120] sm:$0xff] %v523_v22  ;;  %v524_v33 = vmax.f32 %v460_v23, 0.0  ;;  %v461_v34 = vadd.f32 %v687_v6, %v393_v24  ;;  %v133_v35 = vmul.f32 %v668_v1, %v65_v20  ;;  %v333_v36 = vmul.f32 %v682_v5, %v265_v21  ;;  %v272_v19 = vld [vmem:[%s1500_s3 + $0x188] sm:$0xff]  ;;  %v73_v24 = vld [vmem:[%s1497_s0 + $0x190] sm:$0xff] }
  0x41   :  { %v462_v37 = vadd.f32 %v687_v6, %v394_v27  ;;  %v395_v38 = vadd.f32 %v331_v25, %v199_v28  ;;  %v200_v39 = vadd.f32 %v673_v2, %v132_v29  ;;  %v134_v40 = vmul.f32 %v668_v1, %v66_v26  ;;  %v273_v25 = vld [vmem:[%s1500_s3 + $0x190] sm:$0xff] }
  0x42   :  { %588 = vst [vmem:[%s1503_s6 + $0x128] sm:$0xff] %v524_v33  ;;  %v525_v43 = vmax.f32 %v461_v34, 0.0  ;;  %v201_v44 = vadd.f32 %v673_v2, %v133_v35  ;;  %v334_v45 = vmul.f32 %v682_v5, %v266_v31  ;;  %v135_v46 = vmul.f32 %v668_v1, %v67_v32  ;;  %v274_v35 = vld [vmem:[%s1500_s3 + $0x198] sm:$0xff] }
  0x43   :  { %v526_v48 = vmax.f32 %v462_v37, 0.0  ;;  %v463_v49 = vadd.f32 %v687_v6, %v395_v38  ;;  %v396_v50 = vadd.f32 %v332_v30, %v200_v39  ;;  %v202_v51 = vadd.f32 %v673_v2, %v134_v40  ;;  %v74_v30 = vld [vmem:[%s1497_s0 + $0x198] sm:$0xff] }
  0x44   :  { %589 = vst [vmem:[%s1503_s6 + $0x130] sm:$0xff] %v525_v43  ;;  %v397_v53 = vadd.f32 %v333_v36, %v201_v44  ;;  %v203_v54 = vadd.f32 %v673_v2, %v135_v46  ;;  %v335_v55 = vmul.f32 %v682_v5, %v267_v41  ;;  %v136_v56 = vmul.f32 %v668_v1, %v68_v42  ;;  %v75_v36 = vld [vmem:[%s1497_s0 + $0x1a0] sm:$0xff]  ;;  %v76_v46 = vld [vmem:[%s1497_s0 + $0x1a8] sm:$0xff] }
  0x45   :  { %590 = vst [vmem:[%s1503_s6 + $0x138] sm:$0xff] %v526_v48  ;;  %v527_v59 = vmax.f32 %v463_v49, 0.0  ;;  %v464_v60 = vadd.f32 %v687_v6, %v396_v50  ;;  %v398_v61 = vadd.f32 %v334_v45, %v202_v51  ;;  %v336_v62 = vmul.f32 %v682_v5, %v268_v47  ;;  %v275_v45 = vld [vmem:[%s1500_s3 + $0x1a0] sm:$0xff]  ;;  %v276_v51 = vld [vmem:[%s1500_s3 + $0x1a8] sm:$0xff] }
  0x46   :  { %v465_v63 = vadd.f32 %v687_v6, %v397_v53  ;;  %v399_v0 = vadd.f32 %v335_v55, %v203_v54  ;;  %v204_v3 = vadd.f32 %v673_v2, %v136_v56  ;;  %v137_v4 = vmul.f32 %v668_v1, %v69_v52  ;;  %v77_v56 = vld [vmem:[%s1497_s0 + $0x1b0] sm:$0xff] }
  0x47   :  { %591 = vst [vmem:[%s1503_s6 + $0x140] sm:$0xff] %v527_v59  ;;  %v528_v9 = vmax.f32 %v464_v60, 0.0  ;;  %v466_v10 = vadd.f32 %v687_v6, %v398_v61  ;;  %v337_v11 = vmul.f32 %v682_v5, %v269_v57  ;;  %v138_v12 = vmul.f32 %v668_v1, %v70_v58  ;;  %v277_v61 = vld [vmem:[%s1500_s3 + $0x1b0] sm:$0xff] }
  0x48   :  { %v529_v14 = vmax.f32 %v465_v63, 0.0  ;;  %v467_v15 = vadd.f32 %v687_v6, %v399_v0  ;;  %v400_v16 = vadd.f32 %v336_v62, %v204_v3  ;;  %v205_v17 = vadd.f32 %v673_v2, %v137_v4  ;;  %v78_v62 = vld [vmem:[%s1497_s0 + $0x1b8] sm:$0xff] }
  0x49   :  { %592 = vst [vmem:[%s1503_s6 + $0x148] sm:$0xff] %v528_v9  ;;  %v530_v20 = vmax.f32 %v466_v10, 0.0  ;;  %v206_v21 = vadd.f32 %v673_v2, %v138_v12  ;;  %v338_v22 = vmul.f32 %v682_v5, %v270_v7  ;;  %v139_v23 = vmul.f32 %v668_v1, %v71_v8  ;;  %v79_v12 = vld [vmem:[%s1497_s0 + $0x1c0] sm:$0xff] }
  0x4a   :  { %593 = vst [vmem:[%s1503_s6 + $0x150] sm:$0xff] %v529_v14  ;;  %v531_v26 = vmax.f32 %v467_v15, 0.0  ;;  %v468_v27 = vadd.f32 %v687_v6, %v400_v16  ;;  %v401_v28 = vadd.f32 %v337_v11, %v205_v17  ;;  %v339_v29 = vmul.f32 %v682_v5, %v271_v13  ;;  %v278_v11 = vld [vmem:[%s1500_s3 + $0x1b8] sm:$0xff]  ;;  %v279_v17 = vld [vmem:[%s1500_s3 + $0x1c0] sm:$0xff] }
  0x4b   :  { %594 = vst [vmem:[%s1503_s6 + $0x158] sm:$0xff] %v530_v20  ;;  %v402_v31 = vadd.f32 %v338_v22, %v206_v21  ;;  %v207_v32 = vadd.f32 %v673_v2, %v139_v23  ;;  %v140_v33 = vmul.f32 %v668_v1, %v72_v18  ;;  %v340_v34 = vmul.f32 %v682_v5, %v272_v19  ;;  %v80_v22 = vld [vmem:[%s1497_s0 + $0x1c8] sm:$0xff] }
  0x4c   :  { %595 = vst [vmem:[%s1503_s6 + $0x160] sm:$0xff] %v531_v26  ;;  %v532_v37 = vmax.f32 %v468_v27, 0.0  ;;  %v469_v38 = vadd.f32 %v687_v6, %v401_v28  ;;  %v141_v39 = vmul.f32 %v668_v1, %v73_v24  ;;  %v341_v40 = vmul.f32 %v682_v5, %v273_v25  ;;  %v280_v23 = vld [vmem:[%s1500_s3 + $0x1c8] sm:$0xff]  ;;  %v81_v28 = vld [vmem:[%s1497_s0 + $0x1d0] sm:$0xff] }
  0x4d   :  { %v470_v41 = vadd.f32 %v687_v6, %v402_v31  ;;  %v403_v42 = vadd.f32 %v339_v29, %v207_v32  ;;  %v208_v43 = vadd.f32 %v673_v2, %v140_v33  ;;  %v142_v44 = vmul.f32 %v668_v1, %v74_v30  ;;  %v281_v29 = vld [vmem:[%s1500_s3 + $0x1d0] sm:$0xff] }
  0x4e   :  { %596 = vst [vmem:[%s1503_s6 + $0x168] sm:$0xff] %v532_v37  ;;  %v533_v47 = vmax.f32 %v469_v38, 0.0  ;;  %v209_v48 = vadd.f32 %v673_v2, %v141_v39  ;;  %v342_v49 = vmul.f32 %v682_v5, %v274_v35  ;;  %v143_v50 = vmul.f32 %v668_v1, %v75_v36  ;;  %v623_v36 = vld [vmem:[%s1498_s1] ss:$0 sm:$0xff]  ;;  %v282_v39 = vld [vmem:[%s1500_s3 + $0x1d8] sm:$0xff] }
  0x4f   :  { %v534_v52 = vmax.f32 %v470_v41, 0.0  ;;  %v471_v53 = vadd.f32 %v687_v6, %v403_v42  ;;  %v404_v54 = vadd.f32 %v340_v34, %v208_v43  ;;  %v210_v55 = vadd.f32 %v673_v2, %v142_v44  ;;  %v625_v44 = vld [vmem:[%s1502_s5] ss:$0 sm:$0xff] }
  0x50   :  { %597 = vst [vmem:[%s1503_s6 + $0x170] sm:$0xff] %v533_v47  ;;  %v405_v57 = vadd.f32 %v341_v40, %v209_v48  ;;  %v211_v58 = vadd.f32 %v673_v2, %v143_v50  ;;  %v343_v59 = vmul.f32 %v682_v5, %v275_v45  ;;  %v144_v60 = vmul.f32 %v668_v1, %v76_v46  ;;  %v83_v40 = vld [vmem:[%s1497_s0 + $0x1e0] sm:$0xff]  ;;  %v84_v50 = vld [vmem:[%s1497_s0 + $0x1e8] sm:$0xff] }
  0x51   :  { %598 = vst [vmem:[%s1503_s6 + $0x178] sm:$0xff] %v534_v52  ;;  %v535_v63 = vmax.f32 %v471_v53, 0.0  ;;  %v472_v0 = vadd.f32 %v687_v6, %v404_v54  ;;  %v406_v3 = vadd.f32 %v342_v49, %v210_v55  ;;  %v344_v4 = vmul.f32 %v682_v5, %v276_v51  ;;  %v626_v47 = vld [vmem:[%s1499_s2] ss:$0 sm:$0xff]  ;;  %v284_v55 = vld [vmem:[%s1500_s3 + $0x1e8] sm:$0xff] }
  0x52   :  { %v473_v7 = vadd.f32 %v687_v6, %v405_v57  ;;  %v407_v8 = vadd.f32 %v343_v59, %v211_v58  ;;  %v212_v9 = vadd.f32 %v673_v2, %v144_v60  ;;  %v145_v10 = vmul.f32 %v668_v1, %v77_v56  ;;  %v85_v60 = vld [vmem:[%s1497_s0 + $0x1f0] sm:$0xff] }
  0x53   :  { %599 = vst [vmem:[%s1503_s6 + $0x180] sm:$0xff] %v535_v63  ;;  %v536_v13 = vmax.f32 %v472_v0, 0.0  ;;  %v474_v14 = vadd.f32 %v687_v6, %v406_v3  ;;  %v345_v15 = vmul.f32 %v682_v5, %v277_v61  ;;  %v146_v16 = vmul.f32 %v668_v1, %v78_v62  ;;  %v285_v3 = vld [vmem:[%s1500_s3 + $0x1f0] sm:$0xff] }
  0x54   :  { %v537_v18 = vmax.f32 %v473_v7, 0.0  ;;  %v475_v19 = vadd.f32 %v687_v6, %v407_v8  ;;  %v408_v20 = vadd.f32 %v344_v4, %v212_v9  ;;  %v213_v21 = vadd.f32 %v673_v2, %v145_v10  ;;  %v86_v4 = vld [vmem:[%s1497_s0 + $0x1f8] sm:$0xff] }
  0x55   :  { %600 = vst [vmem:[%s1503_s6 + $0x188] sm:$0xff] %v536_v13  ;;  %v538_v24 = vmax.f32 %v474_v14, 0.0  ;;  %v214_v25 = vadd.f32 %v673_v2, %v146_v16  ;;  %v346_v26 = vmul.f32 %v682_v5, %v278_v11  ;;  %v147_v27 = vmul.f32 %v668_v1, %v79_v12  ;;  %v82_v1 = vld [vmem:[%s1497_s0 + $0x1d8] sm:$0xff] }
  0x56   :  { %601 = vst [vmem:[%s1503_s6 + $0x190] sm:$0xff] %v537_v18  ;;  %v539_v30 = vmax.f32 %v475_v19, 0.0  ;;  %v476_v31 = vadd.f32 %v687_v6, %v408_v20  ;;  %v409_v32 = vadd.f32 %v345_v15, %v213_v21  ;;  %v347_v33 = vmul.f32 %v682_v5, %v279_v17  ;;  %v286_v15 = vld [vmem:[%s1500_s3 + $0x1f8] sm:$0xff] }
  0x57   :  { %602 = vst [vmem:[%s1503_s6 + $0x198] sm:$0xff] %v538_v24  ;;  %v410_v34 = vadd.f32 %v346_v26, %v214_v25  ;;  %v215_v35 = vadd.f32 %v673_v2, %v147_v27  ;;  %v148_v37 = vmul.f32 %v623_v36, %v80_v22  ;;  %v348_v38 = vmul.f32 %v682_v5, %v280_v23  ;;  %v624_v5 = vld [vmem:[%s1501_s4] ss:$0 sm:$0xff] }
  0x58   :  { %603 = vst [vmem:[%s1503_s6 + $0x1a0] sm:$0xff] %v539_v30  ;;  %v540_v2 = vmax.f32 %v476_v31, 0.0  ;;  %v477_v41 = vadd.f32 %v687_v6, %v409_v32  ;;  %v149_v42 = vmul.f32 %v623_v36, %v81_v28  ;;  %v349_v43 = vmul.f32 %v624_v5, %v281_v29  ;;  %v283_v6 = vld [vmem:[%s1500_s3 + $0x1e0] sm:$0xff] }
  0x59   :  { %v478_v45 = vadd.f32 %v625_v44, %v410_v34  ;;  %v411_v46 = vadd.f32 %v347_v33, %v215_v35  ;;  %v216_v48 = vadd.f32 %v626_v47, %v148_v37  ;;  %v150_v49 = vmul.f32 %v623_v36, %v82_v1 }
  0x5a   :  { %604 = vst [vmem:[%s1503_s6 + $0x1a8] sm:$0xff] %v540_v2  ;;  %v541_v51 = vmax.f32 %v477_v41, 0.0  ;;  %v217_v52 = vadd.f32 %v626_v47, %v149_v42  ;;  %v350_v53 = vmul.f32 %v624_v5, %v282_v39  ;;  %v151_v54 = vmul.f32 %v623_v36, %v83_v40 }
  0x5b   :  { %v542_v56 = vmax.f32 %v478_v45, 0.0  ;;  %v479_v57 = vadd.f32 %v625_v44, %v411_v46  ;;  %v412_v58 = vadd.f32 %v348_v38, %v216_v48  ;;  %v218_v59 = vadd.f32 %v626_v47, %v150_v49 }
  0x5c   :  { %605 = vst [vmem:[%s1503_s6 + $0x1b0] sm:$0xff] %v541_v51  ;;  %v413_v61 = vadd.f32 %v349_v43, %v217_v52  ;;  %v219_v62 = vadd.f32 %v626_v47, %v151_v54  ;;  %v351_v63 = vmul.f32 %v624_v5, %v283_v6  ;;  %v152_v0 = vmul.f32 %v623_v36, %v84_v50 }
  0x5d   :  { %606 = vst [vmem:[%s1503_s6 + $0x1b8] sm:$0xff] %v542_v56  ;;  %v543_v7 = vmax.f32 %v479_v57, 0.0  ;;  %v480_v8 = vadd.f32 %v625_v44, %v412_v58  ;;  %v414_v9 = vadd.f32 %v350_v53, %v218_v59  ;;  %v352_v10 = vmul.f32 %v624_v5, %v284_v55 }
  0x5e   :  { %v481_v11 = vadd.f32 %v625_v44, %v413_v61  ;;  %v415_v12 = vadd.f32 %v351_v63, %v219_v62  ;;  %v220_v13 = vadd.f32 %v626_v47, %v152_v0  ;;  %v153_v14 = vmul.f32 %v623_v36, %v85_v60 }
  0x5f   :  { %607 = vst [vmem:[%s1503_s6 + $0x1c0] sm:$0xff] %v543_v7  ;;  %v544_v16 = vmax.f32 %v480_v8, 0.0  ;;  %v482_v17 = vadd.f32 %v625_v44, %v414_v9  ;;  %v353_v18 = vmul.f32 %v624_v5, %v285_v3  ;;  %v154_v19 = vmul.f32 %v623_v36, %v86_v4 }
  0x60   :  { %v545_v20 = vmax.f32 %v481_v11, 0.0  ;;  %v483_v21 = vadd.f32 %v625_v44, %v415_v12  ;;  %v416_v22 = vadd.f32 %v352_v10, %v220_v13  ;;  %v221_v23 = vadd.f32 %v626_v47, %v153_v14 }
  0x61   :  { %608 = vst [vmem:[%s1503_s6 + $0x1c8] sm:$0xff] %v544_v16  ;;  %v546_v24 = vmax.f32 %v482_v17, 0.0  ;;  %v222_v25 = vadd.f32 %v626_v47, %v154_v19  ;;  %v354_v26 = vmul.f32 %v624_v5, %v286_v15 }
  0x62   :  { %609 = vst [vmem:[%s1503_s6 + $0x1d0] sm:$0xff] %v545_v20  ;;  %v547_v27 = vmax.f32 %v483_v21, 0.0  ;;  %v484_v28 = vadd.f32 %v625_v44, %v416_v22  ;;  %v417_v29 = vadd.f32 %v353_v18, %v221_v23 }
  0x63   :  { %610 = vst [vmem:[%s1503_s6 + $0x1d8] sm:$0xff] %v546_v24  ;;  %v418_v30 = vadd.f32 %v354_v26, %v222_v25 }
  0x64   :  { %611 = vst [vmem:[%s1503_s6 + $0x1e0] sm:$0xff] %v547_v27  ;;  %v548_v31 = vmax.f32 %v484_v28, 0.0  ;;  %v485_v32 = vadd.f32 %v625_v44, %v417_v29 }
  0x65   :  { %v486_v33 = vadd.f32 %v625_v44, %v418_v30 }
  0x66   :  { %612 = vst [vmem:[%s1503_s6 + $0x1e8] sm:$0xff] %v548_v31  ;;  %v549_v1 = vmax.f32 %v485_v32, 0.0 }
  0x67   :  { %v550_v34 = vmax.f32 %v486_v33, 0.0 }
  0x68   :  { %613 = vst [vmem:[%s1503_s6 + $0x1f0] sm:$0xff] %v549_v1 }
  0x69   :  { %614 = vst [vmem:[%s1503_s6 + $0x1f8] sm:$0xff] %v550_v34 }

// kernel: custom_residual_block.4
= control target key start
LH: loop header
LB: loop body
LE: loop exit
PB: predicated region body
PF: predicated region fallthrough
CT: control target
= control target key end

     0   :  { %s6687_s15 = smov 0   ;;  %s6689_s16 = smov 0   ;;  %s8126_s0 = inlined_call_operand.vmem [shape: bf16[2,340,128], index: 0, kind: input, shape index: {}]   ;;  %s8127_s1 = inlined_call_operand.vmem [shape: bf16[9,128,128], index: 1, kind: input, shape index: {}]   ;;  %s8128_s2 = inlined_call_operand.vmem [shape: f32[288,1], index: 2, kind: input, shape index: {}]   ;;  %s8129_s3 = inlined_call_operand.vmem [shape: f32[576,128], index: 3, kind: output, shape index: {0}]   ;;  %s8130_s4 = inlined_call_operand.vmem [shape: f32[2,128], index: 4, kind: output, shape index: {1}]  }
   0x1   :  { %s6691_s17 = smov 0  }
   0x2 LB: > { %s24_s18 = sadd.s32 1, %s6654_s16  ;;  %p5276_p0 = scmp.ge.s32.totalorder %s6658_s17, 1  ;;  %s6658_s17 = sphi %s6691_s17, %s15_s17   ;;  %s6654_s16 = sphi %s6689_s16, %s8132_s16   ;;  %s6650_s15 = sphi %s6687_s15, %s8131_s15  }
   0x3   : > { %p25_p1 = scmp.ge.s32.totalorder %s24_s18, 2  ;;  %p188_p2 = scmp.lt.s32.totalorder %s6658_s17, 3 }
   0x5   : > { %s8134_s18 = smov (%p25_p1, %s24_s18), 0  ;;  %p189_p3 = pnand %p5276_p0, %p188_p2 }
   0x6   : > { %p225_p4 = scmp.lt.s32.totalorder (!%p189_p3), %s6650_s15, 1  ;;  %s234_s19 = smul.u32 (!%p189_p3), 36, %s6650_s15 }
   0x7   : > { %192 = sbr.rel (%p189_p3) target bundleno = 860 (0x35c), region = 32  ;;  %p5279_p6 = scmp.ne.s32.totalorder (!%p189_p3), %s6650_s15, 0 }
   0x8   : > { %p235_p5 = scmp.lt.s32.totalorder (!%p189_p3), %s234_s19, 71 }
   0xc   : > { %s226_s20 = scalar_select %p225_p4, %s6650_s15, 1 }
   0xd   : > { %s8136_s19 = smov (!%p235_p5, %s234_s19), 71  ;;  %250 = sbr.rel (%p5279_p6) target bundleno = 20 (0x14), region = 36 }
   0xe   : > { %s6605_s21 = smul.u32 172, %s226_s20  ;;  %s5278_s25 = sshll.u32 %s8136_s19, 3 }
   0xf   : > { %s6713_s28 = scalar_lea.vmem %s8129_s3, %s5278_s25 }
  0x10   : > { %s6708_s24 = scalar_lea.vmem %s8126_s0, %s6605_s21 }
  0x12   : > { %v6660_v0 = vmov 0.0  }
  0x13   : > { %251 = vst [vmem:[%s8130_s4] sm:$0x3] %v6660_v0 }
  0x14 PF: > { %v6372_v1 = vld [vmem:[%s8127_s1 + $0x38] sm:$0xff]  ;;  %v6371_v2 = vld [vmem:[%s8127_s1 + $0x30] sm:$0xff]  ;;  %v6370_v3 = vld [vmem:[%s8127_s1 + $0x28] sm:$0xff]  ;;  %vm1455_vm0 = vcmask 1046528   ;;  %vm886_vm1 = vsmask.f32 7424 }
  0x15   : > { %6581 = vmatpush.bf16.msra.mxu1 %v6372_v1  ;;  %6582 = vmatpush.bf16.msra.mxu2 %v6372_v1  ;;  %v6369_v4 = vld [vmem:[%s8127_s1 + $0x20] sm:$0xff]  ;;  %v6368_v5 = vld [vmem:[%s8127_s1 + $0x18] sm:$0xff]  ;;  %v6367_v6 = vld [vmem:[%s8127_s1 + $0x10] sm:$0xff]  ;;  %vm2370_vm2 = vsmask.f32 6400  ;;  %vm2961_vm4 = vcmask 1045504  }
  0x16   : > { %532 = vmatpush.bf16.msra.mxu0 %v6372_v1  ;;  %6583 = vmatpush.bf16.msra.mxu3 %v6372_v1  ;;  %v6366_v7 = vld [vmem:[%s8127_s1 + $0x8] sm:$0xff]  ;;  %v6365_v8 = vld [vmem:[%s8127_s1] sm:$0xff]  ;;  %v6398_v9 = vld [vmem:[%s8127_s1 + $0x78] sm:$0xff]  ;;  %vm3876_vm3 = vsmask.f32 5376  ;;  %vm4467_vm5 = vcmask 1044480  }
  0x17   : > { %v6424_v10 = vld [vmem:[%s8127_s1 + $0xb8] sm:$0xff]  ;;  %v6352_v11 = vld [vmem:[%s6708_s24 + $0x28] sm:$0xff]  ;;  %v6357_v12 = vld [vmem:[%s6708_s24 + $0x50] sm:$0xff]  ;;  %vm5149_vm6 = vcmask 1040384  }
  0x18   : > { %v6476_v13 = vld [vmem:[%s8127_s1 + $0x138] sm:$0xff]  ;;  %v6397_v14 = vld [vmem:[%s8127_s1 + $0x70] sm:$0xff]  ;;  %v6347_v16 = vld [vmem:[%s6708_s24] sm:$0xff] }
  0x19   : > { %6584 = vmatpush.bf16.msra.mxu1 %v6371_v2  ;;  %6585 = vmatpush.bf16.msra.mxu2 %v6371_v2  ;;  %v6423_v15 = vld [vmem:[%s8127_s1 + $0xb0] sm:$0xff]  ;;  %v6362_v17 = vld [vmem:[%s6708_s24 + $0x78] sm:$0xff]  ;;  %v6396_v20 = vld [vmem:[%s8127_s1 + $0x68] sm:$0xff] }
  0x1a   : > { %533 = vmatpush.bf16.msra.mxu0 %v6371_v2  ;;  %6586 = vmatpush.bf16.msra.mxu3 %v6371_v2  ;;  %v6475_v18 = vld [vmem:[%s8127_s1 + $0x130] sm:$0xff]  ;;  %v6450_v19 = vld [vmem:[%s8127_s1 + $0xf8] sm:$0xff]  ;;  %v6422_v21 = vld [vmem:[%s8127_s1 + $0xa8] sm:$0xff] }
  0x1b   : > { %v6395_v22 = vld [vmem:[%s8127_s1 + $0x60] sm:$0xff]  ;;  %v6394_v24 = vld [vmem:[%s8127_s1 + $0x58] sm:$0xff]  ;;  %v6353_v26 = vld [vmem:[%s6708_s24 + $0x30] sm:$0xff] }
  0x1c   : > { %v6421_v23 = vld [vmem:[%s8127_s1 + $0xa0] sm:$0xff]  ;;  %v6420_v25 = vld [vmem:[%s8127_s1 + $0x98] sm:$0xff]  ;;  %v6449_v28 = vld [vmem:[%s8127_s1 + $0xf0] sm:$0xff] }
  0x1d   : > { %6587 = vmatpush.bf16.msra.mxu1 %v6370_v3  ;;  %6588 = vmatpush.bf16.msra.mxu2 %v6370_v3  ;;  %v6358_v27 = vld [vmem:[%s6708_s24 + $0x58] sm:$0xff]  ;;  %v6348_v29 = vld [vmem:[%s6708_s24 + $0x8] sm:$0xff]  ;;  %v6363_v30 = vld [vmem:[%s6708_s24 + $0x80] sm:$0xff] }
  0x1e   : > { %534 = vmatpush.bf16.msra.mxu0 %v6370_v3  ;;  %6589 = vmatpush.bf16.msra.mxu3 %v6370_v3  ;;  %v6393_v31 = vld [vmem:[%s8127_s1 + $0x50] sm:$0xff]  ;;  %v6474_v32 = vld [vmem:[%s8127_s1 + $0x128] sm:$0xff]  ;;  %v6473_v36 = vld [vmem:[%s8127_s1 + $0x120] sm:$0xff] }
  0x1f   : > { %v6419_v33 = vld [vmem:[%s8127_s1 + $0x90] sm:$0xff]  ;;  %v6448_v34 = vld [vmem:[%s8127_s1 + $0xe8] sm:$0xff]  ;;  %v6447_v37 = vld [vmem:[%s8127_s1 + $0xe0] sm:$0xff] }
  0x20   : > { %v6392_v35 = vld [vmem:[%s8127_s1 + $0x48] sm:$0xff]  ;;  %v6446_v38 = vld [vmem:[%s8127_s1 + $0xd8] sm:$0xff]  ;;  %v6359_v40 = vld [vmem:[%s6708_s24 + $0x60] sm:$0xff] }
  0x21   : > { %6590 = vmatpush.bf16.msra.mxu1 %v6369_v4  ;;  %6591 = vmatpush.bf16.msra.mxu2 %v6369_v4  ;;  %v6354_v39 = vld [vmem:[%s6708_s24 + $0x38] sm:$0xff]  ;;  %v6445_v41 = vld [vmem:[%s8127_s1 + $0xd0] sm:$0xff]  ;;  %v6364_v43 = vld [vmem:[%s6708_s24 + $0x88] sm:$0xff] }
  0x22   : > { %535 = vmatpush.bf16.msra.mxu0 %v6369_v4  ;;  %6592 = vmatpush.bf16.msra.mxu3 %v6369_v4  ;;  %v6349_v42 = vld [vmem:[%s6708_s24 + $0x10] sm:$0xff]  ;;  %v6418_v44 = vld [vmem:[%s8127_s1 + $0x88] sm:$0xff]  ;;  %v6391_v45 = vld [vmem:[%s8127_s1 + $0x40] sm:$0xff] }
  0x23   : > { %v6472_v46 = vld [vmem:[%s8127_s1 + $0x118] sm:$0xff]  ;;  %v6444_v47 = vld [vmem:[%s8127_s1 + $0xc8] sm:$0xff]  ;;  %v6417_v48 = vld [vmem:[%s8127_s1 + $0x80] sm:$0xff] }
  0x24   : > { %v5642_v49 = vld [vmem:[%s6708_s24 + $0x8] sm:$0xe]  ;;  %v6425_v50 = vld [vmem:[%s6708_s24 + $0x8] sm:$0xf0]  ;;  %v6471_v51 = vld [vmem:[%s8127_s1 + $0x110] sm:$0xff] }
  0x25   : > { %6593 = vmatpush.bf16.msra.mxu1 %v6368_v5  ;;  %6594 = vmatpush.bf16.msra.mxu2 %v6368_v5  ;;  %v6443_v52 = vld [vmem:[%s8127_s1 + $0xc0] sm:$0xff]  ;;  %v6426_v53 = vld [vmem:[%s6708_s24 + $0x10] sm:$0xff]  ;;  %v5643_v54 = vor.u32 %v6425_v50, %v5642_v49  ;;  %v6470_v55 = vld [vmem:[%s8127_s1 + $0x108] sm:$0xff] }
  0x26   : > { %536 = vmatpush.bf16.msra.mxu0 %v6368_v5  ;;  %6595 = vmatpush.bf16.msra.mxu3 %v6368_v5  ;;  %v6355_v56 = vld [vmem:[%s6708_s24 + $0x40] sm:$0xff]  ;;  %v6360_v57 = vld [vmem:[%s6708_s24 + $0x68] sm:$0xff]  ;;  %v1914_v59 = vrot.slane %v6426_v53, 1  ;;  %v6350_v61 = vld [vmem:[%s6708_s24 + $0x18] sm:$0xff] }
  0x27   : > { %v1913_v58 = vrot.slane %v5643_v54, 1  ;;  %v6469_v60 = vld [vmem:[%s8127_s1 + $0x100] sm:$0xff]  ;;  %v6502_v62 = vld [vmem:[%s8127_s1 + $0x178] sm:$0xff]  ;;  %v6356_v3 = vld [vmem:[%s6708_s24 + $0x48] sm:$0xff] }
  0x28   : > { %v6528_v63 = vld [vmem:[%s8127_s1 + $0x1b8] sm:$0xff]  ;;  %v6361_v4 = vld [vmem:[%s6708_s24 + $0x70] sm:$0xff]  ;;  %v6429_v54 = vld [vmem:[%s6708_s24 + $0x28] sm:$0xff] }
  0x29   : > { %6596 = vmatpush.bf16.msra.mxu1 %v6367_v6  ;;  %6597 = vmatpush.bf16.msra.mxu2 %v6367_v6  ;;  %v1915_v0 = vsel %vm1455_vm0, %v1913_v58, %v1914_v59  ;;  %v6554_v1 = vld [vmem:[%s8127_s1 + $0x1f8] sm:$0xff] }
  0x2a   : > { %537 = vmatpush.bf16.msra.mxu0 %v6367_v6  ;;  %6598 = vmatpush.bf16.msra.mxu3 %v6367_v6  ;;  %v6427_v2 = vld [vmem:[%s6708_s24 + $0x18] sm:$0xff]  ;;  %v6373_v6 = vld [vmem:[%s6708_s24] sm:$0xff] }
  0x2b   : > { %v1916_v5 = vrot.slane %v6427_v2, 1  ;;  %v6376_v2 = vld [vmem:[%s6708_s24 + $0x18] sm:$0xff] }
  0x2d   : > { %6599 = vmatpush.bf16.msra.mxu1 %v6366_v7  ;;  %6600 = vmatpush.bf16.msra.mxu2 %v6366_v7 }
  0x2e   : > { %538 = vmatpush.bf16.msra.mxu0 %v6366_v7  ;;  %6601 = vmatpush.bf16.msra.mxu3 %v6366_v7  ;;  %v5762_v7 = vld [vmem:[%s6708_s24 + $0x8] sm:$0xe] }
  0x31   : > { %6602 = vmatpush.bf16.msra.mxu1 %v6365_v8  ;;  %6603 = vmatpush.bf16.msra.mxu2 %v6365_v8 }
  0x32   : > { %539 = vmatpush.bf16.msra.mxu0 %v6365_v8  ;;  %6604 = vmatpush.bf16.msra.mxu3 %v6365_v8  ;;  %v6451_v8 = vld [vmem:[%s6708_s24 + $0x8] sm:$0xf0] }
  0x34   : > { %565 = vmatmul.bf16.vlgmr.msra.gmra.mxu1 %v6352_v11  ;;  %590 = vmatmul.bf16.vlgmr.msra.gmra.mxu2 %v6357_v12  ;;  %v6452_v11 = vld [vmem:[%s6708_s24 + $0x10] sm:$0xff]  ;;  %v5763_v12 = vor.u32 %v6451_v8, %v5762_v7  ;;  %v6402_v7 = vld [vmem:[%s6708_s24 + $0x18] sm:$0xff] }
  0x35   : > { %1101 = vmatpush.bf16.msrb.mxu1 %v6398_v9  ;;  %1559 = vmatpush.bf16.msrb.mxu2 %v6424_v10  ;;  %v6351_v9 = vld [vmem:[%s6708_s24 + $0x20] sm:$0xff]  ;;  %v1917_v10 = vsel %vm1455_vm0, %v1914_v59, %v1916_v5  ;;  %v1920_v59 = vrot.slane %v6429_v54, 1 }
  0x36   : > { %2607 = vmatpush.bf16.msrb.mxu0 %v6476_v13  ;;  %615 = vmatmul.bf16.vlgmr.msra.gmra.mxu3 %v6362_v17  ;;  %v6580_v13 = vld [vmem:[%s8127_s1 + $0x238] sm:$0xff]  ;;  %v6399_v17 = vld [vmem:[%s6708_s24] sm:$0xf0] }
  0x37   : > { %540 = vmatmul.bf16.vlgmr.msra.gmra.mxu0 %v6347_v16  ;;  %2016 = vmatpush.bf16.msrb.mxu3 %v6450_v19  ;;  %v5522_v16 = vld [vmem:[%s6708_s24] sm:$0xe]  ;;  %v2375_v19 = vshll.u32 %v5763_v12, 16 }
  0x39   : > { %1102 = vmatpush.bf16.msrb.mxu1 %v6397_v14  ;;  %1560 = vmatpush.bf16.msrb.mxu2 %v6423_v15  ;;  %v6374_v14 = vld [vmem:[%s6708_s24 + $0x8] sm:$0xff]  ;;  %v890_v15 = vshll.u32 %v6373_v6, 16 }
  0x3a   : > { %2608 = vmatpush.bf16.msrb.mxu0 %v6475_v18  ;;  %v2372_v18 = vshrl.u32 %v5763_v12, 16  ;;  %v899_v49 = vshrl.u32 %v6374_v14, 16 }
  0x3b   : > { %2017 = vmatpush.bf16.msrb.mxu3 %v6449_v28  ;;  %v2377_v28 = vrot.slane %v2375_v19, 2  ;;  %v6579_v19 = vld [vmem:[%s8127_s1 + $0x230] sm:$0xff] }
  0x3d   : > { %1103 = vmatpush.bf16.msrb.mxu1 %v6396_v20  ;;  %1561 = vmatpush.bf16.msrb.mxu2 %v6422_v21  ;;  %v2380_v20 = vshrl.u32 %v6452_v11, 16  ;;  %v2383_v21 = vshll.u32 %v6452_v11, 16 }
  0x3e   : > { %2609 = vmatpush.bf16.msrb.mxu0 %v6474_v32 }
  0x3f   : > { %2018 = vmatpush.bf16.msrb.mxu3 %v6448_v34 }
  0x41   : > { %1104 = vmatpush.bf16.msrb.mxu1 %v6395_v22  ;;  %1562 = vmatpush.bf16.msrb.mxu2 %v6421_v23  ;;  %v888_v22 = vshrl.u32 %v6373_v6, 16  ;;  %v892_v23 = vrot.slane %v890_v15, 1  ;;  %v911_v6 = vshll.u32 %v6376_v2, 16 }
  0x42   : > { %2610 = vmatpush.bf16.msrb.mxu0 %v6473_v36 }
  0x43   : > { %2019 = vmatpush.bf16.msrb.mxu3 %v6447_v37  ;;  %v893_v32 = vor.u32 %v892_v23, %v888_v22  ;;  %v913_v12 = vrot.slane %v911_v6, 1  ;;  %v6377_v22 = vld [vmem:[%s6708_s24 + $0x20] sm:$0xff] }
  0x44   : > { %570 = vmatmul.bf16.gmra.mxu1 %v6353_v26  ;;  %595 = vmatmul.bf16.gmra.mxu2 %v6358_v27  ;;  %v5523_v26 = vor.u32 %v6399_v17, %v5522_v16  ;;  %v2374_v27 = vrot.slane %v2372_v18, 1 }
  0x45   : > { %1105 = vmatpush.bf16.msrb.mxu1 %v6394_v24  ;;  %1563 = vmatpush.bf16.msrb.mxu2 %v6420_v25  ;;  %v895_v24 = vshll.u32 %v6374_v14, 16  ;;  %v6400_v25 = vld [vmem:[%s6708_s24 + $0x8] sm:$0xff] }
  0x46   : > { %620 = vmatmul.bf16.gmra.mxu3 %v6363_v30  ;;  %2611 = vmatpush.bf16.msrb.mxu0 %v6472_v46  ;;  %v2385_v30 = vrot.slane %v2383_v21, 2  ;;  %v1456_v34 = vrot.slane %v5523_v26, 1  ;;  %v2378_v36 = vor.u32 %v2377_v28, %v2374_v27  ;;  %v6375_v46 = vld [vmem:[%s6708_s24 + $0x10] sm:$0xff]  ;;  %v6455_v21 = vld [vmem:[%s6708_s24 + $0x28] sm:$0xff]  ;;  %v919_v26 = vshll.u32 %v6377_v22, 16  ;;  %v6403_v27 = vld [vmem:[%s6708_s24 + $0x20] sm:$0xff] }
  0x47   : > { %545 = vmatmul.bf16.gmra.mxu0 %v6348_v29  ;;  %2020 = vmatpush.bf16.msrb.mxu3 %v6446_v38  ;;  %v2382_v29 = vrot.slane %v2380_v20, 1  ;;  %v903_v50 = vshll.u32 %v6375_v46, 16  ;;  %v2407_v23 = vshrl.u32 %v6455_v21, 16 }
  0x49   : > { %1106 = vmatpush.bf16.msrb.mxu1 %v6393_v31  ;;  %1564 = vmatpush.bf16.msrb.mxu2 %v6419_v33  ;;  %v6428_v31 = vld [vmem:[%s6708_s24 + $0x20] sm:$0xff]  ;;  %v897_v33 = vrot.slane %v895_v24, 1  ;;  %v2386_v37 = vor.u32 %v2385_v30, %v2382_v29  ;;  %v2410_v24 = vshll.u32 %v6455_v21, 16  ;;  %v2409_v28 = vrot.slane %v2407_v23, 1  ;;  %v6500_v30 = vld [vmem:[%s8127_s1 + $0x168] sm:$0xff] }
  0x4a   : > { %2612 = vmatpush.bf16.msrb.mxu0 %v6471_v51  ;;  %v1918_v38 = vrot.slane %v6428_v31, 1  ;;  %v6401_v51 = vld [vmem:[%s6708_s24 + $0x10] sm:$0xff]  ;;  %v6431_v31 = vld [vmem:[%s6708_s24 + $0x38] sm:$0xff]  ;;  %v6578_v21 = vld [vmem:[%s8127_s1 + $0x228] sm:$0xff] }
  0x4b   : > { %2021 = vmatpush.bf16.msrb.mxu3 %v6445_v41  ;;  %v2387_v41 = vsel %vm2370_vm2, %v2378_v36, %v2386_v37  ;;  %v2412_v29 = vrot.slane %v2410_v24, 2  ;;  %v1924_v36 = vrot.slane %v6431_v31, 1 }
  0x4d   : > { %1107 = vmatpush.bf16.msrb.mxu1 %v6392_v35  ;;  %1565 = vmatpush.bf16.msrb.mxu2 %v6418_v44  ;;  %v1457_v35 = vrot.slane %v6400_v25, 1  ;;  %v6453_v44 = vld [vmem:[%s6708_s24 + $0x18] sm:$0xff]  ;;  %v915_v25 = vshrl.u32 %v6376_v2, 16 }
  0x4e   : > { %2613 = vmatpush.bf16.msrb.mxu0 %v6470_v55  ;;  %v901_v55 = vor.u32 %v899_v49, %v897_v33 }
  0x4f   : > { %2022 = vmatpush.bf16.msrb.mxu3 %v6444_v47  ;;  %v2389_v47 = vshrl.u32 %v6453_v44, 16 }
  0x51   : > { %1108 = vmatpush.bf16.msrb.mxu1 %v6391_v45  ;;  %1566 = vmatpush.bf16.msrb.mxu2 %v6417_v48  ;;  %v6527_v45 = vld [vmem:[%s8127_s1 + $0x1b0] sm:$0xff]  ;;  %v2392_v48 = vshll.u32 %v6453_v44, 16 }
  0x52   : > { %2614 = vmatpush.bf16.msrb.mxu0 %v6469_v60  ;;  %v6456_v44 = vld [vmem:[%s6708_s24 + $0x30] sm:$0xff] }
  0x53   : > { %2023 = vmatpush.bf16.msrb.mxu3 %v6443_v52  ;;  %v2391_v52 = vrot.slane %v2389_v47, 1  ;;  %v2394_v53 = vrot.slane %v2392_v48, 2  ;;  %v2416_v47 = vshrl.u32 %v6456_v44, 16  ;;  %v2419_v48 = vshll.u32 %v6456_v44, 16 }
  0x54   : > { %575 = vmatmul.bf16.gmra.mxu1 %v6354_v39  ;;  %600 = vmatmul.bf16.gmra.mxu2 %v6359_v40  ;;  %v898_v39 = vsel %vm886_vm1, %v893_v32, %v897_v33  ;;  %v1458_v40 = vsel %vm1455_vm0, %v1456_v34, %v1457_v35  ;;  %v917_v32 = vor.u32 %v915_v25, %v913_v12  ;;  %v921_v33 = vrot.slane %v919_v26, 1 }
  0x55   : > { %3065 = vmatpush.bf16.msra.mxu1 %v6502_v62  ;;  %3522 = vmatpush.bf16.msra.mxu2 %v6528_v63  ;;  %v2395_v58 = vor.u32 %v2394_v53, %v2391_v52  ;;  %v6553_v63 = vld [vmem:[%s8127_s1 + $0x1f0] sm:$0xff]  ;;  %v1463_v34 = vrot.slane %v6403_v27, 1  ;;  %v6404_v52 = vld [vmem:[%s6708_s24 + $0x28] sm:$0xff] }
  0x56   : > { %625 = vmatmul.bf16.gmra.mxu3 %v6364_v43  ;;  %4571 = vmatpush.bf16.msra.mxu0 %v6580_v13  ;;  %v1919_v43 = vsel %vm1455_vm0, %v1916_v5, %v1918_v38  ;;  %v907_v5 = vshrl.u32 %v6375_v46, 16  ;;  %v1461_v13 = vrot.slane %v6402_v7, 1 }
  0x57   : > { %550 = vmatmul.bf16.gmra.mxu0 %v6349_v42  ;;  %4113 = vmatpush.bf16.msra.mxu3 %v6554_v1  ;;  %v6501_v42 = vld [vmem:[%s8127_s1 + $0x170] sm:$0xff]  ;;  %v2396_v62 = vsel %vm2370_vm2, %v2386_v37, %v2395_v58  ;;  %v6454_v1 = vld [vmem:[%s6708_s24 + $0x20] sm:$0xff] }
  0x59   : > { %3066 = vmatpush.bf16.msra.mxu1 %v6501_v42  ;;  %3523 = vmatpush.bf16.msra.mxu2 %v6527_v45  ;;  %v6378_v45 = vld [vmem:[%s6708_s24 + $0x28] sm:$0xff] }
  0x5a   : > { %4572 = vmatpush.bf16.msra.mxu0 %v6579_v19 }
  0x5b   : > { %4114 = vmatpush.bf16.msra.mxu3 %v6553_v63 }
  0x5d   : > { %3067 = vmatpush.bf16.msra.mxu1 %v6500_v30 }
  0x5e   : > { %4573 = vmatpush.bf16.msra.mxu0 %v6578_v21 }
  0x64   : > { %580 = vmatmul.bf16.gmra.mxu1 %v6355_v56  ;;  %605 = vmatmul.bf16.gmra.mxu2 %v6360_v57  ;;  %v905_v56 = vrot.slane %v903_v50, 1  ;;  %v1459_v57 = vrot.slane %v6401_v51, 1  ;;  %v923_v50 = vshrl.u32 %v6377_v22, 16  ;;  %v927_v51 = vshll.u32 %v6378_v45, 16  ;;  %v6969_v22 = vld [vmem:[%s6708_s24 + $0x48] sm:$0xff] }
  0x66   : > { %2024 = vmatmul.bf16.vlgmr.msrb.gmra.mxu3 %v1915_v0  ;;  %v906_v60 = vsel %vm886_vm1, %v901_v55, %v905_v56  ;;  %v1921_v0 = vsel %vm1455_vm0, %v1918_v38, %v1920_v59  ;;  %v909_v11 = vor.u32 %v907_v5, %v905_v56  ;;  %v1462_v17 = vsel %vm1455_vm0, %v1459_v57, %v1461_v13 }
  0x67   : > { %555 = vmatmul.bf16.gmra.mxu0 %v6350_v61  ;;  %v1460_v61 = vsel %vm1455_vm0, %v1457_v35, %v1459_v57  ;;  %v2413_v35 = vor.u32 %v2412_v29, %v2409_v28  ;;  %v922_v38 = vsel %vm886_vm1, %v917_v32, %v921_v33  ;;  %v2418_v55 = vrot.slane %v2416_v47, 1  ;;  %v6552_v57 = vld [vmem:[%s8127_s1 + $0x1e8] sm:$0xff]  ;;  %v6499_v32 = vld [vmem:[%s8127_s1 + $0x160] sm:$0xff]  ;;  %v6406_v47 = vld [vmem:[%s6708_s24 + $0x38] sm:$0xff] }
  0x68   : > { %v914_v16 = vsel %vm886_vm1, %v909_v11, %v913_v12  ;;  %v2421_v56 = vrot.slane %v2419_v48, 2  ;;  %4115 = vmatpush.bf16.msra.mxu3 %v6552_v57  ;;  %v1928_v28 = vrot.slane %v6969_v22, 1  ;;  %3068 = vmatpush.bf16.msra.mxu1 %v6499_v32  ;;  %v1469_v57 = vrot.slane %v6406_v47, 1 }
  0x6a   : > { %v2422_v63 = vor.u32 %v2421_v56, %v2418_v55 }
  0x6c   : > { %v2423_v6 = vsel %vm2370_vm2, %v2413_v35, %v2422_v63 }
  0x74   : > { %585 = vmatmul.bf16.gmra.mxu1 %v6356_v3  ;;  %610 = vmatmul.bf16.gmra.mxu2 %v6361_v4  ;;  %v2398_v3 = vshrl.u32 %v6454_v1, 16  ;;  %v2401_v4 = vshll.u32 %v6454_v1, 16 }
  0x76   : > { %2029 = vmatmul.bf16.gmra.mxu3 %v1917_v10  ;;  %v2400_v8 = vrot.slane %v2398_v3, 1  ;;  %v6430_v10 = vld [vmem:[%s6708_s24 + $0x30] sm:$0xff] }
  0x77   : > { %560 = vmatmul.bf16.gmra.mxu0 %v6351_v9  ;;  %v2403_v9 = vrot.slane %v2401_v4, 2  ;;  %v1922_v15 = vrot.slane %v6430_v10, 1 }
  0x79   : > { %v2404_v14 = vor.u32 %v2403_v9, %v2400_v8  ;;  %v1923_v20 = vsel %vm1455_vm0, %v1920_v59, %v1922_v15  ;;  %v925_v59 = vor.u32 %v923_v50, %v921_v33  ;;  %v6457_v8 = vld [vmem:[%s6708_s24 + $0x38] sm:$0xff]  ;;  %v6954_v9 = vld [vmem:[%s6708_s24 + $0x30] sm:$0xff] }
  0x7a   : > { %v2425_v11 = vshrl.u32 %v6457_v8, 16  ;;  %v2428_v12 = vshll.u32 %v6457_v8, 16 }
  0x7b   : > { %v2405_v18 = vsel %vm2370_vm2, %v2395_v58, %v2404_v14  ;;  %v2414_v42 = vsel %vm2370_vm2, %v2404_v14, %v2413_v35  ;;  %v6432_v58 = vld [vmem:[%s6708_s24 + $0x40] sm:$0xff]  ;;  %v931_v14 = vshrl.u32 %v6378_v45, 16  ;;  %v939_v45 = vshrl.u32 %v6954_v9, 16 }
  0x7c   : > { %v2427_v19 = vrot.slane %v2425_v11, 1 }
  0x84   : > { %1109 = vmatmul.bf16.vlgmr.msrb.gmra.mxu1 %v898_v39  ;;  %1567 = vmatmul.bf16.vlgmr.msrb.gmra.mxu2 %v1458_v40  ;;  %v1464_v39 = vsel %vm1455_vm0, %v1461_v13, %v1463_v34  ;;  %v6526_v40 = vld [vmem:[%s8127_s1 + $0x1a8] sm:$0xff] }
  0x85   : > { %3524 = vmatpush.bf16.msra.mxu2 %v6526_v40 }
  0x86   : > { %2034 = vmatmul.bf16.gmra.mxu3 %v1919_v43  ;;  %v1925_v43 = vsel %vm1455_vm0, %v1922_v15, %v1924_v36  ;;  %v935_v15 = vshll.u32 %v6954_v9, 16 }
  0x87   : > { %2615 = vmatmul.bf16.vlgmr.msrb.gmra.mxu0 %v2387_v41 }
  0x88   : > { %v937_v24 = vrot.slane %v935_v15, 1  ;;  %v6577_v15 = vld [vmem:[%s8127_s1 + $0x220] sm:$0xff] }
  0x89   : > { %4574 = vmatpush.bf16.msra.mxu0 %v6577_v15 }
  0x8a   : > { %v941_v55 = vor.u32 %v939_v45, %v937_v24 }
  0x94   : > { %1114 = vmatmul.bf16.gmra.mxu1 %v906_v60  ;;  %1572 = vmatmul.bf16.gmra.mxu2 %v1460_v61  ;;  %v929_v60 = vrot.slane %v927_v51, 1  ;;  %v1465_v61 = vrot.slane %v6404_v52, 1  ;;  %v6551_v52 = vld [vmem:[%s8127_s1 + $0x1e0] sm:$0xff] }
  0x95   : > { %4116 = vmatpush.bf16.msra.mxu3 %v6551_v52  ;;  %v6436_v52 = vld [vmem:[%s6708_s24 + $0x60] sm:$0xff] }
  0x96   : > { %2039 = vmatmul.bf16.gmra.mxu3 %v1921_v0  ;;  %v1926_v0 = vrot.slane %v6432_v58, 1  ;;  %v930_v2 = vsel %vm886_vm1, %v925_v59, %v929_v60  ;;  %v1466_v3 = vsel %vm1455_vm0, %v1463_v34, %v1465_v61  ;;  %v933_v23 = vor.u32 %v931_v14, %v929_v60 }
  0x97   : > { %2620 = vmatmul.bf16.gmra.mxu0 %v2396_v62 }
  0x98   : > { %v1927_v7 = vsel %vm1455_vm0, %v1924_v36, %v1926_v0  ;;  %v938_v30 = vsel %vm886_vm1, %v933_v23, %v937_v24  ;;  %v6525_v36 = vld [vmem:[%s8127_s1 + $0x1a0] sm:$0xff] }
  0x99   : > { %3525 = vmatpush.bf16.msra.mxu2 %v6525_v36  ;;  %v6460_v36 = vld [vmem:[%s6708_s24 + $0x50] sm:$0xff] }
  0xa4   : > { %1119 = vmatmul.bf16.gmra.mxu1 %v914_v16  ;;  %1577 = vmatmul.bf16.gmra.mxu2 %v1462_v17  ;;  %v6959_v16 = vld [vmem:[%s6708_s24 + $0x30] sm:$0xff] }
  0xa5   : > { %v1467_v25 = vrot.slane %v6959_v16, 1 }
  0xa6   : > { %2044 = vmatmul.bf16.gmra.mxu3 %v1923_v20  ;;  %v2430_v20 = vrot.slane %v2428_v12, 2 }
  0xa7   : > { %2625 = vmatmul.bf16.gmra.mxu0 %v2405_v18  ;;  %v1468_v31 = vsel %vm1455_vm0, %v1465_v61, %v1467_v25 }
  0xa8   : > { %v2431_v27 = vor.u32 %v2430_v20, %v2427_v19  ;;  %v6435_v20 = vld [vmem:[%s6708_s24 + $0x58] sm:$0xff] }
  0xaa   : > { %v2432_v35 = vsel %vm2370_vm2, %v2422_v63, %v2431_v27  ;;  %v1470_v63 = vsel %vm1455_vm0, %v1467_v25, %v1469_v57 }
  0xb1   : > { %v566_v37 = vpop.f32.mrf.mxu1 }
  0xb2   : > { %677 = vst [vmem:[%s6713_s28 + $0x50] sm:$0xff] %v566_v37  ;;  %v1929_v37 = vsel %vm1455_vm0, %v1926_v0, %v1928_v28 }
  0xb4   : > { %1124 = vmatmul.bf16.gmra.mxu1 %v922_v38  ;;  %1582 = vmatmul.bf16.gmra.mxu2 %v1464_v39  ;;  %v6928_v41 = vpop.f32.mrf.mxu0  ;;  %v6458_v38 = vld [vmem:[%s6708_s24 + $0x40] sm:$0xff]  ;;  %v6380_v39 = vld [vmem:[%s6708_s24 + $0x38] sm:$0xff] }
  0xb5   : > { %v947_v11 = vshrl.u32 %v6380_v39, 16 }
  0xb6   : > { %2049 = vmatmul.bf16.gmra.mxu3 %v1925_v43  ;;  %v2437_v43 = vshll.u32 %v6458_v38, 16 }
  0xb7   : > { %v591_v46 = vpop.f32.mrf.mxu2  ;;  %2630 = vmatmul.bf16.gmra.mxu0 %v2414_v42  ;;  %v2434_v42 = vshrl.u32 %v6458_v38, 16 }
  0xb8   : > { %687 = vst [vmem:[%s6713_s28 + $0xa0] sm:$0xff] %v591_v46  ;;  %v943_v46 = vshll.u32 %v6380_v39, 16  ;;  %v2439_v51 = vrot.slane %v2437_v43, 2  ;;  %v6524_v39 = vld [vmem:[%s8127_s1 + $0x198] sm:$0xff] }
  0xb9   : > { %v568_v49 = vpop.f32.mrf.mxu1  ;;  %v616_v53 = vpop.f32.mrf.mxu3  ;;  %v2436_v50 = vrot.slane %v2434_v42, 1  ;;  %v2455_v42 = vshll.u32 %v6460_v36, 16  ;;  %3526 = vmatpush.bf16.msra.mxu2 %v6524_v39 }
  0xba   : > { %678 = vst [vmem:[%s6713_s28 + $0x58] sm:$0xff] %v568_v49  ;;  %v945_v56 = vrot.slane %v943_v46, 1  ;;  %v6408_v46 = vld [vmem:[%s6708_s24 + $0x48] sm:$0xff] }
  0xbb   : > { %697 = vst [vmem:[%s6713_s28 + $0xf0] sm:$0xff] %v616_v53  ;;  %v6434_v53 = vld [vmem:[%s6708_s24 + $0x50] sm:$0xff]  ;;  %v2440_v59 = vor.u32 %v2439_v51, %v2436_v50  ;;  %v2457_v51 = vrot.slane %v2455_v42, 2 }
  0xbc   : > { %v6937_v54 = vpop.f32.mrf.mxu0  ;;  %v1930_v60 = vrot.slane %v6434_v53, 1  ;;  %v949_v21 = vor.u32 %v947_v11, %v945_v56 }
  0xbf   : > { %v593_v62 = vpop.f32.mrf.mxu2 }
  0xc0   : > { %688 = vst [vmem:[%s6713_s28 + $0xa8] sm:$0xff] %v593_v62  ;;  %v946_v62 = vsel %vm886_vm1, %v941_v55, %v945_v56  ;;  %v1473_v56 = vrot.slane %v6408_v46, 1  ;;  %v6462_v46 = vld [vmem:[%s6708_s24 + $0x60] sm:$0xff] }
  0xc1   : > { %v571_v1 = vpop.f32.mrf.mxu1  ;;  %v618_v4 = vpop.f32.mrf.mxu3 }
  0xc2   : > { %679 = vst [vmem:[%s6713_s28 + $0x60] sm:$0xff] %v571_v1 }
  0xc3   : > { %698 = vst [vmem:[%s6713_s28 + $0xf8] sm:$0xff] %v618_v4  ;;  %v6459_v4 = vld [vmem:[%s6708_s24 + $0x48] sm:$0xff] }
  0xc4   : > { %1129 = vmatmul.bf16.gmra.mxu1 %v930_v2  ;;  %1587 = vmatmul.bf16.gmra.mxu2 %v1466_v3  ;;  %v6948_v5 = vpop.f32.mrf.mxu0  ;;  %v2441_v2 = vsel %vm2370_vm2, %v2431_v27, %v2440_v59  ;;  %v1931_v3 = vsel %vm1455_vm0, %v1928_v28, %v1930_v60  ;;  %v2443_v8 = vshrl.u32 %v6459_v4, 16  ;;  %v2446_v9 = vshll.u32 %v6459_v4, 16 }
  0xc6   : > { %2054 = vmatmul.bf16.gmra.mxu3 %v1927_v7  ;;  %v2448_v19 = vrot.slane %v2446_v9, 2 }
  0xc7   : > { %v596_v10 = vpop.f32.mrf.mxu2  ;;  %2635 = vmatmul.bf16.gmra.mxu0 %v2423_v6  ;;  %v6381_v6 = vld [vmem:[%s6708_s24 + $0x40] sm:$0xff] }
  0xc8   : > { %689 = vst [vmem:[%s6713_s28 + $0xb0] sm:$0xff] %v596_v10  ;;  %v951_v12 = vshll.u32 %v6381_v6, 16 }
  0xc9   : > { %v573_v13 = vpop.f32.mrf.mxu1  ;;  %v621_v17 = vpop.f32.mrf.mxu3 }
  0xca   : > { %680 = vst [vmem:[%s6713_s28 + $0x68] sm:$0xff] %v573_v13  ;;  %v6407_v13 = vld [vmem:[%s6708_s24 + $0x40] sm:$0xff]  ;;  %v953_v22 = vrot.slane %v951_v12, 1 }
  0xcb   : > { %699 = vst [vmem:[%s6713_s28 + $0x100] sm:$0xff] %v621_v17  ;;  %v2445_v17 = vrot.slane %v2443_v8, 1  ;;  %v1471_v23 = vrot.slane %v6407_v13, 1 }
  0xcc   : > { %v6963_v18 = vpop.f32.mrf.mxu0  ;;  %v954_v28 = vsel %vm886_vm1, %v949_v21, %v953_v22 }
  0xcd   : > { %v2449_v25 = vor.u32 %v2448_v19, %v2445_v17  ;;  %v7067_v19 = vld [vmem:[%s6708_s24 + $0x50] sm:$0xff] }
  0xcf   : > { %v598_v26 = vpop.f32.mrf.mxu2  ;;  %v2450_v32 = vsel %vm2370_vm2, %v2440_v59, %v2449_v25  ;;  %v1934_v59 = vrot.slane %v6436_v52, 1 }
  0xd0   : > { %690 = vst [vmem:[%s6713_s28 + $0xb8] sm:$0xff] %v598_v26  ;;  %v1932_v26 = vrot.slane %v6435_v20, 1 }
  0xd1   : > { %v576_v29 = vpop.f32.mrf.mxu1  ;;  %v623_v33 = vpop.f32.mrf.mxu3 }
  0xd2   : > { %681 = vst [vmem:[%s6713_s28 + $0x70] sm:$0xff] %v576_v29  ;;  %v1472_v29 = vsel %vm1455_vm0, %v1469_v57, %v1471_v23  ;;  %v1935_v4 = vsel %vm1455_vm0, %v1932_v26, %v1934_v59 }
  0xd3   : > { %700 = vst [vmem:[%s6713_s28 + $0x108] sm:$0xff] %v623_v33  ;;  %v6498_v33 = vld [vmem:[%s8127_s1 + $0x158] sm:$0xff] }
  0xd4   : > { %1134 = vmatmul.bf16.gmra.mxu1 %v938_v30  ;;  %1592 = vmatmul.bf16.gmra.mxu2 %v1468_v31  ;;  %v6981_v34 = vpop.f32.mrf.mxu0 }
  0xd5   : > { %3069 = vmatpush.bf16.msra.mxu1 %v6498_v33 }
  0xd6   : > { %2059 = vmatmul.bf16.gmra.mxu3 %v1929_v37  ;;  %v6382_v37 = vld [vmem:[%s6708_s24 + $0x48] sm:$0xff] }
  0xd7   : > { %v601_v40 = vpop.f32.mrf.mxu2  ;;  %2640 = vmatmul.bf16.gmra.mxu0 %v2432_v35  ;;  %v1933_v35 = vsel %vm1455_vm0, %v1930_v60, %v1932_v26  ;;  %v959_v45 = vshll.u32 %v6382_v37, 16  ;;  %v963_v15 = vshrl.u32 %v6382_v37, 16 }
  0xd8   : > { %691 = vst [vmem:[%s6713_s28 + $0xc0] sm:$0xff] %v601_v40  ;;  %v2452_v40 = vshrl.u32 %v6460_v36, 16 }
  0xd9   : > { %v578_v44 = vpop.f32.mrf.mxu1  ;;  %v626_v48 = vpop.f32.mrf.mxu3  ;;  %v961_v55 = vrot.slane %v959_v45, 1 }
  0xda   : > { %682 = vst [vmem:[%s6713_s28 + $0x78] sm:$0xff] %v578_v44  ;;  %v955_v44 = vshrl.u32 %v6381_v6, 16  ;;  %v2454_v50 = vrot.slane %v2452_v40, 1  ;;  %v6461_v6 = vld [vmem:[%s6708_s24 + $0x58] sm:$0xff] }
  0xdb   : > { %701 = vst [vmem:[%s6713_s28 + $0x110] sm:$0xff] %v626_v48  ;;  %v2461_v11 = vshrl.u32 %v6461_v6, 16  ;;  %v2464_v12 = vshll.u32 %v6461_v6, 16  ;;  %v965_v26 = vor.u32 %v963_v15, %v961_v55  ;;  %v7110_v6 = vld [vmem:[%s6708_s24 + $0x70] sm:$0xff] }
  0xdc   : > { %v6995_v49 = vpop.f32.mrf.mxu0  ;;  %v957_v53 = vor.u32 %v955_v44, %v953_v22 }
  0xdf   : > { %v603_v58 = vpop.f32.mrf.mxu2 }
  0xe0   : > { %692 = vst [vmem:[%s6713_s28 + $0xc8] sm:$0xff] %v603_v58  ;;  %v2458_v58 = vor.u32 %v2457_v51, %v2454_v50  ;;  %v7091_v50 = vld [vmem:[%s6708_s24 + $0x58] sm:$0xff] }
  0xe1   : > { %v581_v61 = vpop.f32.mrf.mxu1  ;;  %v628_v0 = vpop.f32.mrf.mxu3 }
  0xe2   : > { %683 = vst [vmem:[%s6713_s28 + $0x80] sm:$0xff] %v581_v61  ;;  %v962_v61 = vsel %vm886_vm1, %v957_v53, %v961_v55  ;;  %v6497_v53 = vld [vmem:[%s8127_s1 + $0x150] sm:$0xff]  ;;  %v2470_v55 = vshrl.u32 %v6462_v46, 16 }
  0xe3   : > { %702 = vst [vmem:[%s6713_s28 + $0x118] sm:$0xff] %v628_v0  ;;  %3070 = vmatpush.bf16.msra.mxu1 %v6497_v53 }
  0xe4   : > { %1139 = vmatmul.bf16.gmra.mxu1 %v946_v62  ;;  %1597 = vmatmul.bf16.gmra.mxu2 %v1470_v63  ;;  %v7006_v1 = vpop.f32.mrf.mxu0  ;;  %v1474_v62 = vsel %vm1455_vm0, %v1471_v23, %v1473_v56  ;;  %v6550_v63 = vld [vmem:[%s8127_s1 + $0x1d8] sm:$0xff]  ;;  %v2463_v23 = vrot.slane %v2461_v11, 1 }
  0xe5   : > { %4117 = vmatpush.bf16.msra.mxu3 %v6550_v63 }
  0xe6   : > { %2064 = vmatmul.bf16.gmra.mxu3 %v1931_v3  ;;  %v2459_v3 = vsel %vm2370_vm2, %v2449_v25, %v2458_v58  ;;  %v7073_v25 = vld [vmem:[%s6708_s24 + $0x68] sm:$0xff] }
  0xe7   : > { %v606_v7 = vpop.f32.mrf.mxu2  ;;  %2645 = vmatmul.bf16.gmra.mxu0 %v2441_v2 }
  0xe8   : > { %693 = vst [vmem:[%s6713_s28 + $0xd0] sm:$0xff] %v606_v7  ;;  %v7062_v7 = vld [vmem:[%s6708_s24 + $0x50] sm:$0xff] }
  0xe9   : > { %v583_v10 = vpop.f32.mrf.mxu1  ;;  %v7015_v14 = vpop.f32.mrf.mxu3  ;;  %v967_v17 = vshll.u32 %v7062_v7, 16 }
  0xea   : > { %684 = vst [vmem:[%s6713_s28 + $0x88] sm:$0xff] %v583_v10 }
  0xec   : > { %v7021_v16 = vpop.f32.mrf.mxu0 }
  0xef   : > { %v608_v24 = vpop.f32.mrf.mxu2 }
  0xf0   : > { %694 = vst [vmem:[%s6713_s28 + $0xd8] sm:$0xff] %v608_v24  ;;  %v2466_v24 = vrot.slane %v2464_v12, 2 }
  0xf1   : > { %v586_v27 = vpop.f32.mrf.mxu1  ;;  %v7027_v30 = vpop.f32.mrf.mxu3 }
  0xf2   : > { %685 = vst [vmem:[%s6713_s28 + $0x90] sm:$0xff] %v586_v27  ;;  %v969_v27 = vrot.slane %v967_v17, 1 }
  0xf4   : > { %1144 = vmatmul.bf16.gmra.mxu1 %v954_v28  ;;  %1602 = vmatmul.bf16.gmra.mxu2 %v1472_v29  ;;  %v7030_v31 = vpop.f32.mrf.mxu0  ;;  %v1475_v28 = vrot.slane %v7067_v19, 1  ;;  %v970_v37 = vsel %vm886_vm1, %v965_v26, %v969_v27  ;;  %v6463_v26 = vld [vmem:[%s6708_s24 + $0x68] sm:$0xff] }
  0xf6   : > { %2069 = vmatmul.bf16.gmra.mxu3 %v1933_v35  ;;  %v1936_v35 = vrot.slane %v7073_v25, 1 }
  0xf7   : > { %v611_v38 = vpop.f32.mrf.mxu2  ;;  %2650 = vmatmul.bf16.gmra.mxu0 %v2450_v32 }
  0xf8   : > { %695 = vst [vmem:[%s6713_s28 + $0xe0] sm:$0xff] %v611_v38  ;;  %v1476_v38 = vsel %vm1455_vm0, %v1473_v56, %v1475_v28  ;;  %v1937_v45 = vsel %vm1455_vm0, %v1934_v59, %v1936_v35  ;;  %v2473_v56 = vshll.u32 %v6462_v46, 16  ;;  %v975_v59 = vshll.u32 %v7091_v50, 16 }
  0xf9   : > { %v588_v43 = vpop.f32.mrf.mxu1  ;;  %v7044_v47 = vpop.f32.mrf.mxu3 }
  0xfa   : > { %686 = vst [vmem:[%s6713_s28 + $0x98] sm:$0xff] %v588_v43 }
  0xfc   : > { %v7047_v48 = vpop.f32.mrf.mxu0 }
  0xff   : > { %v613_v57 = vpop.f32.mrf.mxu2 }
 0x100   : > { %696 = vst [vmem:[%s6713_s28 + $0xe8] sm:$0xff] %v613_v57 }
 0x101   : > { %v1110_v60 = vpop.f32.mrf.mxu1  ;;  %v7056_v0 = vpop.f32.mrf.mxu3 }
 0x102   : > { %v1200_v8 = vadd.f32 %v1110_v60, %v6928_v41  ;;  %v7101_v60 = vld [vmem:[%s6708_s24 + $0x58] sm:$0xff] }
 0x104   : > { %1149 = vmatmul.bf16.gmra.mxu1 %v962_v61  ;;  %1607 = vmatmul.bf16.gmra.mxu2 %v1474_v62  ;;  %v2616_v2 = vpop.f32.mrf.mxu0  ;;  %v6523_v61 = vld [vmem:[%s8127_s1 + $0x190] sm:$0xff] }
 0x105   : > { %3527 = vmatpush.bf16.msra.mxu2 %v6523_v61  ;;  %v6575_v61 = vld [vmem:[%s8127_s1 + $0x210] sm:$0xff] }
 0x106   : > { %2074 = vmatmul.bf16.gmra.mxu3 %v1935_v4  ;;  %v2475_v4 = vrot.slane %v2473_v56, 2 }
 0x107   : > { %v1568_v9 = vpop.f32.mrf.mxu2  ;;  %2655 = vmatmul.bf16.gmra.mxu0 %v2459_v3  ;;  %v2472_v3 = vrot.slane %v2470_v55, 1 }
 0x108   : > { %v1658_v10 = vadd.f32 %v1568_v9, %v1200_v8  ;;  %v977_v8 = vrot.slane %v975_v59, 1  ;;  %v1477_v9 = vrot.slane %v7101_v60, 1 }
 0x109   : > { %v1112_v13 = vpop.f32.mrf.mxu1  ;;  %v7070_v21 = vpop.f32.mrf.mxu3  ;;  %v2476_v12 = vor.u32 %v2475_v4, %v2472_v3  ;;  %v7159_v3 = vld [vmem:[%s6708_s24 + $0x68] sm:$0xff] }
 0x10a   : > { %v2115_v20 = vadd.f32 %v7015_v14, %v1658_v10  ;;  %v1201_v29 = vadd.f32 %v1112_v13, %v6937_v54  ;;  %v2467_v14 = vor.u32 %v2466_v24, %v2463_v23  ;;  %v6576_v54 = vld [vmem:[%s8127_s1 + $0x218] sm:$0xff]  ;;  %v1938_v13 = vrot.slane %v7110_v6, 1  ;;  %v6549_v24 = vld [vmem:[%s8127_s1 + $0x1d0] sm:$0xff] }
 0x10b   : > { %4575 = vmatpush.bf16.msra.mxu0 %v6576_v54  ;;  %v1478_v19 = vsel %vm1455_vm0, %v1475_v28, %v1477_v9  ;;  %4118 = vmatpush.bf16.msra.mxu3 %v6549_v24 }
 0x10c   : > { %v2706_v22 = vadd.f32 %v2616_v2, %v2115_v20  ;;  %v2618_v41 = vpop.f32.mrf.mxu0  ;;  %v2468_v44 = vsel %vm2370_vm2, %v2458_v58, %v2467_v14  ;;  %v971_v58 = vshrl.u32 %v7062_v7, 16  ;;  %v2477_v23 = vsel %vm2370_vm2, %v2467_v14, %v2476_v12 }
 0x10d   : > { %v1939_v25 = vsel %vm1455_vm0, %v1936_v35, %v1938_v13 }
 0x10e   : > { %2742 = vst [vmem:[%s6713_s28] sm:$0xff] %v2706_v22  ;;  %v973_v7 = vor.u32 %v971_v58, %v969_v27  ;;  %v7128_v27 = vld [vmem:[%s6708_s24 + $0x60] sm:$0xff] }
 0x10f   : > { %v1570_v32 = vpop.f32.mrf.mxu2  ;;  %v983_v35 = vshll.u32 %v7128_v27, 16  ;;  %4576 = vmatpush.bf16.msra.mxu0 %v6575_v61 }
 0x110   : > { %v1659_v33 = vadd.f32 %v1570_v32, %v1201_v29  ;;  %v978_v17 = vsel %vm886_vm1, %v973_v7, %v977_v8  ;;  %v2479_v32 = vshrl.u32 %v6463_v26, 16 }
 0x111   : > { %v1115_v36 = vpop.f32.mrf.mxu1  ;;  %v7085_v40 = vpop.f32.mrf.mxu3  ;;  %v985_v46 = vrot.slane %v983_v35, 1 }
 0x112   : > { %v2116_v39 = vadd.f32 %v7027_v30, %v1659_v33  ;;  %v1202_v30 = vadd.f32 %v1115_v36, %v6948_v5  ;;  %v2482_v33 = vshll.u32 %v6463_v26, 16  ;;  %v979_v36 = vshrl.u32 %v7091_v50, 16 }
 0x114   : > { %1154 = vmatmul.bf16.gmra.mxu1 %v970_v37  ;;  %1612 = vmatmul.bf16.gmra.mxu2 %v1476_v38  ;;  %v2707_v42 = vadd.f32 %v2618_v41, %v2116_v39  ;;  %v2621_v43 = vpop.f32.mrf.mxu0  ;;  %v7135_v37 = vld [vmem:[%s6708_s24 + $0x60] sm:$0xff] }
 0x116   : > { %2743 = vst [vmem:[%s6713_s28 + $0x8] sm:$0xff] %v2707_v42  ;;  %2079 = vmatmul.bf16.gmra.mxu3 %v1937_v45  ;;  %v2481_v42 = vrot.slane %v2479_v32, 1  ;;  %v981_v45 = vor.u32 %v979_v36, %v977_v8 }
 0x117   : > { %v1573_v51 = vpop.f32.mrf.mxu2  ;;  %2660 = vmatmul.bf16.gmra.mxu0 %v2468_v44  ;;  %v7141_v44 = vld [vmem:[%s6708_s24 + $0x78] sm:$0xff] }
 0x118   : > { %v1660_v52 = vadd.f32 %v1573_v51, %v1202_v30  ;;  %v1479_v30 = vrot.slane %v7135_v37, 1  ;;  %v1940_v53 = vrot.slane %v7141_v44, 1  ;;  %v986_v56 = vsel %vm886_vm1, %v981_v45, %v985_v46 }
 0x119   : > { %v1117_v57 = vpop.f32.mrf.mxu1  ;;  %v7107_v62 = vpop.f32.mrf.mxu3 }
 0x11a   : > { %v2117_v5 = vadd.f32 %v7044_v47, %v1660_v52  ;;  %v1203_v47 = vadd.f32 %v1117_v57, %v6963_v18  ;;  %v1480_v57 = vsel %vm1455_vm0, %v1477_v9, %v1479_v30 }
 0x11c   : > { %v2708_v63 = vadd.f32 %v2621_v43, %v2117_v5  ;;  %v2623_v2 = vpop.f32.mrf.mxu0  ;;  %v2484_v43 = vrot.slane %v2482_v33, 2 }
 0x11e   : > { %2744 = vst [vmem:[%s6713_s28 + $0x10] sm:$0xff] %v2708_v63  ;;  %v1941_v63 = vsel %vm1455_vm0, %v1938_v13, %v1940_v53 }
 0x11f   : > { %v1575_v10 = vpop.f32.mrf.mxu2 }
 0x120   : > { %v1661_v11 = vadd.f32 %v1575_v10, %v1203_v47  ;;  %v987_v47 = vshrl.u32 %v7128_v27, 16  ;;  %v991_v10 = vshll.u32 %v7159_v3, 16 }
 0x121   : > { %v1120_v15 = vpop.f32.mrf.mxu1  ;;  %v7119_v22 = vpop.f32.mrf.mxu3 }
 0x122   : > { %v2118_v20 = vadd.f32 %v7056_v0, %v1661_v11  ;;  %v1204_v0 = vadd.f32 %v1120_v15, %v6981_v34  ;;  %v7166_v11 = vld [vmem:[%s6708_s24 + $0x68] sm:$0xff] }
 0x123   : > { %v1481_v24 = vrot.slane %v7166_v11, 1  ;;  %v6466_v11 = vld [vmem:[%s6708_s24 + $0x80] sm:$0xff] }
 0x124   : > { %1159 = vmatmul.bf16.gmra.mxu1 %v978_v17  ;;  %1617 = vmatmul.bf16.gmra.mxu2 %v1478_v19  ;;  %v2709_v18 = vadd.f32 %v2623_v2, %v2118_v20  ;;  %v2626_v41 = vpop.f32.mrf.mxu0  ;;  %v6464_v2 = vld [vmem:[%s6708_s24 + $0x70] sm:$0xff] }
 0x125   : > { %v2488_v7 = vshrl.u32 %v6464_v2, 16  ;;  %v2491_v8 = vshll.u32 %v6464_v2, 16  ;;  %v1482_v33 = vsel %vm1455_vm0, %v1479_v30, %v1481_v24  ;;  %v995_v30 = vshrl.u32 %v7159_v3, 16 }
 0x126   : > { %2745 = vst [vmem:[%s6713_s28 + $0x18] sm:$0xff] %v2709_v18  ;;  %2084 = vmatmul.bf16.gmra.mxu3 %v1939_v25  ;;  %v7175_v18 = vld [vmem:[%s6708_s24 + $0x80] sm:$0xff] }
 0x127   : > { %v1578_v28 = vpop.f32.mrf.mxu2  ;;  %2665 = vmatmul.bf16.gmra.mxu0 %v2477_v23  ;;  %v2490_v19 = vrot.slane %v2488_v7, 1  ;;  %v2493_v20 = vrot.slane %v2491_v8, 2  ;;  %v993_v23 = vrot.slane %v991_v10, 1 }
 0x128   : > { %v1662_v29 = vadd.f32 %v1578_v28, %v1204_v0  ;;  %v6522_v0 = vld [vmem:[%s8127_s1 + $0x188] sm:$0xff]  ;;  %v1942_v28 = vrot.slane %v7175_v18, 1 }
 0x129   : > { %v1122_v14 = vpop.f32.mrf.mxu1  ;;  %v7138_v34 = vpop.f32.mrf.mxu3  ;;  %v2494_v27 = vor.u32 %v2493_v20, %v2490_v19  ;;  %3528 = vmatpush.bf16.msra.mxu2 %v6522_v0  ;;  %v2506_v19 = vshrl.u32 %v6466_v11, 16  ;;  %v2509_v20 = vshll.u32 %v6466_v11, 16  ;;  %v716_v11 = vld [vmem:[%s6713_s28 + $0x68] sm:$0xff] }
 0x12a   : > { %v2119_v38 = vadd.f32 %v7070_v21, %v1662_v29  ;;  %v1205_v50 = vadd.f32 %v1122_v14, %v6995_v49  ;;  %v2485_v21 = vor.u32 %v2484_v43, %v2481_v42 }
 0x12c   : > { %v2710_v39 = vadd.f32 %v2626_v41, %v2119_v38  ;;  %v2628_v54 = vpop.f32.mrf.mxu0  ;;  %v2486_v5 = vsel %vm2370_vm2, %v2476_v12, %v2485_v21  ;;  %v989_v41 = vor.u32 %v987_v47, %v985_v46  ;;  %v2495_v37 = vsel %vm2370_vm2, %v2485_v21, %v2494_v27 }
 0x12d   : > { %v1943_v38 = vsel %vm1455_vm0, %v1940_v53, %v1942_v28 }
 0x12e   : > { %2746 = vst [vmem:[%s6713_s28 + $0x20] sm:$0xff] %v2710_v39  ;;  %v994_v32 = vsel %vm886_vm1, %v989_v41, %v993_v23  ;;  %v6465_v39 = vld [vmem:[%s6708_s24 + $0x78] sm:$0xff] }
 0x12f   : > { %v1580_v51 = vpop.f32.mrf.mxu2  ;;  %v2497_v44 = vshrl.u32 %v6465_v39, 16  ;;  %v2500_v45 = vshll.u32 %v6465_v39, 16 }
 0x130   : > { %v1663_v52 = vadd.f32 %v1580_v51, %v1205_v50  ;;  %v7200_v51 = vld [vmem:[%s6708_s24 + $0x70] sm:$0xff] }
 0x131   : > { %v1125_v55 = vpop.f32.mrf.mxu1  ;;  %v7150_v59 = vpop.f32.mrf.mxu3 }
 0x132   : > { %v2120_v58 = vadd.f32 %v7085_v40, %v1663_v52  ;;  %v1206_v40 = vadd.f32 %v1125_v55, %v7006_v1  ;;  %v6496_v1 = vld [vmem:[%s8127_s1 + $0x148] sm:$0xff] }
 0x133   : > { %3071 = vmatpush.bf16.msra.mxu1 %v6496_v1  ;;  %v7225_v1 = vld [vmem:[%s6708_s24 + $0x78] sm:$0xff] }
 0x134   : > { %1164 = vmatmul.bf16.gmra.mxu1 %v986_v56  ;;  %1622 = vmatmul.bf16.gmra.mxu2 %v1480_v57  ;;  %v2711_v49 = vadd.f32 %v2628_v54, %v2120_v58  ;;  %v2631_v60 = vpop.f32.mrf.mxu0  ;;  %v7193_v54 = vld [vmem:[%s6708_s24 + $0x70] sm:$0xff]  ;;  %v2499_v56 = vrot.slane %v2497_v44, 1  ;;  %v2502_v57 = vrot.slane %v2500_v45, 2  ;;  %v7209_v58 = vld [vmem:[%s6708_s24 + $0x88] sm:$0xff] }
 0x135   : > { %v999_v50 = vshll.u32 %v7193_v54, 16  ;;  %v1944_v3 = vrot.slane %v7209_v58, 1  ;;  %v1003_v41 = vshrl.u32 %v7193_v54, 16  ;;  %v6495_v54 = vld [vmem:[%s8127_s1 + $0x140] sm:$0xff]  ;;  %v1802_v58 = vld [vmem:[%s6708_s24 + $0x98] sm:$0x1] }
 0x136   : > { %2747 = vst [vmem:[%s6713_s28 + $0x28] sm:$0xff] %v2711_v49  ;;  %2089 = vmatmul.bf16.gmra.mxu3 %v1941_v63  ;;  %v997_v49 = vor.u32 %v995_v30, %v993_v23  ;;  %v2503_v2 = vor.u32 %v2502_v57, %v2499_v56  ;;  %v1007_v23 = vshll.u32 %v7225_v1, 16 }
 0x137   : > { %v1583_v4 = vpop.f32.mrf.mxu2  ;;  %2670 = vmatmul.bf16.gmra.mxu0 %v2486_v5  ;;  %v1483_v5 = vrot.slane %v7200_v51, 1  ;;  %v1945_v10 = vsel %vm1455_vm0, %v1942_v28, %v1944_v3  ;;  %v2508_v28 = vrot.slane %v2506_v19, 1  ;;  %3072 = vmatpush.bf16.msra.mxu1 %v6495_v54 }
 0x138   : > { %v1664_v6 = vadd.f32 %v1583_v4, %v1206_v40  ;;  %v2504_v47 = vsel %vm2370_vm2, %v2494_v27, %v2503_v2 }
 0x139   : > { %v1127_v9 = vpop.f32.mrf.mxu1  ;;  %v7172_v13 = vpop.f32.mrf.mxu3 }
 0x13a   : > { %v2121_v12 = vadd.f32 %v7107_v62, %v1664_v6  ;;  %v1207_v25 = vadd.f32 %v1127_v9, %v7021_v16  ;;  %v1484_v6 = vsel %vm1455_vm0, %v1481_v24, %v1483_v5  ;;  %v7231_v24 = vld [vmem:[%s6708_s24 + $0x78] sm:$0xff] }
 0x13c   : > { %v2712_v15 = vadd.f32 %v2631_v60, %v2121_v12  ;;  %v2633_v17 = vpop.f32.mrf.mxu0  ;;  %v1001_v60 = vrot.slane %v999_v50, 1  ;;  %v713_v12 = vld [vmem:[%s6713_s28 + $0x50] sm:$0xff] }
 0x13e   : > { %2748 = vst [vmem:[%s6713_s28 + $0x30] sm:$0xff] %v2712_v15  ;;  %v1002_v4 = vsel %vm886_vm1, %v997_v49, %v1001_v60 }
 0x13f   : > { %v1585_v62 = vpop.f32.mrf.mxu2 }
 0x140   : > { %v1665_v26 = vadd.f32 %v1585_v62, %v1207_v25  ;;  %v6574_v62 = vld [vmem:[%s8127_s1 + $0x208] sm:$0xff] }
 0x141   : > { %v1130_v29 = vpop.f32.mrf.mxu1  ;;  %v7187_v14 = vpop.f32.mrf.mxu3  ;;  %4577 = vmatpush.bf16.msra.mxu0 %v6574_v62  ;;  %v6468_v62 = vld [vmem:[%s6708_s24 + $0x90] sm:$0xff] }
 0x142   : > { %v2122_v16 = vadd.f32 %v7119_v22, %v1665_v26  ;;  %v1208_v42 = vadd.f32 %v1130_v29, %v7030_v31  ;;  %v6548_v31 = vld [vmem:[%s8127_s1 + $0x1c8] sm:$0xff]  ;;  %v2511_v29 = vrot.slane %v2509_v20, 2  ;;  %v2524_v54 = vshrl.u32 %v6468_v62, 16 }
 0x143   : > { %4119 = vmatpush.bf16.msra.mxu3 %v6548_v31 }
 0x144   : > { %1169 = vmatmul.bf16.gmra.mxu1 %v994_v32  ;;  %1627 = vmatmul.bf16.gmra.mxu2 %v1482_v33  ;;  %v2713_v36 = vadd.f32 %v2633_v17, %v2122_v16  ;;  %v2636_v35 = vpop.f32.mrf.mxu0  ;;  %v7240_v32 = vld [vmem:[%s6708_s24 + $0x90] sm:$0xff]  ;;  %v714_v33 = vld [vmem:[%s6713_s28 + $0x58] sm:$0xff]  ;;  %v1005_v16 = vor.u32 %v1003_v41, %v1001_v60  ;;  %v7245_v39 = vor.u32 %v2511_v29, %v2508_v28 }
 0x146   : > { %2749 = vst [vmem:[%s6713_s28 + $0x38] sm:$0xff] %v2713_v36  ;;  %2094 = vmatmul.bf16.gmra.mxu3 %v1943_v38  ;;  %v1009_v36 = vrot.slane %v1007_v23, 1  ;;  %v2513_v51 = vsel %vm2370_vm2, %v2503_v2, %v7245_v39 }
 0x147   : > { %v1588_v43 = vpop.f32.mrf.mxu2  ;;  %2675 = vmatmul.bf16.gmra.mxu0 %v2495_v37 }
 0x148   : > { %v1666_v22 = vadd.f32 %v1588_v43, %v1208_v42  ;;  %v1946_v42 = vrot.slane %v7240_v32, 1 }
 0x149   : > { %v1132_v46 = vpop.f32.mrf.mxu1  ;;  %v7206_v21 = vpop.f32.mrf.mxu3 }
 0x14a   : > { %v2123_v52 = vadd.f32 %v7138_v34, %v1666_v22  ;;  %v1209_v61 = vadd.f32 %v1132_v46, %v7047_v48  ;;  %v1010_v22 = vsel %vm886_vm1, %v1005_v16, %v1009_v36  ;;  %v1947_v31 = vsel %vm1455_vm0, %v1944_v3, %v1946_v42  ;;  %v7274_v3 = vld [vmem:[%s6708_s24 + $0x80] sm:$0xff]  ;;  %v7303_v16 = vld [vmem:[%s6708_s24 + $0x88] sm:$0xff] }
 0x14c   : > { %v2714_v53 = vadd.f32 %v2636_v35, %v2123_v52  ;;  %v2638_v55 = vpop.f32.mrf.mxu0  ;;  %v1485_v35 = vrot.slane %v7231_v24, 1  ;;  %v6521_v52 = vld [vmem:[%s8127_s1 + $0x180] sm:$0xff] }
 0x14d   : > { %3529 = vmatpush.bf16.msra.mxu2 %v6521_v52 }
 0x14e   : > { %2750 = vst [vmem:[%s6713_s28 + $0x40] sm:$0xff] %v2714_v53  ;;  %v1486_v44 = vsel %vm1455_vm0, %v1483_v5, %v1485_v35  ;;  %v715_v53 = vld [vmem:[%s6713_s28 + $0x60] sm:$0xff] }
 0x14f   : > { %v1590_v34 = vpop.f32.mrf.mxu2 }
 0x150   : > { %v1667_v63 = vadd.f32 %v1590_v34, %v1209_v61  ;;  %v1893_v61 = vunpack.c.l.b16 %v1802_v58 }
 0x151   : > { %v1135_v40 = vpop.f32.mrf.mxu1  ;;  %v7218_v8 = vpop.f32.mrf.mxu3 }
 0x152   : > { %v2124_v7 = vadd.f32 %v7150_v59, %v1667_v63  ;;  %v1210_v15 = vadd.f32 %v1135_v40, %v713_v12  ;;  %v1011_v63 = vshrl.u32 %v7225_v1, 16 }
 0x154   : > { %1174 = vmatmul.bf16.gmra.mxu1 %v1002_v4  ;;  %1632 = vmatmul.bf16.gmra.mxu2 %v1484_v6  ;;  %v2715_v48 = vadd.f32 %v2638_v55, %v2124_v7  ;;  %v2641_v9 = vpop.f32.mrf.mxu0  ;;  %v7267_v55 = vld [vmem:[%s6708_s24 + $0x80] sm:$0xff]  ;;  %v1013_v12 = vor.u32 %v1011_v63, %v1009_v36  ;;  %v6122_v36 = vld [vmem:[%s6708_s24 + $0x10] sm:$0xc] }
 0x155   : > { %v1015_v2 = vshll.u32 %v7267_v55, 16  ;;  %v6547_v6 = vld [vmem:[%s8127_s1 + $0x1c0] sm:$0xff] }
 0x156   : > { %2751 = vst [vmem:[%s6713_s28 + $0x48] sm:$0xff] %v2715_v48  ;;  %2099 = vmatmul.bf16.gmra.mxu3 %v1945_v10  ;;  %v1912_v10 = vpack.c.b16 %v1893_v61, %v1893_v61 }
 0x157   : > { %v1593_v17 = vpop.f32.mrf.mxu2  ;;  %2680 = vmatmul.bf16.gmra.mxu0 %v2504_v47  ;;  %4120 = vmatpush.bf16.msra.mxu3 %v6547_v6  ;;  %v1017_v1 = vrot.slane %v1015_v2, 1  ;;  %v775_v6 = vld [vmem:[%s6708_s24 + $0x90] sm:$0x1] }
 0x158   : > { %v1668_v59 = vadd.f32 %v1593_v17, %v1210_v15  ;;  %v1487_v15 = vrot.slane %v7274_v3, 1  ;;  %v1948_v20 = vrot.slane %v1912_v10, 1 }
 0x159   : > { %v1137_v18 = vpop.f32.mrf.mxu1  ;;  %v7237_v26 = vpop.f32.mrf.mxu3  ;;  %v1018_v41 = vsel %vm886_vm1, %v1013_v12, %v1017_v1 }
 0x15a   : > { %v2125_v25 = vadd.f32 %v7172_v13, %v1668_v59  ;;  %v1211_v37 = vadd.f32 %v1137_v18, %v714_v33  ;;  %v1488_v23 = vsel %vm1455_vm0, %v1485_v35, %v1487_v15  ;;  %v1949_v33 = vsel %vm1455_vm0, %v1946_v42, %v1948_v20  ;;  %v1344_v20 = vld [vmem:[%s6708_s24 + $0x90] sm:$0x1] }
 0x15c   : > { %v2716_v27 = vadd.f32 %v2641_v9, %v2125_v25  ;;  %v2643_v0 = vpop.f32.mrf.mxu0 }
 0x15e   : > { %2752 = vst [vmem:[%s6713_s28 + $0x50] sm:$0xff] %v2716_v27  ;;  %v717_v27 = vld [vmem:[%s6713_s28 + $0x70] sm:$0xff] }
 0x15f   : > { %v1595_v13 = vpop.f32.mrf.mxu2 }
 0x160   : > { %v1669_v38 = vadd.f32 %v1595_v13, %v1211_v37  ;;  %v6530_v37 = vld [vmem:[%s6708_s24 + $0x18] sm:$0xff] }
 0x161   : > { %v1140_v43 = vpop.f32.mrf.mxu1  ;;  %v7254_v46 = vpop.f32.mrf.mxu3  ;;  %v3886_v32 = vshrl.u32 %v6530_v37, 16 }
 0x162   : > { %v2126_v45 = vadd.f32 %v7187_v14, %v1669_v38  ;;  %v6467_v14 = vld [vmem:[%s6708_s24 + $0x88] sm:$0xff]  ;;  %v1212_v56 = vadd.f32 %v1140_v43, %v715_v53  ;;  %v2527_v43 = vshll.u32 %v6468_v62, 16  ;;  %v2526_v53 = vrot.slane %v2524_v54, 1  ;;  %v719_v62 = vld [vmem:[%s6713_s28 + $0x80] sm:$0xff] }
 0x163   : > { %v2515_v60 = vshrl.u32 %v6467_v14, 16  ;;  %v2518_v5 = vshll.u32 %v6467_v14, 16  ;;  %v6573_v14 = vld [vmem:[%s8127_s1 + $0x200] sm:$0xff] }
 0x164   : > { %1179 = vmatmul.bf16.gmra.mxu1 %v1010_v22  ;;  %1637 = vmatmul.bf16.gmra.mxu2 %v1486_v44  ;;  %v2717_v30 = vadd.f32 %v2643_v0, %v2126_v45  ;;  %v2646_v50 = vpop.f32.mrf.mxu0  ;;  %v1019_v45 = vshrl.u32 %v7267_v55, 16 }
 0x165   : > { %v2517_v9 = vrot.slane %v2515_v60, 1  ;;  %v2520_v47 = vrot.slane %v2518_v5, 2  ;;  %4578 = vmatpush.bf16.msra.mxu0 %v6573_v14  ;;  %v3888_v5 = vrot.slane %v3886_v32, 2 }
 0x166   : > { %2753 = vst [vmem:[%s6713_s28 + $0x58] sm:$0xff] %v2717_v30  ;;  %2104 = vmatmul.bf16.gmra.mxu3 %v1947_v31  ;;  %v1023_v30 = vshll.u32 %v7303_v16, 16 }
 0x167   : > { %v1598_v57 = vpop.f32.mrf.mxu2  ;;  %2685 = vmatmul.bf16.gmra.mxu0 %v2513_v51  ;;  %v7285_v19 = vor.u32 %v2520_v47, %v2517_v9  ;;  %v3889_v51 = vshll.u32 %v6530_v37, 16 }
 0x168   : > { %v1670_v49 = vadd.f32 %v1598_v57, %v1212_v56  ;;  %v2529_v56 = vrot.slane %v2527_v43, 2  ;;  %v1025_v63 = vrot.slane %v1023_v30, 1 }
 0x169   : > { %v1142_v34 = vpop.f32.mrf.mxu1  ;;  %v7277_v4 = vpop.f32.mrf.mxu3  ;;  %v2522_v29 = vsel %vm2370_vm2, %v7245_v39, %v7285_v19  ;;  %v3891_v61 = vrot.slane %v3889_v51, 3  ;;  %v720_v51 = vld [vmem:[%s6713_s28 + $0x88] sm:$0xff] }
 0x16a   : > { %v2127_v40 = vadd.f32 %v7206_v21, %v1670_v49  ;;  %v1213_v21 = vadd.f32 %v1142_v34, %v716_v11  ;;  %v2259_v49 = vld [vmem:[%s6708_s24 + $0x98] sm:$0x3]  ;;  %v7325_v47 = vor.u32 %v2529_v56, %v2526_v53 }
 0x16b   : > { %v718_v34 = vld [vmem:[%s6713_s28 + $0x78] sm:$0xff]  ;;  %v7327_v11 = vor.u32 %v3891_v61, %v3888_v5 }
 0x16c   : > { %v2718_v7 = vadd.f32 %v2646_v50, %v2127_v40  ;;  %v2648_v48 = vpop.f32.mrf.mxu0  ;;  %v7312_v50 = vld [vmem:[%s6708_s24 + $0x88] sm:$0xff]  ;;  %v2531_v3 = vsel %vm2370_vm2, %v7285_v19, %v7325_v47  ;;  %v1027_v19 = vshrl.u32 %v7303_v16, 16 }
 0x16d   : > { %v1489_v2 = vrot.slane %v7312_v50, 1 }
 0x16e   : > { %2754 = vst [vmem:[%s6713_s28 + $0x60] sm:$0xff] %v2718_v7 }
 0x16f   : > { %v1600_v17 = vpop.f32.mrf.mxu2 }
 0x170   : > { %v1671_v59 = vadd.f32 %v1600_v17, %v1213_v21  ;;  %v866_v17 = vunpack.c.l.b16 %v775_v6  ;;  %v5882_v6 = vld [vmem:[%s6708_s24 + $0x8] sm:$0xc] }
 0x171   : > { %v1145_v18 = vpop.f32.mrf.mxu1  ;;  %v7292_v25 = vpop.f32.mrf.mxu3 }
 0x172   : > { %v2128_v24 = vadd.f32 %v7218_v8, %v1671_v59  ;;  %v6529_v8 = vld [vmem:[%s6708_s24 + $0x10] sm:$0xf0]  ;;  %v1214_v35 = vadd.f32 %v1145_v18, %v717_v27  ;;  %v885_v27 = vpack.c.b16 %v866_v17, %v866_v17 }
 0x173   : > { %v6123_v13 = vor.u32 %v6529_v8, %v6122_v36 }
 0x174   : > { %1184 = vmatmul.bf16.gmra.mxu1 %v1018_v41  ;;  %1642 = vmatmul.bf16.gmra.mxu2 %v1488_v23  ;;  %v2719_v0 = vadd.f32 %v2648_v48, %v2128_v24  ;;  %v2651_v28 = vpop.f32.mrf.mxu0  ;;  %v2350_v48 = vunpack.c.l.b16 %v2259_v49 }
 0x175   : > { %v3878_v39 = vshrl.u32 %v6123_v13, 16  ;;  %v3881_v44 = vshll.u32 %v6123_v13, 16 }
 0x176   : > { %2755 = vst [vmem:[%s6713_s28 + $0x68] sm:$0xff] %v2719_v0  ;;  %2109 = vmatmul.bf16.gmra.mxu3 %v1949_v33  ;;  %v2369_v41 = vpack.c.b16 %v2350_v48, %v2350_v48  ;;  %v1435_v0 = vunpack.c.l.b16 %v1344_v20  ;;  %v6503_v48 = vld [vmem:[%s6708_s24 + $0x10] sm:$0xf0] }
 0x177   : > { %v1603_v38 = vpop.f32.mrf.mxu2  ;;  %2690 = vmatmul.bf16.gmra.mxu0 %v2522_v29  ;;  %v3880_v57 = vrot.slane %v3878_v39, 2  ;;  %v3883_v60 = vrot.slane %v3881_v44, 3 }
 0x178   : > { %v1672_v22 = vadd.f32 %v1603_v38, %v1214_v35  ;;  %v2533_v33 = vshrl.u32 %v2369_v41, 16  ;;  %v2536_v8 = vshll.u32 %v2369_v41, 16  ;;  %v1031_v38 = vshll.u32 %v885_v27, 16  ;;  %v6242_v41 = vld [vmem:[%s6708_s24 + $0x10] sm:$0x8] }
 0x179   : > { %v1147_v42 = vpop.f32.mrf.mxu1  ;;  %v7315_v31 = vpop.f32.mrf.mxu3  ;;  %v3884_v10 = vor.u32 %v3883_v60, %v3880_v57  ;;  %v1454_v54 = vpack.c.b16 %v1435_v0, %v1435_v0  ;;  %v7389_v0 = vld [vmem:[%s6708_s24 + $0x18] sm:$0xff] }
 0x17a   : > { %v2129_v52 = vadd.f32 %v7237_v26, %v1672_v22  ;;  %v1021_v26 = vor.u32 %v1019_v45, %v1017_v1  ;;  %v1215_v40 = vadd.f32 %v1147_v42, %v718_v34  ;;  %v1490_v1 = vsel %vm1455_vm0, %v1487_v15, %v1489_v2 }
 0x17b   : > { %v3893_v15 = vsel %vm3876_vm3, %v3884_v10, %v7327_v11  ;;  %v2535_v39 = vrot.slane %v2533_v33, 1  ;;  %v2538_v42 = vrot.slane %v2536_v8, 2  ;;  %v1033_v14 = vrot.slane %v1031_v38, 1 }
 0x17c   : > { %v2720_v55 = vadd.f32 %v2651_v28, %v2129_v52  ;;  %v2653_v58 = vpop.f32.mrf.mxu0  ;;  %v1026_v21 = vsel %vm886_vm1, %v1021_v26, %v1025_v63  ;;  %v1029_v52 = vor.u32 %v1027_v19, %v1025_v63  ;;  %v1491_v53 = vrot.slane %v1454_v54, 1 }
 0x17d   : > { %v6661_v33 = vmov 0  }
 0x17e   : > { %2756 = vst [vmem:[%s6713_s28 + $0x70] sm:$0xff] %v2720_v55  ;;  %v1034_v49 = vsel %vm886_vm1, %v1029_v52, %v1033_v14  ;;  %v1492_v60 = vsel %vm1455_vm0, %v1489_v2, %v1491_v53  ;;  %v6477_v2 = vld [vmem:[%s6708_s24 + $0x8] sm:$0xf0]  ;;  %6633 = vset.pattern.permute.xlu0 %v6661_v33  ;;  %6634 = vset.pattern.permute.xlu1 %v6661_v33 }
 0x17f   : > { %v1605_v7 = vpop.f32.mrf.mxu2  ;;  %v5883_v17 = vor.u32 %v6477_v2, %v5882_v6  ;;  %6635 = vset.pattern.permute.xlu2 %v6661_v33  ;;  %v7423_v2 = vld [vmem:[%s6708_s24 + $0x20] sm:$0xff] }
 0x180   : > { %v1673_v9 = vadd.f32 %v1605_v7, %v1215_v40  ;;  %v721_v40 = vld [vmem:[%s6713_s28 + $0x90] sm:$0xff] }
 0x181   : > { %v1150_v12 = vpop.f32.mrf.mxu1  ;;  %v7337_v18 = vpop.f32.mrf.mxu3  ;;  %v2962_v8 = vrot.slane %v5883_v17, 2 }
 0x182   : > { %v2130_v59 = vadd.f32 %v7254_v46, %v1673_v9  ;;  %v1216_v28 = vadd.f32 %v1150_v12, %v719_v62  ;;  %v6531_v46 = vld [vmem:[%s6708_s24 + $0x20] sm:$0xff]  ;;  %v6532_v9 = vld [vmem:[%s6708_s24 + $0x28] sm:$0xff]  ;;  %v7375_v12 = vld [vmem:[%s6708_s24 + $0x10] sm:$0xff] }
 0x183   : > { %v3895_v35 = vshrl.u32 %v6531_v46, 16  ;;  %v3898_v37 = vshll.u32 %v6531_v46, 16 }
 0x184   : > { %1189 = vmatmul.bf16.gmra.mxu1 %v1026_v21  ;;  %1647 = vmatmul.bf16.gmra.mxu2 %v1490_v1  ;;  %v2721_v23 = vadd.f32 %v2653_v58, %v2130_v59  ;;  %v2656_v24 = vpop.f32.mrf.mxu0  ;;  %v3904_v21 = vshrl.u32 %v6532_v9, 16  ;;  %v7378_v59 = vld [vmem:[%s6708_s24 + $0x18] sm:$0xff] }
 0x185   : > { %v3897_v45 = vrot.slane %v3895_v35, 2  ;;  %v3900_v30 = vrot.slane %v3898_v37, 3  ;;  %v3420_v37 = vrot.slane %v7378_v59, 2 }
 0x186   : > { %2757 = vst [vmem:[%s6713_s28 + $0x78] sm:$0xff] %v2721_v23  ;;  %4121 = vmatmul.bf16.vlgmr.msra.gmra.mxu3 %v3893_v15  ;;  %v6555_v23 = vld [vmem:[%s6708_s24 + $0x10] sm:$0xf0]  ;;  %v4778_v15 = vld [vmem:[%s8128_s2] sm:$0xff]  ;;  %v3906_v46 = vrot.slane %v3904_v21, 2  ;;  %v4471_v21 = vrot.slane %v7423_v2, 3 }
 0x187   : > { %v1608_v29 = vpop.f32.mrf.mxu2  ;;  %2695 = vmatmul.bf16.gmra.mxu0 %v2531_v3  ;;  %v7353_v55 = vor.u32 %v3900_v30, %v3897_v45  ;;  %4816 = vperm.xlu0 %6633, %v4778_v15   ;;  %v7471_v2 = vld [vmem:[%s6708_s24 + $0x28] sm:$0xff] }
 0x188   : > { %v1674_v36 = vadd.f32 %v1608_v29, %v1216_v28  ;;  %v6243_v28 = vor.u32 %v6555_v23, %v6242_v41  ;;  %v4781_v23 = vld [vmem:[%s8128_s2 + $0x18] sm:$0xff] }
 0x189   : > { %v1152_v13 = vpop.f32.mrf.mxu1  ;;  %v7349_v22 = vpop.f32.mrf.mxu3  ;;  %v3902_v50 = vsel %vm3876_vm3, %v7327_v11, %v7353_v55  ;;  %v3907_v11 = vshll.u32 %v6532_v9, 16 }
 0x18a   : > { %v2131_v43 = vadd.f32 %v7277_v4, %v1674_v36  ;;  %v1217_v56 = vadd.f32 %v1152_v13, %v720_v51  ;;  %v2539_v4 = vor.u32 %v2538_v42, %v2535_v39  ;;  %v722_v36 = vld [vmem:[%s6713_s28 + $0x98] sm:$0xff]  ;;  %v4468_v54 = vrot.slane %v6243_v28, 3  ;;  %v4779_v51 = vld [vmem:[%s8128_s2 + $0x8] sm:$0xff] }
 0x18b   : > { %v3909_v29 = vrot.slane %v3907_v11, 3 }
 0x18c   : > { %v2722_v44 = vadd.f32 %v2656_v24, %v2131_v43  ;;  %v2658_v32 = vpop.f32.mrf.mxu0  ;;  %v2540_v63 = vsel %vm2370_vm2, %v7325_v47, %v2539_v4  ;;  %v4469_v43 = vrot.slane %v7389_v0, 3  ;;  %v725_v0 = vld [vmem:[%s6713_s28 + $0xb0] sm:$0xff] }
 0x18d   : > { %v3910_v39 = vor.u32 %v3909_v29, %v3906_v46 }
 0x18e   : > { %2758 = vst [vmem:[%s6713_s28 + $0x80] sm:$0xff] %v2722_v44  ;;  %v4470_v53 = vsel %vm4467_vm5, %v4468_v54, %v4469_v43  ;;  %v7453_v54 = vld [vmem:[%s6708_s24 + $0x28] sm:$0xff] }
 0x18f   : > { %v1610_v16 = vpop.f32.mrf.mxu2  ;;  %4821 = vperm.xlu0 %6633, %v4779_v51  }
 0x190   : > { %v1675_v57 = vadd.f32 %v1610_v16, %v1217_v56  ;;  %v3911_v56 = vsel %vm3876_vm3, %v7353_v55, %v3910_v39  ;;  %v723_v16 = vld [vmem:[%s6713_s28 + $0xa0] sm:$0xff] }
 0x191   : > { %v1155_v58 = vpop.f32.mrf.mxu1  ;;  %v7360_v61 = vpop.f32.mrf.mxu3 }
 0x192   : > { %v2132_v5 = vadd.f32 %v7292_v25, %v1675_v57  ;;  %v1218_v7 = vadd.f32 %v1155_v58, %v721_v40  ;;  %v6002_v25 = vld [vmem:[%s6708_s24 + $0x10] sm:$0xc] }
 0x193   : > { %v6003_v20 = vor.u32 %v6503_v48, %v6002_v25  ;;  %v6533_v57 = vld [vmem:[%s6708_s24 + $0x30] sm:$0xff]  ;;  %v724_v48 = vld [vmem:[%s6713_s28 + $0xa8] sm:$0xff] }
 0x194   : > { %1194 = vmatmul.bf16.gmra.mxu1 %v1034_v49  ;;  %1652 = vmatmul.bf16.gmra.mxu2 %v1492_v60  ;;  %v2723_v34 = vadd.f32 %v2658_v32, %v2132_v5  ;;  %v2661_v26 = vpop.f32.mrf.mxu0  ;;  %v3913_v49 = vshrl.u32 %v6533_v57, 16  ;;  %v3916_v60 = vshll.u32 %v6533_v57, 16 }
 0x195   : > { %v3419_v35 = vrot.slane %v6003_v20, 2 }
 0x196   : > { %2759 = vst [vmem:[%s6713_s28 + $0x88] sm:$0xff] %v2723_v34  ;;  %4126 = vmatmul.bf16.gmra.mxu3 %v3902_v50  ;;  %v7411_v34 = vld [vmem:[%s6708_s24 + $0x18] sm:$0xff]  ;;  %v4780_v50 = vld [vmem:[%s8128_s2 + $0x10] sm:$0xff]  ;;  %v3918_v25 = vrot.slane %v3916_v60, 3 }
 0x197   : > { %v1613_v10 = vpop.f32.mrf.mxu2  ;;  %2700 = vmatmul.bf16.gmra.mxu0 %v2540_v63  ;;  %v3421_v42 = vsel %vm2961_vm4, %v3419_v35, %v3420_v37  ;;  %4826 = vperm.xlu1 %6634, %v4780_v50   ;;  %v2965_v9 = vrot.slane %v7411_v34, 2  ;;  %v7447_v35 = vld [vmem:[%s6708_s24 + $0x28] sm:$0xff] }
 0x198   : > { %v1676_v47 = vadd.f32 %v1613_v10, %v1218_v7  ;;  %v3915_v7 = vrot.slane %v3913_v49, 2 }
 0x199   : > { %v1157_v1 = vpop.f32.mrf.mxu1  ;;  %v7383_v3 = vpop.f32.mrf.mxu3 }
 0x19a   : > { %v2133_v24 = vadd.f32 %v7315_v31, %v1676_v47  ;;  %v2963_v31 = vrot.slane %v7375_v12, 2  ;;  %v1219_v13 = vadd.f32 %v1157_v1, %v722_v36  ;;  %v3919_v11 = vor.u32 %v3918_v25, %v3915_v7  ;;  %v7474_v7 = vld [vmem:[%s6708_s24 + $0x30] sm:$0xff] }
 0x19c   : > { %v2724_v62 = vadd.f32 %v2661_v26, %v2133_v24  ;;  %v2663_v27 = vpop.f32.mrf.mxu0  ;;  %v2964_v32 = vsel %vm2961_vm4, %v2962_v8, %v2963_v31  ;;  %v7414_v26 = vld [vmem:[%s6708_s24 + $0x20] sm:$0xff]  ;;  %v2966_v17 = vsel %vm2961_vm4, %v2963_v31, %v2965_v9 }
 0x19d   : > { %v3422_v10 = vrot.slane %v7414_v26, 2  ;;  %v7444_v31 = vld [vmem:[%s6708_s24 + $0x20] sm:$0xff] }
 0x19e   : > { %2760 = vst [vmem:[%s6713_s28 + $0x90] sm:$0xff] %v2724_v62  ;;  %v4472_v62 = vsel %vm4467_vm5, %v4469_v43, %v4471_v21  ;;  %v6535_v26 = vld [vmem:[%s6708_s24 + $0x40] sm:$0xff] }
 0x19f   : > { %v1615_v19 = vpop.f32.mrf.mxu2  ;;  %v3423_v59 = vsel %vm2961_vm4, %v3420_v37, %v3422_v10  ;;  %4831 = vperm.xlu1 %6634, %v4781_v23   ;;  %v3931_v50 = vshrl.u32 %v6535_v26, 16 }
 0x1a0   : > { %v1677_v38 = vadd.f32 %v1615_v19, %v1219_v13 }
 0x1a1   : > { %v1160_v44 = vpop.f32.mrf.mxu1  ;;  %v7399_v30 = vpop.f32.mrf.mxu3 }
 0x1a2   : > { %v2134_v45 = vadd.f32 %v7337_v18, %v1677_v38  ;;  %v1220_v18 = vadd.f32 %v1160_v44, %v723_v16  ;;  %v726_v44 = vld [vmem:[%s6713_s28 + $0xb8] sm:$0xff] }
 0x1a4   : > { %3073 = vmatmul.bf16.vlgmr.msra.gmra.mxu1 %v2964_v32  ;;  %3530 = vmatmul.bf16.vlgmr.msra.gmra.mxu2 %v3421_v42  ;;  %v2725_v52 = vadd.f32 %v2663_v27, %v2134_v45  ;;  %v2666_v14 = vpop.f32.mrf.mxu0  ;;  %v3920_v27 = vsel %vm3876_vm3, %v3910_v39, %v3919_v11  ;;  %v2967_v32 = vrot.slane %v7444_v31, 2  ;;  %v3424_v42 = vrot.slane %v7447_v35, 2  ;;  %v6536_v35 = vld [vmem:[%s6708_s24 + $0x48] sm:$0xff] }
 0x1a6   : > { %2761 = vst [vmem:[%s6713_s28 + $0x98] sm:$0xff] %v2725_v52  ;;  %4131 = vmatmul.bf16.gmra.mxu3 %v3911_v56  ;;  %v2968_v56 = vsel %vm2961_vm4, %v2965_v9, %v2967_v32  ;;  %v3425_v16 = vsel %vm2961_vm4, %v3422_v10, %v3424_v42  ;;  %v4784_v9 = vld [vmem:[%s8128_s2 + $0x30] sm:$0xff] }
 0x1a7   : > { %v1618_v4 = vpop.f32.mrf.mxu2  ;;  %4579 = vmatmul.bf16.vlgmr.msra.gmra.mxu0 %v4470_v53  ;;  %4846 = vperm.xlu0 %6633, %v4784_v9  }
 0x1a8   : > { %v1678_v58 = vadd.f32 %v1618_v4, %v1220_v18 }
 0x1a9   : > { %v1162_v5 = vpop.f32.mrf.mxu1  ;;  %v7417_v63 = vpop.f32.mrf.mxu3 }
 0x1aa   : > { %v2135_v55 = vadd.f32 %v7349_v22, %v1678_v58  ;;  %v1221_v47 = vadd.f32 %v1162_v5, %v724_v48  ;;  %v727_v5 = vld [vmem:[%s6713_s28 + $0xc0] sm:$0xff] }
 0x1ac   : > { %v2726_v40 = vadd.f32 %v2666_v14, %v2135_v55  ;;  %v2668_v6 = vpop.f32.mrf.mxu0 }
 0x1ae   : > { %2762 = vst [vmem:[%s6713_s28 + $0xa0] sm:$0xff] %v2726_v40  ;;  %v3934_v40 = vshll.u32 %v6535_v26, 16 }
 0x1af   : > { %v1620_v22 = vpop.f32.mrf.mxu2 }
 0x1b0   : > { %v1679_v12 = vadd.f32 %v1620_v22, %v1221_v47  ;;  %v7483_v22 = vld [vmem:[%s6708_s24 + $0x30] sm:$0xff] }
 0x1b1   : > { %v1165_v1 = vpop.f32.mrf.mxu1  ;;  %v7433_v41 = vpop.f32.mrf.mxu3  ;;  %v4475_v23 = vrot.slane %v7483_v22, 3 }
 0x1b2   : > { %v2136_v20 = vadd.f32 %v7360_v61, %v1679_v12  ;;  %v1222_v28 = vadd.f32 %v1165_v1, %v725_v0  ;;  %v6534_v61 = vld [vmem:[%s6708_s24 + $0x38] sm:$0xff]  ;;  %v3933_v12 = vrot.slane %v3931_v50, 2  ;;  %v2969_v1 = vrot.slane %v7471_v2, 2  ;;  %v4787_v50 = vld [vmem:[%s8128_s2 + $0x48] sm:$0xff] }
 0x1b3   : > { %v3922_v33 = vshrl.u32 %v6534_v61, 16  ;;  %v3925_v36 = vshll.u32 %v6534_v61, 16  ;;  %v4782_v61 = vld [vmem:[%s8128_s2 + $0x20] sm:$0xff]  ;;  %4861 = vperm.xlu0 %6633, %v4787_v50  }
 0x1b4   : > { %3078 = vmatmul.bf16.gmra.mxu1 %v2966_v17  ;;  %3535 = vmatmul.bf16.gmra.mxu2 %v3423_v59  ;;  %v2727_v24 = vadd.f32 %v2668_v6, %v2136_v20  ;;  %v2671_v15 = vpop.f32.mrf.mxu0  ;;  %v3426_v17 = vrot.slane %v7474_v7, 2 }
 0x1b5   : > { %v3924_v43 = vrot.slane %v3922_v33, 2  ;;  %v3927_v39 = vrot.slane %v3925_v36, 3  ;;  %4836 = vperm.xlu2 %6635, %v4782_v61  }
 0x1b6   : > { %2763 = vst [vmem:[%s6713_s28 + $0xa8] sm:$0xff] %v2727_v24  ;;  %4136 = vmatmul.bf16.gmra.mxu3 %v3920_v27  ;;  %v3427_v27 = vsel %vm2961_vm4, %v3424_v42, %v3426_v17 }
 0x1b7   : > { %v1623_v46 = vpop.f32.mrf.mxu2  ;;  %4584 = vmatmul.bf16.gmra.mxu0 %v4472_v62  ;;  %v3928_v14 = vor.u32 %v3927_v39, %v3924_v43  ;;  %v2970_v62 = vsel %vm2961_vm4, %v2967_v32, %v2969_v1  ;;  %v7507_v39 = vld [vmem:[%s6708_s24 + $0x30] sm:$0xff] }
 0x1b8   : > { %v1680_v29 = vadd.f32 %v1623_v46, %v1222_v28  ;;  %v4785_v46 = vld [vmem:[%s8128_s2 + $0x38] sm:$0xff] }
 0x1b9   : > { %v1167_v8 = vpop.f32.mrf.mxu1  ;;  %v7450_v13 = vpop.f32.mrf.mxu3  ;;  %v3929_v60 = vsel %vm3876_vm3, %v3919_v11, %v3928_v14  ;;  %v728_v11 = vld [vmem:[%s6713_s28 + $0xc8] sm:$0xff]  ;;  %4851 = vperm.xlu1 %6634, %v4785_v46  }
 0x1ba   : > { %v2137_v37 = vadd.f32 %v7383_v3, %v1680_v29  ;;  %v1223_v45 = vadd.f32 %v1167_v8, %v726_v44  ;;  %v4473_v3 = vrot.slane %v7453_v54, 3  ;;  %v729_v8 = vld [vmem:[%s6713_s28 + $0xd0] sm:$0xff]  ;;  %v3943_v54 = vshll.u32 %v6536_v35, 16  ;;  %v7510_v44 = vld [vmem:[%s6708_s24 + $0x38] sm:$0xff] }
 0x1bc   : > { %v2728_v19 = vadd.f32 %v2671_v15, %v2137_v37  ;;  %v2673_v38 = vpop.f32.mrf.mxu0  ;;  %v4474_v49 = vsel %vm4467_vm5, %v4471_v21, %v4473_v3  ;;  %v3936_v21 = vrot.slane %v3934_v40, 3  ;;  %v4476_v36 = vsel %vm4467_vm5, %v4473_v3, %v4475_v23  ;;  %v7519_v3 = vld [vmem:[%s6708_s24 + $0x38] sm:$0xff] }
 0x1be   : > { %2764 = vst [vmem:[%s6713_s28 + $0xb0] sm:$0xff] %v2728_v19  ;;  %v3937_v24 = vor.u32 %v3936_v21, %v3933_v12 }
 0x1bf   : > { %v1625_v51 = vpop.f32.mrf.mxu2 }
 0x1c0   : > { %v1681_v52 = vadd.f32 %v1625_v51, %v1223_v45  ;;  %v4783_v45 = vld [vmem:[%s8128_s2 + $0x28] sm:$0xff] }
 0x1c1   : > { %v1170_v53 = vpop.f32.mrf.mxu1  ;;  %v7463_v57 = vpop.f32.mrf.mxu3  ;;  %4841 = vperm.xlu2 %6635, %v4783_v45  }
 0x1c2   : > { %v2138_v18 = vadd.f32 %v7399_v30, %v1681_v52  ;;  %v1224_v34 = vadd.f32 %v1170_v53, %v727_v5  ;;  %v3945_v53 = vrot.slane %v3943_v54, 3 }
 0x1c4   : > { %3083 = vmatmul.bf16.gmra.mxu1 %v2968_v56  ;;  %3540 = vmatmul.bf16.gmra.mxu2 %v3425_v16  ;;  %v2729_v4 = vadd.f32 %v2673_v38, %v2138_v18  ;;  %v2676_v58 = vpop.f32.mrf.mxu0  ;;  %v3940_v38 = vshrl.u32 %v6536_v35, 16  ;;  %v730_v56 = vld [vmem:[%s6713_s28 + $0xd8] sm:$0xff]  ;;  %v2971_v16 = vrot.slane %v7507_v39, 2  ;;  %v3428_v18 = vrot.slane %v7510_v44, 2  ;;  %v733_v44 = vld [vmem:[%s6713_s28 + $0xf0] sm:$0xff] }
 0x1c6   : > { %2765 = vst [vmem:[%s6713_s28 + $0xb8] sm:$0xff] %v2729_v4  ;;  %4141 = vmatmul.bf16.gmra.mxu3 %v3929_v60  ;;  %v3429_v26 = vsel %vm2961_vm4, %v3426_v17, %v3428_v18 }
 0x1c7   : > { %v1628_v55 = vpop.f32.mrf.mxu2  ;;  %4589 = vmatmul.bf16.gmra.mxu0 %v4474_v49  ;;  %v4477_v49 = vrot.slane %v7519_v3, 3 }
 0x1c8   : > { %v1682_v30 = vadd.f32 %v1628_v55, %v1224_v34  ;;  %v2972_v34 = vsel %vm2961_vm4, %v2969_v1, %v2971_v16  ;;  %v7543_v1 = vld [vmem:[%s6708_s24 + $0x40] sm:$0xff] }
 0x1c9   : > { %v1172_v6 = vpop.f32.mrf.mxu1  ;;  %v7477_v48 = vpop.f32.mrf.mxu3  ;;  %v4478_v2 = vsel %vm4467_vm5, %v4475_v23, %v4477_v49  ;;  %v3430_v61 = vrot.slane %v7543_v1, 2  ;;  %v735_v1 = vld [vmem:[%s6713_s28 + $0x100] sm:$0xff] }
 0x1ca   : > { %v2139_v25 = vadd.f32 %v7417_v63, %v1682_v30  ;;  %v1225_v59 = vadd.f32 %v1172_v6, %v728_v11  ;;  %v7540_v11 = vld [vmem:[%s6708_s24 + $0x38] sm:$0xff] }
 0x1cc   : > { %v2730_v10 = vadd.f32 %v2676_v58, %v2139_v25  ;;  %v2678_v47 = vpop.f32.mrf.mxu0  ;;  %v731_v25 = vld [vmem:[%s6713_s28 + $0xe0] sm:$0xff] }
 0x1ce   : > { %2766 = vst [vmem:[%s6713_s28 + $0xc0] sm:$0xff] %v2730_v10 }
 0x1cf   : > { %v1630_v63 = vpop.f32.mrf.mxu2 }
 0x1d0   : > { %v1683_v20 = vadd.f32 %v1630_v63, %v1225_v59  ;;  %v4788_v63 = vld [vmem:[%s8128_s2 + $0x50] sm:$0xff] }
 0x1d1   : > { %v1175_v15 = vpop.f32.mrf.mxu1  ;;  %v7493_v28 = vpop.f32.mrf.mxu3  ;;  %4866 = vperm.xlu1 %6634, %v4788_v63  }
 0x1d2   : > { %v2140_v0 = vadd.f32 %v7433_v41, %v1683_v20  ;;  %v3938_v41 = vsel %vm3876_vm3, %v3928_v14, %v3937_v24  ;;  %v1226_v31 = vadd.f32 %v1175_v15, %v729_v8  ;;  %v3942_v14 = vrot.slane %v3940_v38, 2 }
 0x1d4   : > { %3088 = vmatmul.bf16.gmra.mxu1 %v2970_v62  ;;  %3545 = vmatmul.bf16.gmra.mxu2 %v3427_v27  ;;  %v2731_v29 = vadd.f32 %v2678_v47, %v2140_v0  ;;  %v2681_v33 = vpop.f32.mrf.mxu0  ;;  %v3946_v60 = vor.u32 %v3945_v53, %v3942_v14  ;;  %v732_v27 = vld [vmem:[%s6713_s28 + $0xe8] sm:$0xff]  ;;  %v2973_v0 = vrot.slane %v7540_v11, 2  ;;  %v7573_v53 = vld [vmem:[%s6708_s24 + $0x40] sm:$0xff] }
 0x1d6   : > { %2767 = vst [vmem:[%s6713_s28 + $0xc8] sm:$0xff] %v2731_v29  ;;  %4146 = vmatmul.bf16.gmra.mxu3 %v3938_v41  ;;  %v3947_v7 = vsel %vm3876_vm3, %v3937_v24, %v3946_v60  ;;  %v7552_v24 = vld [vmem:[%s6708_s24 + $0x40] sm:$0xff]  ;;  %v2974_v8 = vsel %vm2961_vm4, %v2971_v16, %v2973_v0 }
 0x1d7   : > { %v1633_v37 = vpop.f32.mrf.mxu2  ;;  %4594 = vmatmul.bf16.gmra.mxu0 %v4476_v36 }
 0x1d8   : > { %v1684_v19 = vadd.f32 %v1633_v37, %v1226_v31  ;;  %v3431_v31 = vsel %vm2961_vm4, %v3428_v18, %v3430_v61 }
 0x1d9   : > { %v1177_v43 = vpop.f32.mrf.mxu1  ;;  %v7513_v42 = vpop.f32.mrf.mxu3 }
 0x1da   : > { %v2141_v32 = vadd.f32 %v7450_v13, %v1684_v19  ;;  %v1227_v4 = vadd.f32 %v1177_v43, %v730_v56  ;;  %v4786_v19 = vld [vmem:[%s8128_s2 + $0x40] sm:$0xff]  ;;  %v7576_v56 = vld [vmem:[%s6708_s24 + $0x48] sm:$0xff] }
 0x1db   : > { %4856 = vperm.xlu2 %6635, %v4786_v19  }
 0x1dc   : > { %v2732_v51 = vadd.f32 %v2681_v33, %v2141_v32  ;;  %v2683_v52 = vpop.f32.mrf.mxu0  ;;  %v4479_v33 = vrot.slane %v7552_v24, 3 }
 0x1de   : > { %2768 = vst [vmem:[%s6713_s28 + $0xd0] sm:$0xff] %v2732_v51  ;;  %v4480_v43 = vsel %vm4467_vm5, %v4477_v49, %v4479_v33  ;;  %v7585_v49 = vld [vmem:[%s6708_s24 + $0x48] sm:$0xff] }
 0x1df   : > { %v1635_v13 = vpop.f32.mrf.mxu2 }
 0x1e0   : > { %v1685_v58 = vadd.f32 %v1635_v13, %v1227_v4  ;;  %v4790_v4 = vld [vmem:[%s8128_s2 + $0x60] sm:$0xff] }
 0x1e1   : > { %v1180_v5 = vpop.f32.mrf.mxu1  ;;  %v7529_v30 = vpop.f32.mrf.mxu3  ;;  %4876 = vperm.xlu0 %6633, %v4790_v4  }
 0x1e2   : > { %v2142_v55 = vadd.f32 %v7463_v57, %v1685_v58  ;;  %v1228_v9 = vadd.f32 %v1180_v5, %v731_v25  ;;  %v6537_v57 = vld [vmem:[%s6708_s24 + $0x50] sm:$0xff] }
 0x1e3   : > { %v3949_v22 = vshrl.u32 %v6537_v57, 16  ;;  %v3952_v12 = vshll.u32 %v6537_v57, 16 }
 0x1e4   : > { %3093 = vmatmul.bf16.gmra.mxu1 %v2972_v34  ;;  %3550 = vmatmul.bf16.gmra.mxu2 %v3429_v26  ;;  %v2733_v40 = vadd.f32 %v2683_v52, %v2142_v55  ;;  %v2686_v6 = vpop.f32.mrf.mxu0  ;;  %v734_v34 = vld [vmem:[%s6713_s28 + $0xf8] sm:$0xff]  ;;  %v2975_v26 = vrot.slane %v7573_v53, 2  ;;  %v3432_v55 = vrot.slane %v7576_v56, 2  ;;  %v737_v56 = vld [vmem:[%s6713_s28 + $0x110] sm:$0xff] }
 0x1e5   : > { %v3951_v15 = vrot.slane %v3949_v22, 2  ;;  %v3954_v62 = vrot.slane %v3952_v12, 3 }
 0x1e6   : > { %2769 = vst [vmem:[%s6713_s28 + $0xd8] sm:$0xff] %v2733_v40  ;;  %4151 = vmatmul.bf16.gmra.mxu3 %v3947_v7  ;;  %v2976_v25 = vsel %vm2961_vm4, %v2973_v0, %v2975_v26 }
 0x1e7   : > { %v1638_v10 = vpop.f32.mrf.mxu2  ;;  %4599 = vmatmul.bf16.gmra.mxu0 %v4478_v2  ;;  %v3955_v36 = vor.u32 %v3954_v62, %v3951_v15  ;;  %v7606_v62 = vld [vmem:[%s6708_s24 + $0x48] sm:$0xff] }
 0x1e8   : > { %v1686_v47 = vadd.f32 %v1638_v10, %v1228_v9  ;;  %v3433_v9 = vsel %vm2961_vm4, %v3430_v61, %v3432_v55 }
 0x1e9   : > { %v1182_v21 = vpop.f32.mrf.mxu1  ;;  %v7546_v59 = vpop.f32.mrf.mxu3  ;;  %v3956_v39 = vsel %vm3876_vm3, %v3946_v60, %v3955_v36 }
 0x1ea   : > { %v2143_v17 = vadd.f32 %v7477_v48, %v1686_v47  ;;  %v1229_v46 = vadd.f32 %v1182_v21, %v732_v27  ;;  %v4791_v47 = vld [vmem:[%s8128_s2 + $0x68] sm:$0xff]  ;;  %v7609_v27 = vld [vmem:[%s6708_s24 + $0x50] sm:$0xff] }
 0x1eb   : > { %4881 = vperm.xlu1 %6634, %v4791_v47  }
 0x1ec   : > { %v2734_v20 = vadd.f32 %v2686_v6, %v2143_v17  ;;  %v2688_v23 = vpop.f32.mrf.mxu0  ;;  %v4481_v6 = vrot.slane %v7585_v49, 3 }
 0x1ee   : > { %2770 = vst [vmem:[%s6713_s28 + $0xe0] sm:$0xff] %v2734_v20  ;;  %v4482_v21 = vsel %vm4467_vm5, %v4479_v33, %v4481_v6  ;;  %v7618_v33 = vld [vmem:[%s6708_s24 + $0x50] sm:$0xff] }
 0x1ef   : > { %v1640_v48 = vpop.f32.mrf.mxu2 }
 0x1f0   : > { %v1687_v29 = vadd.f32 %v1640_v48, %v1229_v46  ;;  %v4789_v46 = vld [vmem:[%s8128_s2 + $0x58] sm:$0xff] }
 0x1f1   : > { %v1185_v41 = vpop.f32.mrf.mxu1  ;;  %v7562_v37 = vpop.f32.mrf.mxu3  ;;  %4871 = vperm.xlu2 %6635, %v4789_v46  }
 0x1f2   : > { %v2144_v35 = vadd.f32 %v7493_v28, %v1687_v29  ;;  %v1230_v32 = vadd.f32 %v1185_v41, %v733_v44  ;;  %v6538_v28 = vld [vmem:[%s6708_s24 + $0x58] sm:$0xff] }
 0x1f3   : > { %v3958_v52 = vshrl.u32 %v6538_v28, 16  ;;  %v3961_v3 = vshll.u32 %v6538_v28, 16 }
 0x1f4   : > { %3098 = vmatmul.bf16.gmra.mxu1 %v2974_v8  ;;  %3555 = vmatmul.bf16.gmra.mxu2 %v3431_v31  ;;  %v2735_v38 = vadd.f32 %v2688_v23, %v2144_v35  ;;  %v2691_v54 = vpop.f32.mrf.mxu0  ;;  %v736_v8 = vld [vmem:[%s6713_s28 + $0x108] sm:$0xff]  ;;  %v2977_v31 = vrot.slane %v7606_v62, 2  ;;  %v3434_v35 = vrot.slane %v7609_v27, 2  ;;  %v2778_v27 = vld [vmem:[%s6713_s28] sm:$0xff] }
 0x1f5   : > { %v3960_v60 = vrot.slane %v3958_v52, 2  ;;  %v3963_v5 = vrot.slane %v3961_v3, 3 }
 0x1f6   : > { %2771 = vst [vmem:[%s6713_s28 + $0xe8] sm:$0xff] %v2735_v38  ;;  %4156 = vmatmul.bf16.gmra.mxu3 %v3956_v39  ;;  %v2978_v44 = vsel %vm2961_vm4, %v2975_v26, %v2977_v31 }
 0x1f7   : > { %v1643_v45 = vpop.f32.mrf.mxu2  ;;  %4604 = vmatmul.bf16.gmra.mxu0 %v4480_v43  ;;  %v3964_v2 = vor.u32 %v3963_v5, %v3960_v60  ;;  %v7639_v5 = vld [vmem:[%s6708_s24 + $0x50] sm:$0xff] }
 0x1f8   : > { %v1688_v51 = vadd.f32 %v1643_v45, %v1230_v32  ;;  %v3435_v32 = vsel %vm2961_vm4, %v3432_v55, %v3434_v35 }
 0x1f9   : > { %v1187_v14 = vpop.f32.mrf.mxu1  ;;  %v7579_v18 = vpop.f32.mrf.mxu3  ;;  %v3965_v11 = vsel %vm3876_vm3, %v3955_v36, %v3964_v2 }
 0x1fa   : > { %v2145_v16 = vadd.f32 %v7513_v42, %v1688_v51  ;;  %v1231_v50 = vadd.f32 %v1187_v14, %v734_v34  ;;  %v4793_v51 = vld [vmem:[%s8128_s2 + $0x78] sm:$0xff] }
 0x1fb   : > { %4891 = vperm.xlu0 %6633, %v4793_v51   ;;  %v7642_v34 = vld [vmem:[%s6708_s24 + $0x58] sm:$0xff] }
 0x1fc   : > { %v2736_v13 = vadd.f32 %v2691_v54, %v2145_v16  ;;  %v2693_v58 = vpop.f32.mrf.mxu0  ;;  %v4483_v54 = vrot.slane %v7618_v33, 3 }
 0x1fe   : > { %2772 = vst [vmem:[%s6713_s28 + $0xf0] sm:$0xff] %v2736_v13  ;;  %v4484_v14 = vsel %vm4467_vm5, %v4481_v6, %v4483_v54  ;;  %v7651_v6 = vld [vmem:[%s6708_s24 + $0x58] sm:$0xff] }
 0x1ff   : > { %v1645_v42 = vpop.f32.mrf.mxu2 }
 0x200   : > { %v1689_v40 = vadd.f32 %v1645_v42, %v1231_v50  ;;  %v4794_v50 = vld [vmem:[%s8128_s2 + $0x80] sm:$0xff] }
 0x201   : > { %v1190_v7 = vpop.f32.mrf.mxu1  ;;  %v7595_v10 = vpop.f32.mrf.mxu3  ;;  %4896 = vperm.xlu1 %6634, %v4794_v50  }
 0x202   : > { %v2146_v57 = vadd.f32 %v7529_v30, %v1689_v40  ;;  %v1232_v17 = vadd.f32 %v1190_v7, %v735_v1  ;;  %v6539_v30 = vld [vmem:[%s6708_s24 + $0x60] sm:$0xff] }
 0x203   : > { %v3967_v23 = vshrl.u32 %v6539_v30, 16  ;;  %v3970_v24 = vshll.u32 %v6539_v30, 16 }
 0x204   : > { %3103 = vmatmul.bf16.gmra.mxu1 %v2976_v25  ;;  %3560 = vmatmul.bf16.gmra.mxu2 %v3433_v9  ;;  %v2737_v22 = vadd.f32 %v2693_v58, %v2146_v57  ;;  %v2696_v12 = vpop.f32.mrf.mxu0  ;;  %v738_v25 = vld [vmem:[%s6713_s28 + $0x118] sm:$0xff]  ;;  %v2979_v9 = vrot.slane %v7639_v5, 2  ;;  %v3436_v57 = vrot.slane %v7642_v34, 2 }
 0x205   : > { %v3969_v36 = vrot.slane %v3967_v23, 2  ;;  %v3972_v41 = vrot.slane %v3970_v24, 3 }
 0x206   : > { %2773 = vst [vmem:[%s6713_s28 + $0xf8] sm:$0xff] %v2737_v22  ;;  %4161 = vmatmul.bf16.gmra.mxu3 %v3965_v11  ;;  %v2980_v1 = vsel %vm2961_vm4, %v2977_v31, %v2979_v9  ;;  %v4817_v31 = vpop.permute.xlu0 %4816 }
 0x207   : > { %v1648_v63 = vpop.f32.mrf.mxu2  ;;  %4609 = vmatmul.bf16.gmra.mxu0 %v4482_v21  ;;  %v3973_v43 = vor.u32 %v3972_v41, %v3969_v36  ;;  %v7672_v41 = vld [vmem:[%s6708_s24 + $0x58] sm:$0xff] }
 0x208   : > { %v1690_v20 = vadd.f32 %v1648_v63, %v1232_v17  ;;  %v3437_v17 = vsel %vm2961_vm4, %v3434_v35, %v3436_v57 }
 0x209   : > { %v1192_v15 = vpop.f32.mrf.mxu1  ;;  %v7612_v61 = vpop.f32.mrf.mxu3  ;;  %v3974_v53 = vsel %vm3876_vm3, %v3964_v2, %v3973_v43 }
 0x20a   : > { %v2147_v0 = vadd.f32 %v7546_v59, %v1690_v20  ;;  %v1233_v19 = vadd.f32 %v1192_v15, %v736_v8  ;;  %v4792_v20 = vld [vmem:[%s8128_s2 + $0x70] sm:$0xff]  ;;  %v7675_v8 = vld [vmem:[%s6708_s24 + $0x60] sm:$0xff] }
 0x20b   : > { %4886 = vperm.xlu2 %6635, %v4792_v20   ;;  %v3438_v51 = vrot.slane %v7675_v8, 2 }
 0x20c   : > { %v2738_v48 = vadd.f32 %v2696_v12, %v2147_v0  ;;  %v2698_v29 = vpop.f32.mrf.mxu0  ;;  %v4485_v12 = vrot.slane %v7651_v6, 3  ;;  %v6542_v6 = vld [vmem:[%s6708_s24 + $0x78] sm:$0xff] }
 0x20e   : > { %2774 = vst [vmem:[%s6713_s28 + $0x100] sm:$0xff] %v2738_v48  ;;  %v4486_v15 = vsel %vm4467_vm5, %v4483_v54, %v4485_v12 }
 0x20f   : > { %v1650_v59 = vpop.f32.mrf.mxu2 }
 0x210   : > { %v1691_v38 = vadd.f32 %v1650_v59, %v1233_v19  ;;  %v4796_v59 = vld [vmem:[%s8128_s2 + $0x90] sm:$0xff] }
 0x211   : > { %v1195_v39 = vpop.f32.mrf.mxu1  ;;  %v7628_v45 = vpop.f32.mrf.mxu3  ;;  %4906 = vperm.xlu0 %6633, %v4796_v59  }
 0x212   : > { %v2148_v28 = vadd.f32 %v7562_v37, %v1691_v38  ;;  %v1234_v16 = vadd.f32 %v1195_v39, %v737_v56  ;;  %v6540_v37 = vld [vmem:[%s6708_s24 + $0x68] sm:$0xff] }
 0x213   : > { %v3976_v58 = vshrl.u32 %v6540_v37, 16  ;;  %v3979_v49 = vshll.u32 %v6540_v37, 16  ;;  %v3439_v37 = vsel %vm2961_vm4, %v3436_v57, %v3438_v51 }
 0x214   : > { %3108 = vmatmul.bf16.gmra.mxu1 %v2978_v44  ;;  %3565 = vmatmul.bf16.gmra.mxu2 %v3435_v32  ;;  %v2739_v52 = vadd.f32 %v2698_v29, %v2148_v28  ;;  %v2701_v3 = vpop.f32.mrf.mxu0  ;;  %v2779_v32 = vld [vmem:[%s6713_s28 + $0x8] sm:$0xff]  ;;  %v2981_v28 = vrot.slane %v7672_v41, 2 }
 0x215   : > { %v3978_v2 = vrot.slane %v3976_v58, 2  ;;  %v3981_v7 = vrot.slane %v3979_v49, 3 }
 0x216   : > { %2775 = vst [vmem:[%s6713_s28 + $0x108] sm:$0xff] %v2739_v52  ;;  %4166 = vmatmul.bf16.gmra.mxu3 %v3974_v53 }
 0x217   : > { %v1653_v4 = vpop.f32.mrf.mxu2  ;;  %4614 = vmatmul.bf16.gmra.mxu0 %v4484_v14  ;;  %v3982_v21 = vor.u32 %v3981_v7, %v3978_v2 }
 0x218   : > { %v1692_v13 = vadd.f32 %v1653_v4, %v1234_v16  ;;  %v2982_v16 = vsel %vm2961_vm4, %v2979_v9, %v2981_v28  ;;  %v4797_v4 = vld [vmem:[%s8128_s2 + $0x98] sm:$0xff] }
 0x219   : > { %v1197_v60 = vpop.f32.mrf.mxu1  ;;  %v7645_v55 = vpop.f32.mrf.mxu3  ;;  %v3983_v62 = vsel %vm3876_vm3, %v3973_v43, %v3982_v21  ;;  %v7684_v43 = vld [vmem:[%s6708_s24 + $0x60] sm:$0xff]  ;;  %4911 = vperm.xlu1 %6634, %v4797_v4  }
 0x21a   : > { %v2149_v26 = vadd.f32 %v7579_v18, %v1692_v13  ;;  %v1235_v47 = vadd.f32 %v1197_v60, %v738_v25  ;;  %v4487_v14 = vrot.slane %v7684_v43, 3  ;;  %v4822_v60 = vpop.permute.xlu0 %4821  ;;  %v4799_v25 = vld [vmem:[%s8128_s2 + $0xa8] sm:$0xff]  ;;  %v4805_v43 = vld [vmem:[%s8128_s2 + $0xd8] sm:$0xff] }
 0x21b   : > { %4921 = vperm.xlu0 %6633, %v4799_v25  }
 0x21c   : > { %v2740_v42 = vadd.f32 %v2701_v3, %v2149_v26  ;;  %v2703_v40 = vpop.f32.mrf.mxu0  ;;  %v4488_v26 = vsel %vm4467_vm5, %v4485_v12, %v4487_v14  ;;  %v7717_v12 = vld [vmem:[%s6708_s24 + $0x60] sm:$0xff] }
 0x21e   : > { %2776 = vst [vmem:[%s6713_s28 + $0x110] sm:$0xff] %v2740_v42  ;;  %v2780_v42 = vld [vmem:[%s6713_s28 + $0x10] sm:$0xff] }
 0x21f   : > { %v1655_v18 = vpop.f32.mrf.mxu2 }
 0x220   : > { %v1693_v22 = vadd.f32 %v1655_v18, %v1235_v47  ;;  %v3994_v18 = vshrl.u32 %v6542_v6, 16 }
 0x221   : > { %v3074_v11 = vpop.f32.mrf.mxu1  ;;  %v7661_v63 = vpop.f32.mrf.mxu3 }
 0x222   : > { %v2150_v30 = vadd.f32 %v7595_v10, %v1693_v22  ;;  %v3164_v0 = vadd.f32 %v3074_v11, %v2778_v27  ;;  %v6541_v10 = vld [vmem:[%s6708_s24 + $0x70] sm:$0xff]  ;;  %v4827_v11 = vpop.permute.xlu1 %4826 }
 0x223   : > { %v3985_v29 = vshrl.u32 %v6541_v10, 16  ;;  %v3988_v33 = vshll.u32 %v6541_v10, 16 }
 0x224   : > { %3113 = vmatmul.bf16.gmra.mxu1 %v2980_v1  ;;  %3570 = vmatmul.bf16.gmra.mxu2 %v3437_v17  ;;  %v2741_v23 = vadd.f32 %v2703_v40, %v2150_v30  ;;  %v4580_v24 = vpop.f32.mrf.mxu0  ;;  %v3997_v1 = vshll.u32 %v6542_v6, 16  ;;  %v4800_v17 = vld [vmem:[%s8128_s2 + $0xb0] sm:$0xff]  ;;  %v4806_v6 = vld [vmem:[%s8128_s2 + $0xe0] sm:$0xff] }
 0x225   : > { %v3987_v39 = vrot.slane %v3985_v29, 2  ;;  %v3990_v44 = vrot.slane %v3988_v33, 3  ;;  %4926 = vperm.xlu1 %6634, %v4800_v17  }
 0x226   : > { %2777 = vst [vmem:[%s6713_s28 + $0x118] sm:$0xff] %v2741_v23  ;;  %4171 = vmatmul.bf16.gmra.mxu3 %v3983_v62  ;;  %v3999_v10 = vrot.slane %v3997_v1, 3  ;;  %v2783_v1 = vld [vmem:[%s6713_s28 + $0x28] sm:$0xff] }
 0x227   : > { %v3531_v46 = vpop.f32.mrf.mxu2  ;;  %4619 = vmatmul.bf16.gmra.mxu0 %v4486_v15  ;;  %v7691_v53 = vor.u32 %v3990_v44, %v3987_v39  ;;  %v4795_v15 = vld [vmem:[%s8128_s2 + $0x88] sm:$0xff] }
 0x228   : > { %v3621_v48 = vadd.f32 %v3531_v46, %v3164_v0  ;;  %v3996_v0 = vrot.slane %v3994_v18, 2  ;;  %4901 = vperm.xlu2 %6635, %v4795_v15   ;;  %v2781_v46 = vld [vmem:[%s6713_s28 + $0x18] sm:$0xff] }
 0x229   : > { %v3076_v36 = vpop.f32.mrf.mxu1  ;;  %v7678_v19 = vpop.f32.mrf.mxu3  ;;  %v3992_v50 = vsel %vm3876_vm3, %v3982_v21, %v7691_v53  ;;  %v7720_v21 = vld [vmem:[%s6708_s24 + $0x68] sm:$0xff] }
 0x22a   : > { %v4212_v35 = vadd.f32 %v7612_v61, %v3621_v48  ;;  %v3165_v52 = vadd.f32 %v3076_v36, %v2779_v32  ;;  %v2983_v48 = vrot.slane %v7717_v12, 2  ;;  %v7742_v39 = vor.u32 %v3999_v10, %v3996_v0  ;;  %v4832_v41 = vpop.permute.xlu1 %4831 }
 0x22c   : > { %v4670_v38 = vadd.f32 %v4580_v24, %v4212_v35  ;;  %v4582_v54 = vpop.f32.mrf.mxu0  ;;  %v7729_v24 = vld [vmem:[%s6708_s24 + $0x68] sm:$0xff]  ;;  %v4802_v35 = vld [vmem:[%s8128_s2 + $0xc0] sm:$0xff]  ;;  %v2984_v32 = vsel %vm2961_vm4, %v2981_v28, %v2983_v48 }
 0x22d   : > { %4936 = vperm.xlu0 %6633, %v4802_v35  }
 0x22e   : > { %4706 = vst [vmem:[%s6713_s28] sm:$0xff] %v4670_v38  ;;  %v4994_v49 = vmul.f32 %v4817_v31, %v4670_v38  ;;  %v4489_v31 = vrot.slane %v7729_v24, 3  ;;  %v4811_v24 = vld [vmem:[%s8128_s2 + $0x108] sm:$0xff] }
 0x22f   : > { %v3533_v61 = vpop.f32.mrf.mxu2 }
 0x230   : > { %v3622_v3 = vadd.f32 %v3533_v61, %v3165_v52  ;;  %v5072_v7 = vmul.f32 %v4994_v49, %v4994_v49  ;;  %v4803_v61 = vld [vmem:[%s8128_s2 + $0xc8] sm:$0xff]  ;;  %v4490_v8 = vsel %vm4467_vm5, %v4487_v14, %v4489_v31 }
 0x231   : > { %v3079_v56 = vpop.f32.mrf.mxu1  ;;  %v7703_v58 = vpop.f32.mrf.mxu3  ;;  %4941 = vperm.xlu1 %6634, %v4803_v61  }
 0x232   : > { %v4213_v13 = vadd.f32 %v7628_v45, %v3622_v3  ;;  %v3166_v40 = vadd.f32 %v3079_v56, %v2780_v42  ;;  %v7778_v42 = vld [vmem:[%s6708_s24 + $0x70] sm:$0xff] }
 0x234   : > { %3118 = vmatmul.bf16.gmra.mxu1 %v2982_v16  ;;  %3575 = vmatmul.bf16.gmra.mxu2 %v3439_v37  ;;  %v4671_v5 = vadd.f32 %v4582_v54, %v4213_v13  ;;  %v4585_v34 = vpop.f32.mrf.mxu0 }
 0x235   : > { %4951 = vperm.xlu0 %6633, %v4805_v43  }
 0x236   : > { %4707 = vst [vmem:[%s6713_s28 + $0x8] sm:$0xff] %v4671_v5  ;;  %v4995_v45 = vmul.f32 %v4822_v60, %v4671_v5  ;;  %4176 = vmatmul.bf16.gmra.mxu3 %v3992_v50  ;;  %v7775_v50 = vld [vmem:[%s6708_s24 + $0x68] sm:$0xff] }
 0x237   : > { %v3536_v2 = vpop.f32.mrf.mxu2  ;;  %4624 = vmatmul.bf16.gmra.mxu0 %v4488_v26  ;;  %v2985_v17 = vrot.slane %v7775_v50, 2  ;;  %v4807_v50 = vld [vmem:[%s8128_s2 + $0xe8] sm:$0xff] }
 0x238   : > { %v3623_v9 = vadd.f32 %v3536_v2, %v3166_v40  ;;  %v5031_v57 = vadd.f32 %v4995_v45, %v4994_v49  ;;  %v5073_v47 = vmul.f32 %v4995_v45, %v4995_v45  ;;  %v6543_v49 = vld [vmem:[%s6708_s24 + $0x80] sm:$0xff]  ;;  %v4837_v40 = vpop.permute.xlu2 %4836 }
 0x239   : > { %v3081_v22 = vpop.f32.mrf.mxu1  ;;  %v7726_v23 = vpop.f32.mrf.mxu3  ;;  %v4003_v26 = vshrl.u32 %v6543_v49, 16  ;;  %v4006_v45 = vshll.u32 %v6543_v49, 16  ;;  %4956 = vperm.xlu1 %6634, %v4806_v6   ;;  %v2785_v6 = vld [vmem:[%s6713_s28 + $0x38] sm:$0xff] }
 0x23a   : > { %v4214_v30 = vadd.f32 %v7645_v55, %v3623_v9  ;;  %v5108_v20 = vadd.f32 %v5073_v47, %v5072_v7  ;;  %v3440_v55 = vrot.slane %v7720_v21, 2  ;;  %v3167_v29 = vadd.f32 %v3081_v22, %v2781_v46  ;;  %v7787_v9 = vld [vmem:[%s6708_s24 + $0x70] sm:$0xff] }
 0x23b   : > { %v4005_v22 = vrot.slane %v4003_v26, 2 }
 0x23c   : > { %v4672_v62 = vadd.f32 %v4585_v34, %v4214_v30  ;;  %v4587_v27 = vpop.f32.mrf.mxu0  ;;  %v3441_v52 = vsel %vm2961_vm4, %v3438_v51, %v3440_v55  ;;  %v4001_v51 = vsel %vm3876_vm3, %v7691_v53, %v7742_v39 }
 0x23e   : > { %4708 = vst [vmem:[%s6713_s28 + $0x10] sm:$0xff] %v4672_v62  ;;  %v4996_v33 = vmul.f32 %v4827_v11, %v4672_v62  ;;  %v4008_v11 = vrot.slane %v4006_v45, 3  ;;  %v4491_v62 = vrot.slane %v7787_v9, 3 }
 0x23f   : > { %v3538_v36 = vpop.f32.mrf.mxu2 }
 0x240   : > { %v3624_v59 = vadd.f32 %v3538_v36, %v3167_v29  ;;  %v5032_v38 = vadd.f32 %v5031_v57, %v4996_v33  ;;  %v5074_v54 = vmul.f32 %v4996_v33, %v4996_v33  ;;  %v4798_v57 = vld [vmem:[%s8128_s2 + $0xa0] sm:$0xff]  ;;  %v7800_v29 = vor.u32 %v4008_v11, %v4005_v22  ;;  %v4842_v12 = vpop.permute.xlu2 %4841 }
 0x241   : > { %v3084_v44 = vpop.f32.mrf.mxu1  ;;  %v7758_v16 = vpop.f32.mrf.mxu3  ;;  %4916 = vperm.xlu2 %6635, %v4798_v57   ;;  %v2986_v36 = vsel %vm2961_vm4, %v2983_v48, %v2985_v17  ;;  %v4801_v48 = vld [vmem:[%s8128_s2 + $0xb8] sm:$0xff] }
 0x242   : > { %v4215_v3 = vadd.f32 %v7661_v63, %v3624_v59  ;;  %v5109_v56 = vadd.f32 %v5108_v20, %v5074_v54  ;;  %v2782_v63 = vld [vmem:[%s6713_s28 + $0x20] sm:$0xff]  ;;  %v4809_v59 = vld [vmem:[%s8128_s2 + $0xf8] sm:$0xff] }
 0x243   : > { %v3168_v4 = vadd.f32 %v3084_v44, %v2782_v63  ;;  %4971 = vperm.xlu1 %6634, %v4809_v59   ;;  %v7839_v63 = vld [vmem:[%s6708_s24 + $0x78] sm:$0xff] }
 0x244   : > { %3123 = vmatmul.bf16.gmra.mxu1 %v2984_v32  ;;  %3580 = vmatmul.bf16.gmra.mxu2 %v3441_v52  ;;  %v4673_v28 = vadd.f32 %v4587_v27, %v4215_v3  ;;  %v4590_v37 = vpop.f32.mrf.mxu0  ;;  %v4808_v27 = vld [vmem:[%s8128_s2 + $0xf0] sm:$0xff]  ;;  %v4010_v32 = vsel %vm3876_vm3, %v7742_v39, %v7800_v29 }
 0x245   : > { %4966 = vperm.xlu0 %6633, %v4808_v27   ;;  %v2784_v52 = vld [vmem:[%s6713_s28 + $0x30] sm:$0xff] }
 0x246   : > { %4709 = vst [vmem:[%s6713_s28 + $0x18] sm:$0xff] %v4673_v28  ;;  %v4997_v13 = vmul.f32 %v4832_v41, %v4673_v28  ;;  %4181 = vmatmul.bf16.gmra.mxu3 %v4001_v51  ;;  %v7836_v51 = vld [vmem:[%s6708_s24 + $0x70] sm:$0xff] }
 0x247   : > { %v3541_v60 = vpop.f32.mrf.mxu2  ;;  %4629 = vmatmul.bf16.gmra.mxu0 %v4490_v8 }
 0x248   : > { %v3625_v14 = vadd.f32 %v3541_v60, %v3168_v4  ;;  %v5033_v5 = vadd.f32 %v5032_v38, %v4997_v13  ;;  %v5075_v34 = vmul.f32 %v4997_v13, %v4997_v13  ;;  %v4812_v13 = vld [vmem:[%s8128_s2 + $0x110] sm:$0xff] }
 0x249   : > { %v3086_v53 = vpop.f32.mrf.mxu1  ;;  %v7784_v25 = vpop.f32.mrf.mxu3  ;;  %4931 = vperm.xlu2 %6635, %v4801_v48  }
 0x24a   : > { %v4216_v2 = vadd.f32 %v7678_v19, %v3625_v14  ;;  %v5110_v7 = vadd.f32 %v5109_v56, %v5075_v34  ;;  %v3442_v19 = vrot.slane %v7778_v42, 2  ;;  %v3169_v30 = vadd.f32 %v3086_v53, %v2783_v1  ;;  %v6544_v56 = vld [vmem:[%s6708_s24 + $0x88] sm:$0xff]  ;;  %v4847_v14 = vpop.permute.xlu0 %4846  ;;  %v4804_v34 = vld [vmem:[%s8128_s2 + $0xd0] sm:$0xff] }
 0x24b   : > { %v4012_v39 = vshrl.u32 %v6544_v56, 16  ;;  %v4015_v4 = vshll.u32 %v6544_v56, 16  ;;  %4986 = vperm.xlu1 %6634, %v4812_v13   ;;  %v7897_v56 = vld [vmem:[%s6708_s24 + $0x80] sm:$0xff] }
 0x24c   : > { %v4674_v47 = vadd.f32 %v4590_v37, %v4216_v2  ;;  %v4592_v18 = vpop.f32.mrf.mxu0  ;;  %v3443_v35 = vsel %vm2961_vm4, %v3440_v55, %v3442_v19  ;;  %v2987_v2 = vrot.slane %v7836_v51, 2  ;;  %v4813_v51 = vld [vmem:[%s8128_s2 + $0x118] sm:$0xff] }
 0x24d   : > { %4981 = vperm.xlu0 %6633, %v4811_v24   ;;  %v4017_v45 = vrot.slane %v4015_v4, 3 }
 0x24e   : > { %4710 = vst [vmem:[%s6713_s28 + $0x20] sm:$0xff] %v4674_v47  ;;  %v4998_v20 = vmul.f32 %v4837_v40, %v4674_v47  ;;  %v4014_v40 = vrot.slane %v4012_v39, 2  ;;  %v2787_v39 = vld [vmem:[%s6713_s28 + $0x48] sm:$0xff] }
 0x24f   : > { %v3543_v15 = vpop.f32.mrf.mxu2 }
 0x250   : > { %v3626_v0 = vadd.f32 %v3543_v15, %v3169_v30  ;;  %v5034_v10 = vadd.f32 %v5033_v5, %v4998_v20  ;;  %v5076_v46 = vmul.f32 %v4998_v20, %v4998_v20  ;;  %v7848_v5 = vld [vmem:[%s6708_s24 + $0x78] sm:$0xff]  ;;  %v7858_v30 = vor.u32 %v4017_v45, %v4014_v40 }
 0x251   : > { %v3089_v33 = vpop.f32.mrf.mxu1  ;;  %v7816_v44 = vpop.f32.mrf.mxu3  ;;  %4946 = vperm.xlu2 %6635, %v4804_v34   ;;  %v2988_v15 = vsel %vm2961_vm4, %v2985_v17, %v2987_v2 }
 0x252   : > { %v4217_v38 = vadd.f32 %v7703_v58, %v3626_v0  ;;  %v5111_v54 = vadd.f32 %v5110_v7, %v5076_v46  ;;  %v4492_v58 = vsel %vm4467_vm5, %v4489_v31, %v4491_v62  ;;  %v3170_v61 = vadd.f32 %v3089_v33, %v2784_v52  ;;  %v4852_v33 = vpop.permute.xlu1 %4851 }
 0x254   : > { %3128 = vmatmul.bf16.gmra.mxu1 %v2986_v36  ;;  %3585 = vmatmul.bf16.gmra.mxu2 %v3443_v35  ;;  %v4675_v21 = vadd.f32 %v4592_v18, %v4217_v38  ;;  %v4595_v55 = vpop.f32.mrf.mxu0  ;;  %v4493_v18 = vrot.slane %v7848_v5, 3  ;;  %v6545_v38 = vld [vmem:[%s6708_s24 + $0x90] sm:$0xff] }
 0x256   : > { %4711 = vst [vmem:[%s6713_s28 + $0x28] sm:$0xff] %v4675_v21  ;;  %v4999_v3 = vmul.f32 %v4842_v12, %v4675_v21  ;;  %4186 = vmatmul.bf16.gmra.mxu3 %v4010_v32  ;;  %v4494_v42 = vsel %vm4467_vm5, %v4491_v62, %v4493_v18  ;;  %v4021_v62 = vshrl.u32 %v6545_v38, 16 }
 0x257   : > { %v3546_v41 = vpop.f32.mrf.mxu2  ;;  %4634 = vmatmul.bf16.gmra.mxu0 %v4492_v58  ;;  %v4024_v58 = vshll.u32 %v6545_v38, 16 }
 0x258   : > { %v3627_v31 = vadd.f32 %v3546_v41, %v3170_v61  ;;  %v5035_v28 = vadd.f32 %v5034_v10, %v4999_v3  ;;  %v5077_v37 = vmul.f32 %v4999_v3, %v4999_v3  ;;  %v4857_v3 = vpop.permute.xlu2 %4856  ;;  %v4810_v41 = vld [vmem:[%s8128_s2 + $0x100] sm:$0xff] }
 0x259   : > { %v3091_v8 = vpop.f32.mrf.mxu1  ;;  %v7845_v43 = vpop.f32.mrf.mxu3  ;;  %4961 = vperm.xlu2 %6635, %v4807_v50   ;;  %v7937_v50 = vld [vmem:[%s6708_s24 + $0x80] sm:$0xff] }
 0x25a   : > { %v4218_v49 = vadd.f32 %v7726_v23, %v3627_v31  ;;  %v5112_v60 = vadd.f32 %v5111_v54, %v5077_v37  ;;  %v3444_v23 = vrot.slane %v7839_v63, 2  ;;  %v3171_v7 = vadd.f32 %v3091_v8, %v2785_v6 }
 0x25b   : > { %v4026_v37 = vrot.slane %v4024_v58, 3 }
 0x25c   : > { %v4676_v26 = vadd.f32 %v4595_v55, %v4218_v49  ;;  %v4597_v53 = vpop.f32.mrf.mxu0  ;;  %v3445_v27 = vsel %vm2961_vm4, %v3442_v19, %v3444_v23  ;;  %v2786_v19 = vld [vmem:[%s6713_s28 + $0x40] sm:$0xff]  ;;  %v7888_v55 = vld [vmem:[%s6708_s24 + $0x78] sm:$0xff] }
 0x25d   : > { %v2989_v8 = vrot.slane %v7888_v55, 2 }
 0x25e   : > { %4712 = vst [vmem:[%s6713_s28 + $0x30] sm:$0xff] %v4676_v26  ;;  %v5000_v57 = vmul.f32 %v4847_v14, %v4676_v26 }
 0x25f   : > { %v3548_v47 = vpop.f32.mrf.mxu2  ;;  %v2990_v45 = vsel %vm2961_vm4, %v2987_v2, %v2989_v8 }
 0x260   : > { %v3628_v22 = vadd.f32 %v3548_v47, %v3171_v7  ;;  %v5036_v11 = vadd.f32 %v5035_v28, %v5000_v57  ;;  %v5078_v1 = vmul.f32 %v5000_v57, %v5000_v57  ;;  %v4023_v28 = vrot.slane %v4021_v62, 2 }
 0x261   : > { %v3094_v20 = vpop.f32.mrf.mxu1  ;;  %v7871_v46 = vpop.f32.mrf.mxu3  ;;  %4976 = vperm.xlu2 %6635, %v4810_v41  }
 0x262   : > { %v4219_v0 = vadd.f32 %v7758_v16, %v3628_v22  ;;  %v5113_v10 = vadd.f32 %v5112_v60, %v5078_v1  ;;  %v4019_v16 = vsel %vm3876_vm3, %v7800_v29, %v7858_v30  ;;  %v3172_v35 = vadd.f32 %v3094_v20, %v2786_v19  ;;  %v7891_v29 = vld [vmem:[%s6708_s24 + $0x80] sm:$0xff]  ;;  %v4862_v22 = vpop.permute.xlu0 %4861  ;;  %v4867_v19 = vpop.permute.xlu1 %4866 }
 0x263   : > { %v3446_v4 = vrot.slane %v7891_v29, 2  ;;  %v4495_v60 = vrot.slane %v7897_v56, 3 }
 0x264   : > { %3133 = vmatmul.bf16.gmra.mxu1 %v2988_v15  ;;  %3590 = vmatmul.bf16.gmra.mxu2 %v3445_v27  ;;  %v4677_v17 = vadd.f32 %v4597_v53, %v4219_v0  ;;  %v4600_v36 = vpop.f32.mrf.mxu0  ;;  %v7907_v53 = vor.u32 %v4026_v37, %v4023_v28  ;;  %v6546_v15 = vld [vmem:[%s6708_s24 + $0x98] sm:$0xff] }
 0x265   : > { %v3447_v6 = vsel %vm2961_vm4, %v3444_v23, %v3446_v4  ;;  %v4496_v63 = vsel %vm4467_vm5, %v4493_v18, %v4495_v60  ;;  %v2788_v23 = vld [vmem:[%s6713_s28 + $0x50] sm:$0xff] }
 0x266   : > { %4713 = vst [vmem:[%s6713_s28 + $0x38] sm:$0xff] %v4677_v17  ;;  %v5001_v59 = vmul.f32 %v4852_v33, %v4677_v17  ;;  %4191 = vmatmul.bf16.gmra.mxu3 %v4019_v16  ;;  %v4033_v17 = vshll.u32 %v6546_v15, 16 }
 0x267   : > { %v3551_v54 = vpop.f32.mrf.mxu2  ;;  %4639 = vmatmul.bf16.gmra.mxu0 %v4494_v42 }
 0x268   : > { %v3629_v12 = vadd.f32 %v3551_v54, %v3172_v35  ;;  %v5037_v9 = vadd.f32 %v5036_v11, %v5001_v59  ;;  %v5079_v48 = vmul.f32 %v5001_v59, %v5001_v59  ;;  %v7946_v35 = vld [vmem:[%s6708_s24 + $0x88] sm:$0xff] }
 0x269   : > { %v3096_v21 = vpop.f32.mrf.mxu1  ;;  %v7894_v61 = vpop.f32.mrf.mxu3  ;;  %4991 = vperm.xlu2 %6635, %v4813_v51   ;;  %v7980_v51 = vld [vmem:[%s6708_s24 + $0x88] sm:$0xff] }
 0x26a   : > { %v4220_v32 = vadd.f32 %v7784_v25, %v3629_v12  ;;  %v5114_v52 = vadd.f32 %v5113_v10, %v5079_v48  ;;  %v3173_v25 = vadd.f32 %v3096_v21, %v2787_v39  ;;  %v4030_v10 = vshrl.u32 %v6546_v15, 16 }
 0x26b   : > { %v4035_v12 = vrot.slane %v4033_v17, 3  ;;  %v2991_v48 = vrot.slane %v7937_v50, 2 }
 0x26c   : > { %v4678_v24 = vadd.f32 %v4600_v36, %v4220_v32  ;;  %v4602_v31 = vpop.f32.mrf.mxu0  ;;  %v4032_v54 = vrot.slane %v4030_v10, 2  ;;  %v4497_v32 = vrot.slane %v7946_v35, 3  ;;  %v8015_v35 = vld [vmem:[%s6708_s24 + $0x90] sm:$0xff] }
 0x26d   : > { %v2992_v28 = vsel %vm2961_vm4, %v2989_v8, %v2991_v48 }
 0x26e   : > { %4714 = vst [vmem:[%s6713_s28 + $0x40] sm:$0xff] %v4678_v24  ;;  %v5002_v13 = vmul.f32 %v4857_v3, %v4678_v24  ;;  %v7953_v24 = vor.u32 %v4035_v12, %v4032_v54  ;;  %v4498_v29 = vsel %vm4467_vm5, %v4495_v60, %v4497_v32 }
 0x26f   : > { %v3553_v49 = vpop.f32.mrf.mxu2 }
 0x270   : > { %v3630_v14 = vadd.f32 %v3553_v49, %v3173_v25  ;;  %v5038_v34 = vadd.f32 %v5037_v9, %v5002_v13  ;;  %v5080_v26 = vmul.f32 %v5002_v13, %v5002_v13  ;;  %v2789_v9 = vld [vmem:[%s6713_s28 + $0x58] sm:$0xff]  ;;  %v4872_v49 = vpop.permute.xlu2 %4871 }
 0x271   : > { %v3099_v40 = vpop.f32.mrf.mxu1  ;;  %v7920_v47 = vpop.f32.mrf.mxu3 }
 0x272   : > { %v4221_v7 = vadd.f32 %v7816_v44, %v3630_v14  ;;  %v5115_v57 = vadd.f32 %v5114_v52, %v5080_v26  ;;  %v4028_v44 = vsel %vm3876_vm3, %v7858_v30, %v7907_v53  ;;  %v3174_v1 = vadd.f32 %v3099_v40, %v2788_v23  ;;  %v7940_v30 = vld [vmem:[%s6708_s24 + $0x88] sm:$0xff]  ;;  %v3765_v14 = vld [vmem:[%s6708_s24 + $0xa0] sm:$0x7]  ;;  %v4877_v23 = vpop.permute.xlu0 %4876 }
 0x273   : > { %v3448_v62 = vrot.slane %v7940_v30, 2  ;;  %v3856_v8 = vunpack.c.l.b16 %v3765_v14 }
 0x274   : > { %3138 = vmatmul.bf16.gmra.mxu1 %v2990_v45  ;;  %3595 = vmatmul.bf16.gmra.mxu2 %v3447_v6  ;;  %v4679_v2 = vadd.f32 %v4602_v31, %v4221_v7  ;;  %v4605_v11 = vpop.f32.mrf.mxu0 }
 0x275   : > { %v3449_v37 = vsel %vm2961_vm4, %v3446_v4, %v3448_v62  ;;  %v2790_v4 = vld [vmem:[%s6713_s28 + $0x60] sm:$0xff]  ;;  %v3875_v45 = vpack.c.b16 %v3856_v8, %v3856_v8  ;;  %v2793_v8 = vld [vmem:[%s6713_s28 + $0x78] sm:$0xff] }
 0x276   : > { %4715 = vst [vmem:[%s6713_s28 + $0x48] sm:$0xff] %v4679_v2  ;;  %v5003_v20 = vmul.f32 %v4862_v22, %v4679_v2  ;;  %4196 = vmatmul.bf16.gmra.mxu3 %v4028_v44 }
 0x277   : > { %v3556_v27 = vpop.f32.mrf.mxu2  ;;  %4644 = vmatmul.bf16.gmra.mxu0 %v4496_v63  ;;  %v4042_v2 = vshll.u32 %v3875_v45, 16 }
 0x278   : > { %v3631_v0 = vadd.f32 %v3556_v27, %v3174_v1  ;;  %v5039_v5 = vadd.f32 %v5038_v34, %v5003_v20  ;;  %v5081_v18 = vmul.f32 %v5003_v20, %v5003_v20  ;;  %v7989_v1 = vld [vmem:[%s6708_s24 + $0x90] sm:$0xff] }
 0x279   : > { %v3101_v33 = vpop.f32.mrf.mxu1  ;;  %v7943_v16 = vpop.f32.mrf.mxu3 }
 0x27a   : > { %v4222_v36 = vadd.f32 %v7845_v43, %v3631_v0  ;;  %v5116_v42 = vadd.f32 %v5115_v57, %v5081_v18  ;;  %v3175_v21 = vadd.f32 %v3101_v33, %v2789_v9  ;;  %v4039_v57 = vshrl.u32 %v3875_v45, 16 }
 0x27b   : > { %v4044_v0 = vrot.slane %v4042_v2, 3  ;;  %v2993_v18 = vrot.slane %v7980_v51, 2  ;;  %v2850_v2 = vld [vmem:[%s6708_s24 + $0x98] sm:$0x3] }
 0x27c   : > { %v4680_v59 = vadd.f32 %v4605_v11, %v4222_v36  ;;  %v4607_v38 = vpop.f32.mrf.mxu0  ;;  %v4041_v27 = vrot.slane %v4039_v57, 2 }
 0x27d   : > { %v2994_v12 = vsel %vm2961_vm4, %v2991_v48, %v2993_v18 }
 0x27e   : > { %4716 = vst [vmem:[%s6713_s28 + $0x50] sm:$0xff] %v4680_v59  ;;  %v5004_v58 = vmul.f32 %v4867_v19, %v4680_v59 }
 0x27f   : > { %v3558_v43 = vpop.f32.mrf.mxu2 }
 0x280   : > { %v3632_v52 = vadd.f32 %v3558_v43, %v3175_v21  ;;  %v5040_v3 = vadd.f32 %v5039_v5, %v5004_v58  ;;  %v5082_v41 = vmul.f32 %v5004_v58, %v5004_v58  ;;  %v2791_v5 = vld [vmem:[%s6713_s28 + $0x68] sm:$0xff] }
 0x281   : > { %v3104_v31 = vpop.f32.mrf.mxu1  ;;  %v7966_v13 = vpop.f32.mrf.mxu3 }
 0x282   : > { %v4223_v39 = vadd.f32 %v7871_v46, %v3632_v52  ;;  %v5117_v25 = vadd.f32 %v5116_v42, %v5082_v41  ;;  %v4037_v46 = vsel %vm3876_vm3, %v7907_v53, %v7953_v24  ;;  %v3176_v26 = vadd.f32 %v3104_v31, %v2790_v4  ;;  %v7983_v53 = vld [vmem:[%s6708_s24 + $0x90] sm:$0xff]  ;;  %v4882_v52 = vpop.permute.xlu1 %4881 }
 0x283   : > { %v3450_v10 = vrot.slane %v7983_v53, 2  ;;  %v2995_v4 = vrot.slane %v8015_v35, 2 }
 0x284   : > { %3143 = vmatmul.bf16.gmra.mxu1 %v2992_v28  ;;  %3600 = vmatmul.bf16.gmra.mxu2 %v3449_v37  ;;  %v4681_v34 = vadd.f32 %v4607_v38, %v4223_v39  ;;  %v4610_v55 = vpop.f32.mrf.mxu0  ;;  %v4045_v38 = vor.u32 %v4044_v0, %v4041_v27 }
 0x285   : > { %v3451_v9 = vsel %vm2961_vm4, %v3448_v62, %v3450_v10 }
 0x286   : > { %4717 = vst [vmem:[%s6713_s28 + $0x58] sm:$0xff] %v4681_v34  ;;  %v5005_v40 = vmul.f32 %v4872_v49, %v4681_v34  ;;  %4201 = vmatmul.bf16.gmra.mxu3 %v4037_v46  ;;  %v4046_v30 = vsel %vm3876_vm3, %v7953_v24, %v4045_v38  ;;  %v4887_v34 = vpop.permute.xlu2 %4886  ;;  %v8024_v46 = vld [vmem:[%s6708_s24 + $0x98] sm:$0xff] }
 0x287   : > { %v3561_v6 = vpop.f32.mrf.mxu2  ;;  %4649 = vmatmul.bf16.gmra.mxu0 %v4498_v29 }
 0x288   : > { %v3633_v7 = vadd.f32 %v3561_v6, %v3176_v26  ;;  %v5041_v56 = vadd.f32 %v5040_v3, %v5005_v40  ;;  %v5083_v60 = vmul.f32 %v5005_v40, %v5005_v40 }
 0x289   : > { %v3106_v22 = vpop.f32.mrf.mxu1  ;;  %v7986_v44 = vpop.f32.mrf.mxu3 }
 0x28a   : > { %v4224_v11 = vadd.f32 %v7894_v61, %v3633_v7  ;;  %v5118_v63 = vadd.f32 %v5117_v25, %v5083_v60  ;;  %v3177_v33 = vadd.f32 %v3106_v22, %v2791_v5  ;;  %v4499_v61 = vrot.slane %v7989_v1, 3  ;;  %v2794_v5 = vld [vmem:[%s6713_s28 + $0x80] sm:$0xff] }
 0x28b   : > { %v4501_v60 = vrot.slane %v8024_v46, 3  ;;  %v2996_v22 = vsel %vm2961_vm4, %v2993_v18, %v2995_v4  ;;  %v2941_v18 = vunpack.c.l.b16 %v2850_v2 }
 0x28c   : > { %v4682_v20 = vadd.f32 %v4610_v55, %v4224_v11  ;;  %v4612_v15 = vpop.f32.mrf.mxu0  ;;  %v4500_v50 = vsel %vm4467_vm5, %v4497_v32, %v4499_v61  ;;  %v8018_v32 = vld [vmem:[%s6708_s24 + $0x98] sm:$0xff]  ;;  %v3308_v11 = vld [vmem:[%s6708_s24 + $0xa0] sm:$0x3] }
 0x28d   : > { %v3452_v26 = vrot.slane %v8018_v32, 2  ;;  %v4502_v0 = vsel %vm4467_vm5, %v4499_v61, %v4501_v60 }
 0x28e   : > { %4718 = vst [vmem:[%s6713_s28 + $0x60] sm:$0xff] %v4682_v20  ;;  %v5006_v17 = vmul.f32 %v4877_v23, %v4682_v20  ;;  %v4892_v20 = vpop.permute.xlu0 %4891 }
 0x28f   : > { %v3563_v36 = vpop.f32.mrf.mxu2  ;;  %v3453_v51 = vsel %vm2961_vm4, %v3450_v10, %v3452_v26  ;;  %v3399_v10 = vunpack.c.l.b16 %v3308_v11 }
 0x290   : > { %v3634_v42 = vadd.f32 %v3563_v36, %v3177_v33  ;;  %v5042_v19 = vadd.f32 %v5041_v56, %v5006_v17  ;;  %v5084_v59 = vmul.f32 %v5006_v17, %v5006_v17  ;;  %v4356_v33 = vld [vmem:[%s6708_s24 + $0xa0] sm:$0x7] }
 0x291   : > { %v3109_v54 = vpop.f32.mrf.mxu1  ;;  %v8003_v43 = vpop.f32.mrf.mxu3  ;;  %v4447_v38 = vunpack.c.l.b16 %v4356_v33  ;;  %v3418_v1 = vpack.c.b16 %v3399_v10, %v3399_v10 }
 0x292   : > { %v4225_v21 = vadd.f32 %v7920_v47, %v3634_v42  ;;  %v5119_v58 = vadd.f32 %v5118_v63, %v5084_v59  ;;  %v2792_v47 = vld [vmem:[%s6713_s28 + $0x70] sm:$0xff] }
 0x293   : > { %v3178_v48 = vadd.f32 %v3109_v54, %v2792_v47  ;;  %v3454_v47 = vrot.slane %v3418_v1, 2 }
 0x294   : > { %3148 = vmatmul.bf16.gmra.mxu1 %v2994_v12  ;;  %3605 = vmatmul.bf16.gmra.mxu2 %v3451_v9  ;;  %v4683_v3 = vadd.f32 %v4612_v15, %v4225_v21  ;;  %v4615_v41 = vpop.f32.mrf.mxu0  ;;  %v2960_v12 = vpack.c.b16 %v2941_v18, %v2941_v18  ;;  %v4897_v21 = vpop.permute.xlu1 %4896 }
 0x295   : > { %v3455_v32 = vsel %vm2961_vm4, %v3452_v26, %v3454_v47 }
 0x296   : > { %4719 = vst [vmem:[%s6713_s28 + $0x68] sm:$0xff] %v4683_v3  ;;  %v5007_v62 = vmul.f32 %v4882_v52, %v4683_v3  ;;  %4206 = vmatmul.bf16.gmra.mxu3 %v4046_v30  ;;  %v2997_v30 = vrot.slane %v2960_v12, 2 }
 0x297   : > { %v3566_v31 = vpop.f32.mrf.mxu2  ;;  %4654 = vmatmul.bf16.gmra.mxu0 %v4500_v50  ;;  %v2795_v50 = vld [vmem:[%s6713_s28 + $0x88] sm:$0xff] }
 0x298   : > { %v3635_v28 = vadd.f32 %v3566_v31, %v3178_v48  ;;  %v5043_v37 = vadd.f32 %v5042_v19, %v5007_v62  ;;  %v5085_v39 = vmul.f32 %v5007_v62, %v5007_v62  ;;  %v2998_v35 = vsel %vm2961_vm4, %v2995_v4, %v2997_v30 }
 0x299   : > { %v3111_v25 = vpop.f32.mrf.mxu1  ;;  %v8021_v14 = vpop.f32.mrf.mxu3 }
 0x29a   : > { %v4226_v24 = vadd.f32 %v7943_v16, %v3635_v28  ;;  %v5120_v49 = vadd.f32 %v5119_v58, %v5085_v39  ;;  %v3179_v40 = vadd.f32 %v3111_v25, %v2793_v8  ;;  %v2796_v8 = vld [vmem:[%s6713_s28 + $0x90] sm:$0xff] }
 0x29c   : > { %v4684_v55 = vadd.f32 %v4615_v41, %v4226_v24  ;;  %v4617_v29 = vpop.f32.mrf.mxu0  ;;  %v4466_v41 = vpack.c.b16 %v4447_v38, %v4447_v38 }
 0x29e   : > { %4720 = vst [vmem:[%s6713_s28 + $0x70] sm:$0xff] %v4684_v55  ;;  %v5008_v45 = vmul.f32 %v4887_v34, %v4684_v55  ;;  %v4902_v34 = vpop.permute.xlu2 %4901 }
 0x29f   : > { %v3568_v6 = vpop.f32.mrf.mxu2 }
 0x2a0   : > { %v3636_v16 = vadd.f32 %v3568_v6, %v3179_v40  ;;  %v5044_v7 = vadd.f32 %v5043_v37, %v5008_v45  ;;  %v5086_v56 = vmul.f32 %v5008_v45, %v5008_v45 }
 0x2a1   : > { %v3114_v57 = vpop.f32.mrf.mxu1  ;;  %v8036_v23 = vpop.f32.mrf.mxu3 }
 0x2a2   : > { %v4227_v53 = vadd.f32 %v7966_v13, %v3636_v16  ;;  %v5121_v63 = vadd.f32 %v5120_v49, %v5086_v56  ;;  %v3180_v13 = vadd.f32 %v3114_v57, %v2794_v5 }
 0x2a4   : > { %3153 = vmatmul.bf16.gmra.mxu1 %v2996_v22  ;;  %3610 = vmatmul.bf16.gmra.mxu2 %v3453_v51  ;;  %v4685_v15 = vadd.f32 %v4617_v29, %v4227_v53  ;;  %v4620_v27 = vpop.f32.mrf.mxu0  ;;  %v4907_v22 = vpop.permute.xlu0 %4906  ;;  %v2797_v53 = vld [vmem:[%s6713_s28 + $0x98] sm:$0xff] }
 0x2a6   : > { %4721 = vst [vmem:[%s6713_s28 + $0x78] sm:$0xff] %v4685_v15  ;;  %v5009_v17 = vmul.f32 %v4892_v20, %v4685_v15 }
 0x2a7   : > { %v3571_v36 = vpop.f32.mrf.mxu2  ;;  %4659 = vmatmul.bf16.gmra.mxu0 %v4502_v0 }
 0x2a8   : > { %v3637_v42 = vadd.f32 %v3571_v36, %v3180_v13  ;;  %v5045_v19 = vadd.f32 %v5044_v7, %v5009_v17  ;;  %v5087_v59 = vmul.f32 %v5009_v17, %v5009_v17  ;;  %v2798_v13 = vld [vmem:[%s6713_s28 + $0xa0] sm:$0xff]  ;;  %v4912_v17 = vpop.permute.xlu1 %4911 }
 0x2a9   : > { %v3116_v54 = vpop.f32.mrf.mxu1  ;;  %v8045_v58 = vpop.f32.mrf.mxu3 }
 0x2aa   : > { %v4228_v61 = vadd.f32 %v7986_v44, %v3637_v42  ;;  %v5122_v9 = vadd.f32 %v5121_v63, %v5087_v59  ;;  %v3181_v48 = vadd.f32 %v3116_v54, %v2795_v50  ;;  %v4503_v44 = vrot.slane %v4466_v41, 3 }
 0x2ac   : > { %v4686_v52 = vadd.f32 %v4620_v27, %v4228_v61  ;;  %v4622_v3 = vpop.f32.mrf.mxu0  ;;  %v4504_v46 = vsel %vm4467_vm5, %v4501_v60, %v4503_v44 }
 0x2ae   : > { %4722 = vst [vmem:[%s6713_s28 + $0x80] sm:$0xff] %v4686_v52  ;;  %v5010_v62 = vmul.f32 %v4897_v21, %v4686_v52  ;;  %v2799_v52 = vld [vmem:[%s6713_s28 + $0xa8] sm:$0xff] }
 0x2af   : > { %v3573_v31 = vpop.f32.mrf.mxu2 }
 0x2b0   : > { %v3638_v28 = vadd.f32 %v3573_v31, %v3181_v48  ;;  %v5046_v37 = vadd.f32 %v5045_v19, %v5010_v62  ;;  %v5088_v39 = vmul.f32 %v5010_v62, %v5010_v62 }
 0x2b1   : > { %v3119_v25 = vpop.f32.mrf.mxu1  ;;  %v4174_v40 = vpop.f32.mrf.mxu3 }
 0x2b2   : > { %v4229_v24 = vadd.f32 %v8003_v43, %v3638_v28  ;;  %v5123_v49 = vadd.f32 %v5122_v9, %v5088_v39  ;;  %v3182_v45 = vadd.f32 %v3119_v25, %v2796_v8  ;;  %v2800_v25 = vld [vmem:[%s6713_s28 + $0xb0] sm:$0xff] }
 0x2b4   : > { %3158 = vmatmul.bf16.gmra.mxu1 %v2998_v35  ;;  %3615 = vmatmul.bf16.gmra.mxu2 %v3455_v32  ;;  %v4687_v55 = vadd.f32 %v4622_v3, %v4229_v24  ;;  %v4625_v29 = vpop.f32.mrf.mxu0  ;;  %v4917_v3 = vpop.permute.xlu2 %4916 }
 0x2b5   : > { %v4922_v35 = vpop.permute.xlu0 %4921 }
 0x2b6   : > { %4723 = vst [vmem:[%s6713_s28 + $0x88] sm:$0xff] %v4687_v55  ;;  %v5011_v6 = vmul.f32 %v4902_v34, %v4687_v55 }
 0x2b7   : > { %v3576_v4 = vpop.f32.mrf.mxu2  ;;  %4664 = vmatmul.bf16.gmra.mxu0 %v4504_v46 }
 0x2b8   : > { %v3639_v26 = vadd.f32 %v3576_v4, %v3182_v45  ;;  %v5047_v16 = vadd.f32 %v5046_v37, %v5011_v6  ;;  %v5089_v43 = vmul.f32 %v5011_v6, %v5011_v6  ;;  %v2801_v4 = vld [vmem:[%s6713_s28 + $0xb8] sm:$0xff] }
 0x2b9   : > { %v3121_v7 = vpop.f32.mrf.mxu1  ;;  %v4177_v20 = vpop.f32.mrf.mxu3 }
 0x2ba   : > { %v4230_v56 = vadd.f32 %v8021_v14, %v3639_v26  ;;  %v5124_v57 = vadd.f32 %v5123_v49, %v5089_v43  ;;  %v3183_v2 = vadd.f32 %v3121_v7, %v2797_v53  ;;  %v4927_v26 = vpop.permute.xlu1 %4926 }
 0x2bc   : > { %v4688_v51 = vadd.f32 %v4625_v29, %v4230_v56  ;;  %v4627_v60 = vpop.f32.mrf.mxu0 }
 0x2be   : > { %4724 = vst [vmem:[%s6713_s28 + $0x90] sm:$0xff] %v4688_v51  ;;  %v5012_v11 = vmul.f32 %v4907_v22, %v4688_v51 }
 0x2bf   : > { %v3578_v63 = vpop.f32.mrf.mxu2 }
 0x2c0   : > { %v3640_v15 = vadd.f32 %v3578_v63, %v3183_v2  ;;  %v5048_v27 = vadd.f32 %v5047_v16, %v5012_v11  ;;  %v5090_v0 = vmul.f32 %v5012_v11, %v5012_v11 }
 0x2c1   : > { %v3124_v5 = vpop.f32.mrf.mxu1  ;;  %v4179_v1 = vpop.f32.mrf.mxu3 }
 0x2c2   : > { %v4231_v18 = vadd.f32 %v8036_v23, %v3640_v15  ;;  %v5125_v10 = vadd.f32 %v5124_v57, %v5090_v0  ;;  %v3184_v36 = vadd.f32 %v3124_v5, %v2798_v13  ;;  %v4932_v15 = vpop.permute.xlu2 %4931 }
 0x2c4   : > { %v4689_v14 = vadd.f32 %v4627_v60, %v4231_v18  ;;  %v4630_v33 = vpop.f32.mrf.mxu0 }
 0x2c6   : > { %4725 = vst [vmem:[%s6713_s28 + $0x98] sm:$0xff] %v4689_v14  ;;  %v5013_v42 = vmul.f32 %v4912_v17, %v4689_v14 }
 0x2c7   : > { %v3581_v19 = vpop.f32.mrf.mxu2 }
 0x2c8   : > { %v3641_v59 = vadd.f32 %v3581_v19, %v3184_v36  ;;  %v5049_v38 = vadd.f32 %v5048_v27, %v5013_v42  ;;  %v5091_v54 = vmul.f32 %v5013_v42, %v5013_v42 }
 0x2c9   : > { %v3126_v12 = vpop.f32.mrf.mxu1  ;;  %v4182_v39 = vpop.f32.mrf.mxu3 }
 0x2ca   : > { %v4232_v61 = vadd.f32 %v8045_v58, %v3641_v59  ;;  %v5126_v9 = vadd.f32 %v5125_v10, %v5091_v54  ;;  %v3185_v41 = vadd.f32 %v3126_v12, %v2799_v52  ;;  %v2803_v59 = vld [vmem:[%s6713_s28 + $0xc8] sm:$0xff] }
 0x2cc   : > { %v4690_v23 = vadd.f32 %v4630_v33, %v4232_v61  ;;  %v4632_v21 = vpop.f32.mrf.mxu0 }
 0x2ce   : > { %4726 = vst [vmem:[%s6713_s28 + $0xa0] sm:$0xff] %v4690_v23  ;;  %v5014_v50 = vmul.f32 %v4917_v3, %v4690_v23 }
 0x2cf   : > { %v3583_v30 = vpop.f32.mrf.mxu2 }
 0x2d0   : > { %v3642_v47 = vadd.f32 %v3583_v30, %v3185_v41  ;;  %v5050_v48 = vadd.f32 %v5049_v38, %v5014_v50  ;;  %v5092_v62 = vmul.f32 %v5014_v50, %v5014_v50  ;;  %v4937_v38 = vpop.permute.xlu0 %4936 }
 0x2d1   : > { %v3129_v31 = vpop.f32.mrf.mxu1  ;;  %v4184_v16 = vpop.f32.mrf.mxu3 }
 0x2d2   : > { %v4233_v28 = vadd.f32 %v4174_v40, %v3642_v47  ;;  %v5127_v37 = vadd.f32 %v5126_v9, %v5092_v62  ;;  %v3186_v32 = vadd.f32 %v3129_v31, %v2800_v25  ;;  %v2804_v47 = vld [vmem:[%s6713_s28 + $0xd0] sm:$0xff]  ;;  %v2805_v25 = vld [vmem:[%s6713_s28 + $0xd8] sm:$0xff] }
 0x2d4   : > { %v4691_v44 = vadd.f32 %v4632_v21, %v4233_v28  ;;  %v4635_v58 = vpop.f32.mrf.mxu0 }
 0x2d6   : > { %4727 = vst [vmem:[%s6713_s28 + $0xa8] sm:$0xff] %v4691_v44  ;;  %v5015_v24 = vmul.f32 %v4922_v35, %v4691_v44 }
 0x2d7   : > { %v3586_v49 = vpop.f32.mrf.mxu2 }
 0x2d8   : > { %v3643_v34 = vadd.f32 %v3586_v49, %v3186_v32  ;;  %v5051_v55 = vadd.f32 %v5050_v48, %v5015_v24  ;;  %v5093_v29 = vmul.f32 %v5015_v24, %v5015_v24 }
 0x2d9   : > { %v3131_v46 = vpop.f32.mrf.mxu1  ;;  %v4187_v18 = vpop.f32.mrf.mxu3 }
 0x2da   : > { %v4234_v8 = vadd.f32 %v4177_v20, %v3643_v34  ;;  %v5128_v45 = vadd.f32 %v5127_v37, %v5093_v29  ;;  %v3187_v43 = vadd.f32 %v3131_v46, %v2801_v4  ;;  %v2802_v20 = vld [vmem:[%s6713_s28 + $0xc0] sm:$0xff] }
 0x2db   : > { %v2806_v46 = vld [vmem:[%s6713_s28 + $0xe0] sm:$0xff] }
 0x2dc   : > { %v4692_v6 = vadd.f32 %v4635_v58, %v4234_v8  ;;  %v4637_v40 = vpop.f32.mrf.mxu0 }
 0x2de   : > { %4728 = vst [vmem:[%s6713_s28 + $0xb0] sm:$0xff] %v4692_v6  ;;  %v5016_v7 = vmul.f32 %v4927_v26, %v4692_v6 }
 0x2df   : > { %v3588_v56 = vpop.f32.mrf.mxu2 }
 0x2e0   : > { %v3644_v57 = vadd.f32 %v3588_v56, %v3187_v43  ;;  %v5052_v22 = vadd.f32 %v5051_v55, %v5016_v7  ;;  %v5094_v51 = vmul.f32 %v5016_v7, %v5016_v7  ;;  %v2807_v7 = vld [vmem:[%s6713_s28 + $0xe8] sm:$0xff] }
 0x2e1   : > { %v3134_v60 = vpop.f32.mrf.mxu1  ;;  %v4189_v52 = vpop.f32.mrf.mxu3 }
 0x2e2   : > { %v4235_v53 = vadd.f32 %v4179_v1, %v3644_v57  ;;  %v5129_v2 = vadd.f32 %v5128_v45, %v5094_v51  ;;  %v3188_v27 = vadd.f32 %v3134_v60, %v2802_v20 }
 0x2e4   : > { %v4693_v11 = vadd.f32 %v4637_v40, %v4235_v53  ;;  %v4640_v63 = vpop.f32.mrf.mxu0 }
 0x2e6   : > { %4729 = vst [vmem:[%s6713_s28 + $0xb8] sm:$0xff] %v4693_v11  ;;  %v5017_v0 = vmul.f32 %v4932_v15, %v4693_v11 }
 0x2e7   : > { %v3591_v5 = vpop.f32.mrf.mxu2 }
 0x2e8   : > { %v3645_v10 = vadd.f32 %v3591_v5, %v3188_v27  ;;  %v5053_v14 = vadd.f32 %v5052_v22, %v5017_v0  ;;  %v5095_v33 = vmul.f32 %v5017_v0, %v5017_v0 }
 0x2e9   : > { %v3136_v13 = vpop.f32.mrf.mxu1 }
 0x2ea   : > { %v4236_v17 = vadd.f32 %v4182_v39, %v3645_v10  ;;  %v5130_v36 = vadd.f32 %v5129_v2, %v5095_v33  ;;  %v3189_v54 = vadd.f32 %v3136_v13, %v2803_v59  ;;  %v4192_v39 = vpop.f32.mrf.mxu3  ;;  %v2809_v33 = vld [vmem:[%s6713_s28 + $0xf8] sm:$0xff] }
 0x2ec   : > { %v4694_v42 = vadd.f32 %v4640_v63, %v4236_v17  ;;  %v4642_v19 = vpop.f32.mrf.mxu0  ;;  %v2808_v63 = vld [vmem:[%s6713_s28 + $0xf0] sm:$0xff] }
 0x2ee   : > { %4730 = vst [vmem:[%s6713_s28 + $0xc0] sm:$0xff] %v4694_v42  ;;  %v5018_v12 = vmul.f32 %v4937_v38, %v4694_v42  ;;  %v4942_v42 = vpop.permute.xlu1 %4941 }
 0x2ef   : > { %v3593_v1 = vpop.f32.mrf.mxu2 }
 0x2f0   : > { %v3646_v61 = vadd.f32 %v3593_v1, %v3189_v54  ;;  %v8072_v9 = vadd.f32 %v5053_v14, %v5018_v12  ;;  %v5096_v23 = vmul.f32 %v5018_v12, %v5018_v12  ;;  %v2810_v12 = vld [vmem:[%s6713_s28 + $0x100] sm:$0xff] }
 0x2f1   : > { %v3139_v21 = vpop.f32.mrf.mxu1 }
 0x2f2   : > { %v4237_v3 = vadd.f32 %v4184_v16, %v3646_v61  ;;  %v8074_v41 = vadd.f32 %v5130_v36, %v5096_v23  ;;  %v3190_v48 = vadd.f32 %v3139_v21, %v2804_v47  ;;  %v4194_v8 = vpop.f32.mrf.mxu3  ;;  %v4947_v23 = vpop.permute.xlu2 %4946 }
 0x2f4   : > { %v8076_v50 = vadd.f32 %v4642_v19, %v4237_v3  ;;  %v4645_v30 = vpop.f32.mrf.mxu0  ;;  %v4952_v3 = vpop.permute.xlu0 %4951 }
 0x2f6   : > { %4731 = vst [vmem:[%s6713_s28 + $0xc8] sm:$0xff] %v8076_v50 }
 0x2f7   : > { %v3596_v62 = vpop.f32.mrf.mxu2 }
 0x2f8   : > { %v3647_v31 = vadd.f32 %v3596_v62, %v3190_v48  ;;  %v4957_v48 = vpop.permute.xlu1 %4956 }
 0x2f9   : > { %v3141_v28 = vpop.f32.mrf.mxu1 }
 0x2fa   : > { %v4238_v37 = vadd.f32 %v4187_v18, %v3647_v31  ;;  %v3191_v35 = vadd.f32 %v3141_v28, %v2805_v25  ;;  %v4197_v22 = vpop.f32.mrf.mxu3  ;;  %v5019_v31 = vmul.f32 %v4942_v42, %v8076_v50  ;;  %v2811_v28 = vld [vmem:[%s6713_s28 + $0x108] sm:$0xff] }
 0x2fc   : > { %v8081_v44 = vadd.f32 %v4645_v30, %v4238_v37  ;;  %v4647_v58 = vpop.f32.mrf.mxu0 }
 0x2fe   : > { %4732 = vst [vmem:[%s6713_s28 + $0xd0] sm:$0xff] %v8081_v44 }
 0x2ff   : > { %v3598_v32 = vpop.f32.mrf.mxu2 }
 0x300   : > { %v3648_v24 = vadd.f32 %v3598_v32, %v3191_v35 }
 0x301   : > { %v3144_v49 = vpop.f32.mrf.mxu1 }
 0x302   : > { %v4239_v34 = vadd.f32 %v4189_v52, %v3648_v24  ;;  %v3192_v45 = vadd.f32 %v3144_v49, %v2806_v46  ;;  %v4199_v5 = vpop.f32.mrf.mxu3  ;;  %v4962_v24 = vpop.permute.xlu2 %4961  ;;  %v5097_v49 = vmul.f32 %v5019_v31, %v5019_v31 }
 0x304   : > { %v8086_v55 = vadd.f32 %v4647_v58, %v4239_v34  ;;  %v4650_v29 = vpop.f32.mrf.mxu0  ;;  %v5020_v58 = vmul.f32 %v4947_v23, %v8081_v44  ;;  %v5132_v44 = vadd.f32 %v8074_v41, %v5097_v49 }
 0x306   : > { %4733 = vst [vmem:[%s6713_s28 + $0xd8] sm:$0xff] %v8086_v55  ;;  %v5021_v34 = vmul.f32 %v4952_v3, %v8086_v55 }
 0x307   : > { %v3601_v6 = vpop.f32.mrf.mxu2 }
 0x308   : > { %v3649_v40 = vadd.f32 %v3601_v6, %v3192_v45  ;;  %v5098_v45 = vmul.f32 %v5020_v58, %v5020_v58  ;;  %v5055_v6 = vadd.f32 %v8072_v9, %v5019_v31 }
 0x309   : > { %v3146_v4 = vpop.f32.mrf.mxu1 }
 0x30a   : > { %v4240_v26 = vadd.f32 %v4192_v39, %v3649_v40  ;;  %v3193_v56 = vadd.f32 %v3146_v4, %v2807_v7  ;;  %v4202_v38 = vpop.f32.mrf.mxu3  ;;  %v4972_v4 = vpop.permute.xlu1 %4971  ;;  %v2812_v7 = vld [vmem:[%s6713_s28 + $0x110] sm:$0xff] }
 0x30c   : > { %v4698_v16 = vadd.f32 %v4650_v29, %v4240_v26  ;;  %v4652_v43 = vpop.f32.mrf.mxu0  ;;  %v5099_v26 = vmul.f32 %v5021_v34, %v5021_v34 }
 0x30e   : > { %4734 = vst [vmem:[%s6713_s28 + $0xe0] sm:$0xff] %v4698_v16  ;;  %v5022_v50 = vmul.f32 %v4957_v48, %v4698_v16 }
 0x30f   : > { %v3603_v57 = vpop.f32.mrf.mxu2 }
 0x310   : > { %v3650_v51 = vadd.f32 %v3603_v57, %v3193_v56  ;;  %v5056_v56 = vadd.f32 %v5055_v6, %v5020_v58 }
 0x311   : > { %v3149_v60 = vpop.f32.mrf.mxu1 }
 0x312   : > { %v4241_v53 = vadd.f32 %v4194_v8, %v3650_v51  ;;  %v3194_v20 = vadd.f32 %v3149_v60, %v2808_v63  ;;  %v4204_v37 = vpop.f32.mrf.mxu3  ;;  %v4967_v8 = vpop.permute.xlu0 %4966  ;;  %v5100_v51 = vmul.f32 %v5022_v50, %v5022_v50 }
 0x314   : > { %v4699_v2 = vadd.f32 %v4652_v43, %v4241_v53  ;;  %v4655_v11 = vpop.f32.mrf.mxu0 }
 0x316   : > { %4735 = vst [vmem:[%s6713_s28 + $0xe8] sm:$0xff] %v4699_v2  ;;  %v5023_v43 = vmul.f32 %v4962_v24, %v4699_v2  ;;  %v4977_v2 = vpop.permute.xlu2 %4976 }
 0x317   : > { %v3606_v15 = vpop.f32.mrf.mxu2 }
 0x318   : > { %v3651_v27 = vadd.f32 %v3606_v15, %v3194_v20  ;;  %v5101_v9 = vmul.f32 %v5023_v43, %v5023_v43 }
 0x319   : > { %v3151_v0 = vpop.f32.mrf.mxu1 }
 0x31a   : > { %v4242_v18 = vadd.f32 %v4197_v22, %v3651_v27  ;;  %v3195_v13 = vadd.f32 %v3151_v0, %v2809_v33  ;;  %v5133_v22 = vadd.f32 %v5132_v44, %v5098_v45  ;;  %v4207_v53 = vpop.f32.mrf.mxu3 }
 0x31c   : > { %v4700_v10 = vadd.f32 %v4655_v11, %v4242_v18  ;;  %v4657_v14 = vpop.f32.mrf.mxu0  ;;  %v5057_v11 = vadd.f32 %v5056_v56, %v5021_v34  ;;  %v5134_v16 = vadd.f32 %v5133_v22, %v5099_v26  ;;  %v5030_v56 = vld [vmem:[%s8130_s4] sm:$0x3] }
 0x31e   : > { %4736 = vst [vmem:[%s6713_s28 + $0xf0] sm:$0xff] %v4700_v10  ;;  %v5024_v55 = vmul.f32 %v4967_v8, %v4700_v10  ;;  %v5058_v15 = vadd.f32 %v5057_v11, %v5022_v50  ;;  %v5135_v0 = vadd.f32 %v5134_v16, %v5100_v51  ;;  %v4982_v10 = vpop.permute.xlu0 %4981 }
 0x31f   : > { %v3608_v17 = vpop.f32.mrf.mxu2 }
 0x320   : > { %v3652_v36 = vadd.f32 %v3608_v17, %v3195_v13  ;;  %v5136_v17 = vadd.f32 %v5135_v0, %v5101_v9 }
 0x321   : > { %v3154_v19 = vpop.f32.mrf.mxu1 }
 0x322   : > { %v4243_v59 = vadd.f32 %v4199_v5, %v3652_v36  ;;  %v3196_v61 = vadd.f32 %v3154_v19, %v2810_v12  ;;  %v5102_v5 = vmul.f32 %v5024_v55, %v5024_v55  ;;  %v2813_v36 = vld [vmem:[%s6713_s28 + $0x118] sm:$0xff]  ;;  %v4987_v12 = vpop.permute.xlu1 %4986  ;;  %v4209_v3 = vpop.f32.mrf.mxu3 }
 0x324   : > { %v4701_v54 = vadd.f32 %v4657_v14, %v4243_v59  ;;  %v4660_v1 = vpop.f32.mrf.mxu0  ;;  %v5059_v14 = vadd.f32 %v5058_v15, %v5023_v43 }
 0x326   : > { %4737 = vst [vmem:[%s6713_s28 + $0xf8] sm:$0xff] %v4701_v54  ;;  %v5025_v27 = vmul.f32 %v4972_v4, %v4701_v54  ;;  %v5060_v42 = vadd.f32 %v5059_v14, %v5024_v55 }
 0x327   : > { %v3611_v21 = vpop.f32.mrf.mxu2 }
 0x328   : > { %v3653_v52 = vadd.f32 %v3611_v21, %v3196_v61  ;;  %v5103_v19 = vmul.f32 %v5025_v27, %v5025_v27  ;;  %v5061_v61 = vadd.f32 %v5060_v42, %v5025_v27 }
 0x329   : > { %v3156_v30 = vpop.f32.mrf.mxu1 }
 0x32a   : > { %v4244_v47 = vadd.f32 %v4202_v38, %v3653_v52  ;;  %v3197_v39 = vadd.f32 %v3156_v30, %v2811_v28 }
 0x32c   : > { %v4702_v62 = vadd.f32 %v4660_v1, %v4244_v47  ;;  %v4662_v35 = vpop.f32.mrf.mxu0  ;;  %v5137_v1 = vadd.f32 %v5136_v17, %v5102_v5 }
 0x32e   : > { %4738 = vst [vmem:[%s6713_s28 + $0x100] sm:$0xff] %v4702_v62  ;;  %v5026_v33 = vmul.f32 %v4977_v2, %v4702_v62  ;;  %v5138_v30 = vadd.f32 %v5137_v1, %v5103_v19 }
 0x32f   : > { %v3613_v25 = vpop.f32.mrf.mxu2 }
 0x330   : > { %v3654_v32 = vadd.f32 %v3613_v25, %v3197_v39  ;;  %v5104_v23 = vmul.f32 %v5026_v33, %v5026_v33  ;;  %v5062_v47 = vadd.f32 %v5061_v61, %v5026_v33  ;;  %v4992_v25 = vpop.permute.xlu2 %4991 }
 0x331   : > { %v3159_v29 = vpop.f32.mrf.mxu1 }
 0x332   : > { %v4245_v46 = vadd.f32 %v4204_v37, %v3654_v32  ;;  %v3198_v57 = vadd.f32 %v3159_v29, %v2812_v7  ;;  %v5139_v28 = vadd.f32 %v5138_v30, %v5104_v23 }
 0x334   : > { %v4703_v40 = vadd.f32 %v4662_v35, %v4245_v46  ;;  %v4665_v20 = vpop.f32.mrf.mxu0 }
 0x336   : > { %4739 = vst [vmem:[%s6713_s28 + $0x108] sm:$0xff] %v4703_v40  ;;  %v5027_v38 = vmul.f32 %v4982_v10, %v4703_v40 }
 0x337   : > { %v3616_v60 = vpop.f32.mrf.mxu2 }
 0x338   : > { %v3655_v63 = vadd.f32 %v3616_v60, %v3198_v57  ;;  %v5105_v48 = vmul.f32 %v5027_v38, %v5027_v38  ;;  %v5063_v37 = vadd.f32 %v5062_v47, %v5027_v38 }
 0x339   : > { %v3161_v18 = vpop.f32.mrf.mxu1 }
 0x33a   : > { %v4246_v41 = vadd.f32 %v4207_v53, %v3655_v63  ;;  %v3199_v59 = vadd.f32 %v3161_v18, %v2813_v36  ;;  %v5140_v35 = vadd.f32 %v5139_v28, %v5105_v48 }
 0x33c   : > { %v4704_v13 = vadd.f32 %v4665_v20, %v4246_v41  ;;  %v4667_v31 = vpop.f32.mrf.mxu0 }
 0x33e   : > { %4740 = vst [vmem:[%s6713_s28 + $0x110] sm:$0xff] %v4704_v13  ;;  %v5028_v52 = vmul.f32 %v4987_v12, %v4704_v13 }
 0x33f   : > { %v3618_v54 = vpop.f32.mrf.mxu2 }
 0x340   : > { %v3656_v21 = vadd.f32 %v3618_v54, %v3199_v59  ;;  %v5106_v39 = vmul.f32 %v5028_v52, %v5028_v52  ;;  %v5064_v32 = vadd.f32 %v5063_v37, %v5028_v52 }
 0x342   : > { %v4247_v62 = vadd.f32 %v4209_v3, %v3656_v21  ;;  %v5141_v49 = vadd.f32 %v5140_v35, %v5106_v39 }
 0x344   : > { %v4705_v58 = vadd.f32 %v4667_v31, %v4247_v62 }
 0x346   : > { %4741 = vst [vmem:[%s6713_s28 + $0x118] sm:$0xff] %v4705_v58  ;;  %v5029_v24 = vmul.f32 %v4992_v25, %v4705_v58 }
 0x348   : > { %v5065_v34 = vadd.f32 %v5064_v32, %v5029_v24  ;;  %v5107_v29 = vmul.f32 %v5029_v24, %v5029_v24 }
 0x34a   : > { %v5066_v46 = vrot.slane %v5065_v34, 4  ;;  %v5142_v8 = vadd.f32 %v5141_v49, %v5107_v29 }
 0x34c   : > { %v5067_v45 = vadd.f32 %v5066_v46, %v5065_v34  ;;  %v5143_v50 = vrot.slane %v5142_v8, 4 }
 0x34e   : > { %v5068_v6 = vrot.slane %v5067_v45, 2  ;;  %v5144_v40 = vadd.f32 %v5143_v50, %v5142_v8 }
 0x350   : > { %v5069_v4 = vadd.f32 %v5068_v6, %v5067_v45  ;;  %v5145_v44 = vrot.slane %v5144_v40, 2 }
 0x352   : > { %v5070_v26 = vrot.slane %v5069_v4, 1  ;;  %v5146_v43 = vadd.f32 %v5145_v44, %v5144_v40 }
 0x354   : > { %v5147_v7 = vrot.slane %v5146_v43, 1  ;;  %v5071_v57 = vadd.f32 %v5070_v26, %v5069_v4 }
 0x356   : > { %v5148_v22 = vadd.f32 %v5147_v7, %v5146_v43 }
 0x358   : > { %v5150_v51 = vsel %vm5149_vm6, %v5071_v57, %v5148_v22 }
 0x359   : > { %v5151_v55 = vadd.f32 %v5150_v51, %v5030_v56 }
 0x35b   : > { %5152 = vst [vmem:[%s8130_s4] sm:$0x3] %v5151_v55 }
 0x35c PF: > { %s15_s17 = sadd.s32 1, %s6658_s17   ;;  %s8131_s15 = smov %s6654_s16 }
 0x35d   : > { %p12_p7 = scmp.ge.s32.totalorder %s15_s17, 4   ;;  %s8132_s16 = smov %s8134_s18 }
 0x35f   :  { %14 = sbr.rel (!%p12_p7) target bundleno = 2 (0x2), region = 89 }

</bundles_post_ra>
